<compile_context>
chip_gen: v5e
topology: v5e:2x2
jax: 0.10.0
libtpu: 0.0.40
codegen_flags: <defaults>
</compile_context>

<pallas_src>
import jax
import jax.numpy as jnp
from jax.experimental import pallas as pl
from jax.experimental.pallas import tpu as pltpu

# ----------------------------- tiny BERT config ------------------------------
VOCAB = 30
WORD_ROWS = 32          # word table padded to 32 rows for the one-hot matmul
HIDDEN = 32
N_LAYERS = 2
N_HEADS = 4
HEAD_DIM = HIDDEN // N_HEADS
INTERMEDIATE = 64
MAX_POS = 16
TYPE_VOCAB = 2
TYPE_ROWS = 8           # type table padded to 8 rows
LN_EPS = 1e-12

WIDE = 3 * HIDDEN       # packed small-vector row width (= qkv bias width)

# rows of the packed per-layer "vec" buffer [L, 8, WIDE]
_ROW_QKV_B = 0   # width 3*HIDDEN
_ROW_I_B = 1     # width INTERMEDIATE
_ROW_AO_B = 2    # width HIDDEN
_ROW_LN1_G = 3
_ROW_LN1_B = 4
_ROW_O_B = 5
_ROW_LN2_G = 6
_ROW_LN2_B = 7


# --------------------------------- kernel ------------------------------------
def _layernorm(x, g, b):
    mu = jnp.mean(x, axis=-1, keepdims=True)
    var = jnp.mean(jnp.square(x - mu), axis=-1, keepdims=True)
    return (x - mu) * jax.lax.rsqrt(var + LN_EPS) * g + b


def _make_kernel(pooling, B, S):
    f32 = jnp.float32
    bf16 = jnp.bfloat16
    BS = B * S
    scale = 1.0 / (HEAD_DIM ** 0.5)

    def kernel(ids_ref, tids_ref, mask_ref, word_ref, pos_ref, type_ref,
               emb_ln_ref, qkv_w_ref, ao_w_ref, i_w_ref, o_w_ref, vec_ref, *rest):
        if pooling == "pooler":
            pooler_w_ref, pooler_b_ref, out_ref = rest
        else:
            (out_ref,) = rest

        # ---- embedding lookup in-kernel: one-hot @ table (no [B,S,H] HBM trip) ----
        ids = ids_ref[...]                                             # [BS, 1] int32
        tids = tids_ref[...]                                           # [BS, 1] int32
        word_oh = (ids == jax.lax.broadcasted_iota(
            jnp.int32, (BS, WORD_ROWS), 1)).astype(f32)                # [BS, 32]
        type_oh = (tids == jax.lax.broadcasted_iota(
            jnp.int32, (BS, TYPE_ROWS), 1)).astype(f32)                # [BS, 8]
        emb = jnp.dot(word_oh, word_ref[...], preferred_element_type=f32)
        emb = emb + jnp.dot(type_oh, type_ref[...], preferred_element_type=f32)
        emb = emb + jnp.concatenate([pos_ref[0:S, :]] * B, axis=0)     # [BS, H]

        x = _layernorm(emb, emb_ln_ref[0:1, :], emb_ln_ref[1:2, :])    # [BS, H] f32

        # HF extended attention mask, built & broadcast ONCE (hoisted out of loops)
        add_mask = [jnp.broadcast_to((1.0 - mask_ref[b:b + 1, :]) * -10000.0, (S, S))
                    for b in range(B)]

        first_h = None
        for layer in range(N_LAYERS):                 # static unroll (N_LAYERS = 2)
            # small per-layer params via static Ref slices of the packed buffer
            ao_b = vec_ref[layer, _ROW_AO_B:_ROW_AO_B + 1, :HIDDEN]
            ln1_g = vec_ref[layer, _ROW_LN1_G:_ROW_LN1_G + 1, :HIDDEN]
            ln1_b = vec_ref[layer, _ROW_LN1_B:_ROW_LN1_B + 1, :HIDDEN]
            i_b = vec_ref[layer, _ROW_I_B:_ROW_I_B + 1, :INTERMEDIATE]
            o_b = vec_ref[layer, _ROW_O_B:_ROW_O_B + 1, :HIDDEN]
            ln2_g = vec_ref[layer, _ROW_LN2_G:_ROW_LN2_G + 1, :HIDDEN]
            ln2_b = vec_ref[layer, _ROW_LN2_B:_ROW_LN2_B + 1, :HIDDEN]

            x_bf = x.astype(bf16)
            acc = [None] * B
            for h in range(N_HEADS):                  # static unroll
                lo = h * HEAD_DIM
                # static Ref slices of stacked weights: each per-head matmul directly
                # produces [BS, D]; no lane-extracts of the qkv activation value.
                wq = qkv_w_ref[layer, :, lo:lo + HEAD_DIM]
                wk = qkv_w_ref[layer, :, HIDDEN + lo:HIDDEN + lo + HEAD_DIM]
                wv = qkv_w_ref[layer, :, 2 * HIDDEN + lo:2 * HIDDEN + lo + HEAD_DIM]
                bq = vec_ref[layer, _ROW_QKV_B:_ROW_QKV_B + 1, lo:lo + HEAD_DIM]
                bk = vec_ref[layer, _ROW_QKV_B:_ROW_QKV_B + 1,
                             HIDDEN + lo:HIDDEN + lo + HEAD_DIM]
                bv = vec_ref[layer, _ROW_QKV_B:_ROW_QKV_B + 1,
                             2 * HIDDEN + lo:2 * HIDDEN + lo + HEAD_DIM]
                wo = ao_w_ref[layer, lo:lo + HEAD_DIM, :]               # [D, H] bf16

                q_h = jnp.dot(x_bf, wq, preferred_element_type=f32) + bq   # [BS, D]
                k_h = jnp.dot(x_bf, wk, preferred_element_type=f32) + bk
                v_h = jnp.dot(x_bf, wv, preferred_element_type=f32) + bv

                for b in range(B):        # static unroll; slices are sublane-aligned
                    r0 = b * S
                    qb = q_h[r0:r0 + S, :]
                    kb = k_h[r0:r0 + S, :]
                    vb = v_h[r0:r0 + S, :]
                    s = jax.lax.dot_general(qb, kb, (((1,), (1,)), ((), ())),
                                            preferred_element_type=f32) * scale
                    s = s + add_mask[b]
                    s = s - jnp.max(s, axis=-1, keepdims=True)
                    p = jnp.exp(s)
                    p = p * pl.reciprocal(jnp.sum(p, axis=-1, keepdims=True),
                                          approx=True)
                    ctx = jnp.dot(p, vb, preferred_element_type=f32)        # [S, D]
                    # equivalent to concat(ctx_heads) @ ao_w, without the concat
                    part = jnp.dot(ctx.astype(bf16), wo, preferred_element_type=f32)
                    acc[b] = part if acc[b] is None else acc[b] + part

            attn_out = jnp.concatenate(acc, axis=0) + ao_b                  # [BS, H]
            h1 = _layernorm(attn_out + x, ln1_g, ln1_b)

            # TODO(synk): HF BERT default is exact erf-GELU; tanh approximation used
            # since exact erf lowering in Mosaic is not guaranteed.
            inter = jax.nn.gelu(
                jnp.dot(h1.astype(bf16), i_w_ref[layer],
                        preferred_element_type=f32) + i_b,
                approximate=True)                                           # [BS, I]
            ffn = jnp.dot(inter.astype(bf16), o_w_ref[layer],
                          preferred_element_type=f32) + o_b                 # [BS, H]
            x = _layernorm(ffn + h1, ln2_g, ln2_b)
            if layer == 0:
                first_h = x                     # hidden_states[1] in HF numbering

        last = x                                # last_hidden_state, flattened [BS, H]

        # ------------------------------ pooling ----------------------------------
        if pooling == "cls":
            out = jnp.concatenate([last[b * S:b * S + 1, :] for b in range(B)], axis=0)
        elif pooling == "pooler":
            cls = jnp.concatenate([last[b * S:b * S + 1, :] for b in range(B)], axis=0)
            out = jnp.tanh(jnp.dot(cls.astype(bf16), pooler_w_ref[...],
                                   preferred_element_type=f32) + pooler_b_ref[...])
        elif pooling == "last-avg":
            out = jnp.concatenate(
                [jnp.mean(last[b * S:(b + 1) * S, :], axis=0, keepdims=True)
                 for b in range(B)], axis=0)
        elif pooling == "first-last-avg":
            out = jnp.concatenate(
                [0.5 * (jnp.mean(first_h[b * S:(b + 1) * S, :], axis=0, keepdims=True)
                        + jnp.mean(last[b * S:(b + 1) * S, :], axis=0, keepdims=True))
                 for b in range(B)], axis=0)
        else:
            raise ValueError(pooling)

        out_ref[...] = out.astype(out_ref.dtype)   # one [B, H] store for whole batch

    return kernel


# ------------------------------ host wrapper ----------------------------------
def simcse_forward(params, input_ids, attention_mask, token_type_ids, *, pooling):
    B, S = input_ids.shape
    ids = input_ids.reshape(B * S, 1).astype(jnp.int32)
    tids = token_type_ids.reshape(B * S, 1).astype(jnp.int32)
    mask = attention_mask.astype(jnp.float32)                       # [B, S]

    vmem = pl.BlockSpec(memory_space=pltpu.MemorySpace.VMEM)
    args = [ids, tids, mask,
            params["word_emb"], params["pos_emb"], params["type_emb"],
            params["emb_ln"], params["qkv_w"], params["ao_w"],
            params["i_w"], params["o_w"], params["vec"]]
    if pooling == "pooler":
        args += [params["pooler_w"], params["pooler_b"]]

    # Whole batch in a single invocation (no grid): at these shapes a grid=(B,) was
    # pure per-step pipeline overhead (~1 KB of work per ~0.35 us step).
    # TODO(synk): for large B switch to grid=(cdiv(B, Bblk),) with a (Bblk*S, H)
    # slab per step and dimension_semantics=("parallel",); for scaled-up models
    # stream weights with a layer-indexed "arbitrary" grid axis instead of keeping
    # all layers VMEM-resident.
    out = pl.pallas_call(
        _make_kernel(pooling, B, S),
        out_shape=jax.ShapeDtypeStruct((B, HIDDEN), jnp.float32),
        in_specs=[vmem] * len(args),
        out_specs=pl.BlockSpec(memory_space=pltpu.MemorySpace.VMEM),
    )(*args)
    return out                                                       # [B, H]


# ------------------------------- param init -----------------------------------
def init_params(key):
    keys = iter(jax.random.split(key, 64))

    def w(shape, std=0.02):
        return (std * jax.random.normal(next(keys), shape)).astype(jnp.float32)

    zeros = lambda n: jnp.zeros((n,), jnp.float32)
    ones = lambda n: jnp.ones((n,), jnp.float32)
    row = lambda v: jnp.pad(v, (0, WIDE - v.shape[0]))  # pad small vec to WIDE lanes

    qkv_w, ao_w, i_w, o_w, vec = [], [], [], [], []
    for _ in range(N_LAYERS):
        qkv_w.append(jnp.concatenate(
            [w((HIDDEN, HIDDEN)), w((HIDDEN, HIDDEN)), w((HIDDEN, HIDDEN))], axis=1))
        ao_w.append(w((HIDDEN, HIDDEN)))
        i_w.append(w((HIDDEN, INTERMEDIATE)))
        o_w.append(w((INTERMEDIATE, HIDDEN)))
        vec.append(jnp.stack([
            row(zeros(3 * HIDDEN)),      # qkv bias
            row(zeros(INTERMEDIATE)),    # intermediate bias
            row(zeros(HIDDEN)),          # attn-output bias
            row(ones(HIDDEN)),           # ln1 gamma
            row(zeros(HIDDEN)),          # ln1 beta
            row(zeros(HIDDEN)),          # ffn-output bias
            row(ones(HIDDEN)),           # ln2 gamma
            row(zeros(HIDDEN)),          # ln2 beta
        ]))

    word = w((VOCAB, HIDDEN))
    word_emb = jnp.zeros((WORD_ROWS, HIDDEN), jnp.float32).at[:VOCAB].set(word)
    type_e = w((TYPE_VOCAB, HIDDEN))
    type_emb = jnp.zeros((TYPE_ROWS, HIDDEN), jnp.float32).at[:TYPE_VOCAB].set(type_e)

    return dict(
        word_emb=word_emb,                               # f32 (padded, exact one-hot)
        pos_emb=w((MAX_POS, HIDDEN)),
        type_emb=type_emb,
        emb_ln=jnp.stack([ones(HIDDEN), zeros(HIDDEN)]),
        qkv_w=jnp.stack(qkv_w).astype(jnp.bfloat16),     # bf16 matmul weights
        ao_w=jnp.stack(ao_w).astype(jnp.bfloat16),
        i_w=jnp.stack(i_w).astype(jnp.bfloat16),
        o_w=jnp.stack(o_w).astype(jnp.bfloat16),
        vec=jnp.stack(vec),                              # biases / LN params in f32
        pooler_w=w((HIDDEN, HIDDEN)).astype(jnp.bfloat16),
        pooler_b=zeros(HIDDEN).reshape(1, HIDDEN),
    )


# ----------------------------------- main --------------------------------------
if __name__ == "__main__":
    key = jax.random.PRNGKey(0)
    pkey, ikey = jax.random.split(key)
    params = init_params(pkey)

    B, S = 2, 8
    input_ids = jax.random.randint(ikey, (B, S), 0, VOCAB, dtype=jnp.int32)
    attention_mask = jnp.array([[1, 1, 1, 1, 1, 1, 1, 1],
                                [1, 1, 1, 1, 1, 1, 0, 0]], dtype=jnp.int32)
    token_type_ids = jnp.zeros((B, S), dtype=jnp.int32)

    fwd = jax.jit(simcse_forward, static_argnames=("pooling",))
    for pooling in ["cls", "pooler", "last-avg", "first-last-avg"]:
        out = fwd(params, input_ids, attention_mask, token_type_ids, pooling=pooling)
        out = jax.block_until_ready(out)
        assert out.shape == (B, HIDDEN), (pooling, out.shape)
        assert bool(jnp.all(jnp.isfinite(out))), pooling

    print("KERNEL_OK")
</pallas_src>

<mosaic_0001>
module attributes {stable_mosaic.version = 11 : i64} {
  func.func @kernel(%arg0: memref<16x1xi32, #tpu.memory_space<vmem>>, %arg1: memref<16x1xi32, #tpu.memory_space<vmem>>, %arg2: memref<2x8xf32, #tpu.memory_space<vmem>>, %arg3: memref<32x32xf32, #tpu.memory_space<vmem>>, %arg4: memref<16x32xf32, #tpu.memory_space<vmem>>, %arg5: memref<8x32xf32, #tpu.memory_space<vmem>>, %arg6: memref<2x32xf32, #tpu.memory_space<vmem>>, %arg7: memref<2x32x96xbf16, #tpu.memory_space<vmem>>, %arg8: memref<2x32x32xbf16, #tpu.memory_space<vmem>>, %arg9: memref<2x32x64xbf16, #tpu.memory_space<vmem>>, %arg10: memref<2x64x32xbf16, #tpu.memory_space<vmem>>, %arg11: memref<2x8x96xf32, #tpu.memory_space<vmem>>, %arg12: memref<2x32xf32, #tpu.memory_space<vmem>>) attributes {dimension_semantics = [], scalar_prefetch = 0 : i64, scratch_operands = 0 : i64, tpu.core_type = #tpu.core_type<tc>} {
    %c0 = arith.constant 0 : index
    %c0_0 = arith.constant 0 : index
    %0 = vector.load %arg0[%c0, %c0_0] : memref<16x1xi32, #tpu.memory_space<vmem>>, vector<16x1xi32>
    %c0_1 = arith.constant 0 : index
    %c0_2 = arith.constant 0 : index
    %1 = vector.load %arg1[%c0_1, %c0_2] : memref<16x1xi32, #tpu.memory_space<vmem>>, vector<16x1xi32>
    %2 = tpu.iota {dimensions = array<i32: 1>} : vector<16x32xi32>
    %3 = vector.broadcast %0 : vector<16x1xi32> to vector<16x32xi32>
    %4 = arith.cmpi eq, %3, %2 : vector<16x32xi32>
    %5 = arith.extui %4 : vector<16x32xi1> to vector<16x32xi32>
    %6 = arith.sitofp %5 : vector<16x32xi32> to vector<16x32xf32>
    %7 = tpu.iota {dimensions = array<i32: 1>} : vector<16x8xi32>
    %8 = vector.broadcast %1 : vector<16x1xi32> to vector<16x8xi32>
    %9 = arith.cmpi eq, %8, %7 : vector<16x8xi32>
    %10 = arith.extui %9 : vector<16x8xi1> to vector<16x8xi32>
    %11 = arith.sitofp %10 : vector<16x8xi32> to vector<16x8xf32>
    %c0_3 = arith.constant 0 : index
    %c0_4 = arith.constant 0 : index
    %12 = vector.load %arg3[%c0_3, %c0_4] : memref<32x32xf32, #tpu.memory_space<vmem>>, vector<32x32xf32>
    %cst = arith.constant dense<0.000000e+00> : vector<16x32xf32>
    %13 = tpu.matmul %6, %12, %cst {dimension_numbers = #tpu.dot_dimension_numbers<[1], [0], [0], [1], [0, 0, 1, 1], [], []>} : vector<16x32xf32>, vector<32x32xf32>, vector<16x32xf32> -> vector<16x32xf32>
    %c0_5 = arith.constant 0 : index
    %c0_6 = arith.constant 0 : index
    %14 = vector.load %arg5[%c0_5, %c0_6] : memref<8x32xf32, #tpu.memory_space<vmem>>, vector<8x32xf32>
    %cst_7 = arith.constant dense<0.000000e+00> : vector<16x32xf32>
    %15 = tpu.matmul %11, %14, %cst_7 {dimension_numbers = #tpu.dot_dimension_numbers<[1], [0], [0], [1], [0, 0, 1, 1], [], []>} : vector<16x8xf32>, vector<8x32xf32>, vector<16x32xf32> -> vector<16x32xf32>
    %16 = arith.addf %13, %15 : vector<16x32xf32>
    %c0_8 = arith.constant 0 : index
    %c0_9 = arith.constant 0 : index
    %17 = vector.load %arg4[%c0_8, %c0_9] : memref<16x32xf32, #tpu.memory_space<vmem>>, vector<8x32xf32>
    %18 = tpu.concatenate %17, %17 in 0 : vector<8x32xf32>, vector<8x32xf32> -> vector<16x32xf32>
    %19 = arith.addf %16, %18 : vector<16x32xf32>
    %c0_10 = arith.constant 0 : index
    %c0_11 = arith.constant 0 : index
    %20 = vector.load %arg6[%c0_10, %c0_11] : memref<2x32xf32, #tpu.memory_space<vmem>>, vector<1x32xf32>
    %c1 = arith.constant 1 : index
    %c0_12 = arith.constant 0 : index
    %21 = vector.load %arg6[%c1, %c0_12] : memref<2x32xf32, #tpu.memory_space<vmem>>, vector<1x32xf32>
    %cst_13 = arith.constant dense<0.000000e+00> : vector<16xf32>
    %22 = vector.multi_reduction <add>, %19, %cst_13 [1] : vector<16x32xf32> to vector<16xf32>
    %23 = vector.shape_cast %22 : vector<16xf32> to vector<16x1xf32>
    %cst_14 = arith.constant 3.200000e+01 : f32
    %24 = vector.broadcast %cst_14 : f32 to vector<16x1xf32>
    %25 = arith.divf %23, %24 : vector<16x1xf32>
    %26 = vector.broadcast %25 : vector<16x1xf32> to vector<16x32xf32>
    %27 = arith.subf %19, %26 : vector<16x32xf32>
    %28 = arith.mulf %27, %27 : vector<16x32xf32>
    %cst_15 = arith.constant dense<0.000000e+00> : vector<16xf32>
    %29 = vector.multi_reduction <add>, %28, %cst_15 [1] : vector<16x32xf32> to vector<16xf32>
    %30 = vector.shape_cast %29 : vector<16xf32> to vector<16x1xf32>
    %cst_16 = arith.constant 3.200000e+01 : f32
    %31 = vector.broadcast %cst_16 : f32 to vector<16x1xf32>
    %32 = arith.divf %30, %31 : vector<16x1xf32>
    %33 = vector.broadcast %25 : vector<16x1xf32> to vector<16x32xf32>
    %34 = arith.subf %19, %33 : vector<16x32xf32>
    %cst_17 = arith.constant 9.99999996E-13 : f32
    %35 = vector.broadcast %cst_17 : f32 to vector<16x1xf32>
    %36 = arith.addf %32, %35 : vector<16x1xf32>
    %37 = math.rsqrt %36 : vector<16x1xf32>
    %38 = vector.broadcast %37 : vector<16x1xf32> to vector<16x32xf32>
    %39 = arith.mulf %34, %38 : vector<16x32xf32>
    %40 = vector.broadcast %20 : vector<1x32xf32> to vector<16x32xf32>
    %41 = arith.mulf %39, %40 : vector<16x32xf32>
    %42 = vector.broadcast %21 : vector<1x32xf32> to vector<16x32xf32>
    %43 = arith.addf %41, %42 : vector<16x32xf32>
    %c0_18 = arith.constant 0 : index
    %c0_19 = arith.constant 0 : index
    %44 = vector.load %arg2[%c0_18, %c0_19] : memref<2x8xf32, #tpu.memory_space<vmem>>, vector<1x8xf32>
    %cst_20 = arith.constant 1.000000e+00 : f32
    %45 = vector.broadcast %cst_20 : f32 to vector<1x8xf32>
    %46 = arith.subf %45, %44 : vector<1x8xf32>
    %cst_21 = arith.constant -1.000000e+04 : f32
    %47 = vector.broadcast %cst_21 : f32 to vector<1x8xf32>
    %48 = arith.mulf %46, %47 : vector<1x8xf32>
    %49 = vector.shape_cast %48 : vector<1x8xf32> to vector<1x8xf32>
    %50 = vector.broadcast %49 : vector<1x8xf32> to vector<8x8xf32>
    %c1_22 = arith.constant 1 : index
    %c0_23 = arith.constant 0 : index
    %51 = vector.load %arg2[%c1_22, %c0_23] : memref<2x8xf32, #tpu.memory_space<vmem>>, vector<1x8xf32>
    %cst_24 = arith.constant 1.000000e+00 : f32
    %52 = vector.broadcast %cst_24 : f32 to vector<1x8xf32>
    %53 = arith.subf %52, %51 : vector<1x8xf32>
    %cst_25 = arith.constant -1.000000e+04 : f32
    %54 = vector.broadcast %cst_25 : f32 to vector<1x8xf32>
    %55 = arith.mulf %53, %54 : vector<1x8xf32>
    %56 = vector.shape_cast %55 : vector<1x8xf32> to vector<1x8xf32>
    %57 = vector.broadcast %56 : vector<1x8xf32> to vector<8x8xf32>
    %c0_26 = arith.constant 0 : index
    %c2 = arith.constant 2 : index
    %c0_27 = arith.constant 0 : index
    %58 = vector.load %arg11[%c0_26, %c2, %c0_27] : memref<2x8x96xf32, #tpu.memory_space<vmem>>, vector<1x1x32xf32>
    %59 = vector.shape_cast %58 : vector<1x1x32xf32> to vector<1x32xf32>
    %c0_28 = arith.constant 0 : index
    %c3 = arith.constant 3 : index
    %c0_29 = arith.constant 0 : index
    %60 = vector.load %arg11[%c0_28, %c3, %c0_29] : memref<2x8x96xf32, #tpu.memory_space<vmem>>, vector<1x1x32xf32>
    %61 = vector.shape_cast %60 : vector<1x1x32xf32> to vector<1x32xf32>
    %c0_30 = arith.constant 0 : index
    %c4 = arith.constant 4 : index
    %c0_31 = arith.constant 0 : index
    %62 = vector.load %arg11[%c0_30, %c4, %c0_31] : memref<2x8x96xf32, #tpu.memory_space<vmem>>, vector<1x1x32xf32>
    %63 = vector.shape_cast %62 : vector<1x1x32xf32> to vector<1x32xf32>
    %c0_32 = arith.constant 0 : index
    %c1_33 = arith.constant 1 : index
    %c0_34 = arith.constant 0 : index
    %64 = vector.load %arg11[%c0_32, %c1_33, %c0_34] : memref<2x8x96xf32, #tpu.memory_space<vmem>>, vector<1x1x64xf32>
    %65 = vector.shape_cast %64 : vector<1x1x64xf32> to vector<1x64xf32>
    %c0_35 = arith.constant 0 : index
    %c5 = arith.constant 5 : index
    %c0_36 = arith.constant 0 : index
    %66 = vector.load %arg11[%c0_35, %c5, %c0_36] : memref<2x8x96xf32, #tpu.memory_space<vmem>>, vector<1x1x32xf32>
    %67 = vector.shape_cast %66 : vector<1x1x32xf32> to vector<1x32xf32>
    %c0_37 = arith.constant 0 : index
    %c6 = arith.constant 6 : index
    %c0_38 = arith.constant 0 : index
    %68 = vector.load %arg11[%c0_37, %c6, %c0_38] : memref<2x8x96xf32, #tpu.memory_space<vmem>>, vector<1x1x32xf32>
    %69 = vector.shape_cast %68 : vector<1x1x32xf32> to vector<1x32xf32>
    %c0_39 = arith.constant 0 : index
    %c7 = arith.constant 7 : index
    %c0_40 = arith.constant 0 : index
    %70 = vector.load %arg11[%c0_39, %c7, %c0_40] : memref<2x8x96xf32, #tpu.memory_space<vmem>>, vector<1x1x32xf32>
    %71 = vector.shape_cast %70 : vector<1x1x32xf32> to vector<1x32xf32>
    %72 = arith.truncf %43 : vector<16x32xf32> to vector<16x32xbf16>
    %c0_41 = arith.constant 0 : index
    %c0_42 = arith.constant 0 : index
    %c0_43 = arith.constant 0 : index
    %73 = vector.load %arg7[%c0_41, %c0_42, %c0_43] : memref<2x32x96xbf16, #tpu.memory_space<vmem>>, vector<1x32x8xbf16>
    %74 = vector.shape_cast %73 : vector<1x32x8xbf16> to vector<32x8xbf16>
    %c0_44 = arith.constant 0 : index
    %c0_45 = arith.constant 0 : index
    %c32 = arith.constant 32 : index
    %75 = vector.load %arg7[%c0_44, %c0_45, %c32] : memref<2x32x96xbf16, #tpu.memory_space<vmem>>, vector<1x32x8xbf16>
    %76 = vector.shape_cast %75 : vector<1x32x8xbf16> to vector<32x8xbf16>
    %c0_46 = arith.constant 0 : index
    %c0_47 = arith.constant 0 : index
    %c64 = arith.constant 64 : index
    %77 = vector.load %arg7[%c0_46, %c0_47, %c64] : memref<2x32x96xbf16, #tpu.memory_space<vmem>>, vector<1x32x8xbf16>
    %78 = vector.shape_cast %77 : vector<1x32x8xbf16> to vector<32x8xbf16>
    %c0_48 = arith.constant 0 : index
    %c0_49 = arith.constant 0 : index
    %c0_50 = arith.constant 0 : index
    %79 = vector.load %arg11[%c0_48, %c0_49, %c0_50] : memref<2x8x96xf32, #tpu.memory_space<vmem>>, vector<1x1x8xf32>
    %80 = vector.shape_cast %79 : vector<1x1x8xf32> to vector<1x8xf32>
    %c0_51 = arith.constant 0 : index
    %c0_52 = arith.constant 0 : index
    %c32_53 = arith.constant 32 : index
    %81 = vector.load %arg11[%c0_51, %c0_52, %c32_53] : memref<2x8x96xf32, #tpu.memory_space<vmem>>, vector<1x1x8xf32>
    %82 = vector.shape_cast %81 : vector<1x1x8xf32> to vector<1x8xf32>
    %c0_54 = arith.constant 0 : index
    %c0_55 = arith.constant 0 : index
    %c64_56 = arith.constant 64 : index
    %83 = vector.load %arg11[%c0_54, %c0_55, %c64_56] : memref<2x8x96xf32, #tpu.memory_space<vmem>>, vector<1x1x8xf32>
    %84 = vector.shape_cast %83 : vector<1x1x8xf32> to vector<1x8xf32>
    %c0_57 = arith.constant 0 : index
    %c0_58 = arith.constant 0 : index
    %c0_59 = arith.constant 0 : index
    %85 = vector.load %arg8[%c0_57, %c0_58, %c0_59] : memref<2x32x32xbf16, #tpu.memory_space<vmem>>, vector<1x8x32xbf16>
    %86 = vector.shape_cast %85 : vector<1x8x32xbf16> to vector<8x32xbf16>
    %cst_60 = arith.constant dense<0.000000e+00> : vector<16x8xf32>
    %87 = tpu.matmul %72, %74, %cst_60 {dimension_numbers = #tpu.dot_dimension_numbers<[1], [0], [0], [1], [0, 0, 1, 1], [], []>} : vector<16x32xbf16>, vector<32x8xbf16>, vector<16x8xf32> -> vector<16x8xf32>
    %88 = vector.broadcast %80 : vector<1x8xf32> to vector<16x8xf32>
    %89 = arith.addf %87, %88 : vector<16x8xf32>
    %cst_61 = arith.constant dense<0.000000e+00> : vector<16x8xf32>
    %90 = tpu.matmul %72, %76, %cst_61 {dimension_numbers = #tpu.dot_dimension_numbers<[1], [0], [0], [1], [0, 0, 1, 1], [], []>} : vector<16x32xbf16>, vector<32x8xbf16>, vector<16x8xf32> -> vector<16x8xf32>
    %91 = vector.broadcast %82 : vector<1x8xf32> to vector<16x8xf32>
    %92 = arith.addf %90, %91 : vector<16x8xf32>
    %cst_62 = arith.constant dense<0.000000e+00> : vector<16x8xf32>
    %93 = tpu.matmul %72, %78, %cst_62 {dimension_numbers = #tpu.dot_dimension_numbers<[1], [0], [0], [1], [0, 0, 1, 1], [], []>} : vector<16x32xbf16>, vector<32x8xbf16>, vector<16x8xf32> -> vector<16x8xf32>
    %94 = vector.broadcast %84 : vector<1x8xf32> to vector<16x8xf32>
    %95 = arith.addf %93, %94 : vector<16x8xf32>
    %96 = vector.extract_strided_slice %89 {offsets = [0, 0], sizes = [8, 8], strides = [1, 1]} : vector<16x8xf32> to vector<8x8xf32>
    %97 = vector.extract_strided_slice %92 {offsets = [0, 0], sizes = [8, 8], strides = [1, 1]} : vector<16x8xf32> to vector<8x8xf32>
    %98 = vector.extract_strided_slice %95 {offsets = [0, 0], sizes = [8, 8], strides = [1, 1]} : vector<16x8xf32> to vector<8x8xf32>
    %cst_63 = arith.constant dense<0.000000e+00> : vector<8x8xf32>
    %99 = tpu.matmul %96, %97, %cst_63 {dimension_numbers = #tpu.dot_dimension_numbers<[1], [1], [0], [0], [0, 0, 1, 0], [], []>} : vector<8x8xf32>, vector<8x8xf32>, vector<8x8xf32> -> vector<8x8xf32>
    %cst_64 = arith.constant 0.353553385 : f32
    %100 = vector.broadcast %cst_64 : f32 to vector<8x8xf32>
    %101 = arith.mulf %99, %100 : vector<8x8xf32>
    %102 = arith.addf %101, %50 : vector<8x8xf32>
    %cst_65 = arith.constant dense<0xFF800000> : vector<8xf32>
    %103 = vector.multi_reduction <maximumf>, %102, %cst_65 [1] : vector<8x8xf32> to vector<8xf32>
    %104 = vector.shape_cast %103 : vector<8xf32> to vector<8x1xf32>
    %105 = vector.broadcast %104 : vector<8x1xf32> to vector<8x8xf32>
    %106 = arith.subf %102, %105 : vector<8x8xf32>
    %107 = math.exp %106 : vector<8x8xf32>
    %cst_66 = arith.constant dense<0.000000e+00> : vector<8xf32>
    %108 = vector.multi_reduction <add>, %107, %cst_66 [1] : vector<8x8xf32> to vector<8xf32>
    %109 = vector.shape_cast %108 : vector<8xf32> to vector<8x1xf32>
    %110 = tpu.reciprocal %109 {approx = true} : vector<8x1xf32> -> vector<8x1xf32>
    %111 = vector.broadcast %110 : vector<8x1xf32> to vector<8x8xf32>
    %112 = arith.mulf %107, %111 : vector<8x8xf32>
    %cst_67 = arith.constant dense<0.000000e+00> : vector<8x8xf32>
    %113 = tpu.matmul %112, %98, %cst_67 {dimension_numbers = #tpu.dot_dimension_numbers<[1], [0], [0], [1], [0, 0, 1, 1], [], []>} : vector<8x8xf32>, vector<8x8xf32>, vector<8x8xf32> -> vector<8x8xf32>
    %114 = arith.truncf %113 : vector<8x8xf32> to vector<8x8xbf16>
    %cst_68 = arith.constant dense<0.000000e+00> : vector<8x32xf32>
    %115 = tpu.matmul %114, %86, %cst_68 {dimension_numbers = #tpu.dot_dimension_numbers<[1], [0], [0], [1], [0, 0, 1, 1], [], []>} : vector<8x8xbf16>, vector<8x32xbf16>, vector<8x32xf32> -> vector<8x32xf32>
    %116 = vector.extract_strided_slice %89 {offsets = [8, 0], sizes = [8, 8], strides = [1, 1]} : vector<16x8xf32> to vector<8x8xf32>
    %117 = vector.extract_strided_slice %92 {offsets = [8, 0], sizes = [8, 8], strides = [1, 1]} : vector<16x8xf32> to vector<8x8xf32>
    %118 = vector.extract_strided_slice %95 {offsets = [8, 0], sizes = [8, 8], strides = [1, 1]} : vector<16x8xf32> to vector<8x8xf32>
    %cst_69 = arith.constant dense<0.000000e+00> : vector<8x8xf32>
    %119 = tpu.matmul %116, %117, %cst_69 {dimension_numbers = #tpu.dot_dimension_numbers<[1], [1], [0], [0], [0, 0, 1, 0], [], []>} : vector<8x8xf32>, vector<8x8xf32>, vector<8x8xf32> -> vector<8x8xf32>
    %cst_70 = arith.constant 0.353553385 : f32
    %120 = vector.broadcast %cst_70 : f32 to vector<8x8xf32>
    %121 = arith.mulf %119, %120 : vector<8x8xf32>
    %122 = arith.addf %121, %57 : vector<8x8xf32>
    %cst_71 = arith.constant dense<0xFF800000> : vector<8xf32>
    %123 = vector.multi_reduction <maximumf>, %122, %cst_71 [1] : vector<8x8xf32> to vector<8xf32>
    %124 = vector.shape_cast %123 : vector<8xf32> to vector<8x1xf32>
    %125 = vector.broadcast %124 : vector<8x1xf32> to vector<8x8xf32>
    %126 = arith.subf %122, %125 : vector<8x8xf32>
    %127 = math.exp %126 : vector<8x8xf32>
    %cst_72 = arith.constant dense<0.000000e+00> : vector<8xf32>
    %128 = vector.multi_reduction <add>, %127, %cst_72 [1] : vector<8x8xf32> to vector<8xf32>
    %129 = vector.shape_cast %128 : vector<8xf32> to vector<8x1xf32>
    %130 = tpu.reciprocal %129 {approx = true} : vector<8x1xf32> -> vector<8x1xf32>
    %131 = vector.broadcast %130 : vector<8x1xf32> to vector<8x8xf32>
    %132 = arith.mulf %127, %131 : vector<8x8xf32>
    %cst_73 = arith.constant dense<0.000000e+00> : vector<8x8xf32>
    %133 = tpu.matmul %132, %118, %cst_73 {dimension_numbers = #tpu.dot_dimension_numbers<[1], [0], [0], [1], [0, 0, 1, 1], [], []>} : vector<8x8xf32>, vector<8x8xf32>, vector<8x8xf32> -> vector<8x8xf32>
    %134 = arith.truncf %133 : vector<8x8xf32> to vector<8x8xbf16>
    %cst_74 = arith.constant dense<0.000000e+00> : vector<8x32xf32>
    %135 = tpu.matmul %134, %86, %cst_74 {dimension_numbers = #tpu.dot_dimension_numbers<[1], [0], [0], [1], [0, 0, 1, 1], [], []>} : vector<8x8xbf16>, vector<8x32xbf16>, vector<8x32xf32> -> vector<8x32xf32>
    %c0_75 = arith.constant 0 : index
    %c0_76 = arith.constant 0 : index
    %c8 = arith.constant 8 : index
    %136 = vector.load %arg7[%c0_75, %c0_76, %c8] : memref<2x32x96xbf16, #tpu.memory_space<vmem>>, vector<1x32x8xbf16>
    %137 = vector.shape_cast %136 : vector<1x32x8xbf16> to vector<32x8xbf16>
    %c0_77 = arith.constant 0 : index
    %c0_78 = arith.constant 0 : index
    %c40 = arith.constant 40 : index
    %138 = vector.load %arg7[%c0_77, %c0_78, %c40] : memref<2x32x96xbf16, #tpu.memory_space<vmem>>, vector<1x32x8xbf16>
    %139 = vector.shape_cast %138 : vector<1x32x8xbf16> to vector<32x8xbf16>
    %c0_79 = arith.constant 0 : index
    %c0_80 = arith.constant 0 : index
    %c72 = arith.constant 72 : index
    %140 = vector.load %arg7[%c0_79, %c0_80, %c72] : memref<2x32x96xbf16, #tpu.memory_space<vmem>>, vector<1x32x8xbf16>
    %141 = vector.shape_cast %140 : vector<1x32x8xbf16> to vector<32x8xbf16>
    %c0_81 = arith.constant 0 : index
    %c0_82 = arith.constant 0 : index
    %c8_83 = arith.constant 8 : index
    %142 = vector.load %arg11[%c0_81, %c0_82, %c8_83] : memref<2x8x96xf32, #tpu.memory_space<vmem>>, vector<1x1x8xf32>
    %143 = vector.shape_cast %142 : vector<1x1x8xf32> to vector<1x8xf32>
    %c0_84 = arith.constant 0 : index
    %c0_85 = arith.constant 0 : index
    %c40_86 = arith.constant 40 : index
    %144 = vector.load %arg11[%c0_84, %c0_85, %c40_86] : memref<2x8x96xf32, #tpu.memory_space<vmem>>, vector<1x1x8xf32>
    %145 = vector.shape_cast %144 : vector<1x1x8xf32> to vector<1x8xf32>
    %c0_87 = arith.constant 0 : index
    %c0_88 = arith.constant 0 : index
    %c72_89 = arith.constant 72 : index
    %146 = vector.load %arg11[%c0_87, %c0_88, %c72_89] : memref<2x8x96xf32, #tpu.memory_space<vmem>>, vector<1x1x8xf32>
    %147 = vector.shape_cast %146 : vector<1x1x8xf32> to vector<1x8xf32>
    %c0_90 = arith.constant 0 : index
    %c8_91 = arith.constant 8 : index
    %c0_92 = arith.constant 0 : index
    %148 = vector.load %arg8[%c0_90, %c8_91, %c0_92] : memref<2x32x32xbf16, #tpu.memory_space<vmem>>, vector<1x8x32xbf16>
    %149 = vector.shape_cast %148 : vector<1x8x32xbf16> to vector<8x32xbf16>
    %cst_93 = arith.constant dense<0.000000e+00> : vector<16x8xf32>
    %150 = tpu.matmul %72, %137, %cst_93 {dimension_numbers = #tpu.dot_dimension_numbers<[1], [0], [0], [1], [0, 0, 1, 1], [], []>} : vector<16x32xbf16>, vector<32x8xbf16>, vector<16x8xf32> -> vector<16x8xf32>
    %151 = vector.broadcast %143 : vector<1x8xf32> to vector<16x8xf32>
    %152 = arith.addf %150, %151 : vector<16x8xf32>
    %cst_94 = arith.constant dense<0.000000e+00> : vector<16x8xf32>
    %153 = tpu.matmul %72, %139, %cst_94 {dimension_numbers = #tpu.dot_dimension_numbers<[1], [0], [0], [1], [0, 0, 1, 1], [], []>} : vector<16x32xbf16>, vector<32x8xbf16>, vector<16x8xf32> -> vector<16x8xf32>
    %154 = vector.broadcast %145 : vector<1x8xf32> to vector<16x8xf32>
    %155 = arith.addf %153, %154 : vector<16x8xf32>
    %cst_95 = arith.constant dense<0.000000e+00> : vector<16x8xf32>
    %156 = tpu.matmul %72, %141, %cst_95 {dimension_numbers = #tpu.dot_dimension_numbers<[1], [0], [0], [1], [0, 0, 1, 1], [], []>} : vector<16x32xbf16>, vector<32x8xbf16>, vector<16x8xf32> -> vector<16x8xf32>
    %157 = vector.broadcast %147 : vector<1x8xf32> to vector<16x8xf32>
    %158 = arith.addf %156, %157 : vector<16x8xf32>
    %159 = vector.extract_strided_slice %152 {offsets = [0, 0], sizes = [8, 8], strides = [1, 1]} : vector<16x8xf32> to vector<8x8xf32>
    %160 = vector.extract_strided_slice %155 {offsets = [0, 0], sizes = [8, 8], strides = [1, 1]} : vector<16x8xf32> to vector<8x8xf32>
    %161 = vector.extract_strided_slice %158 {offsets = [0, 0], sizes = [8, 8], strides = [1, 1]} : vector<16x8xf32> to vector<8x8xf32>
    %cst_96 = arith.constant dense<0.000000e+00> : vector<8x8xf32>
    %162 = tpu.matmul %159, %160, %cst_96 {dimension_numbers = #tpu.dot_dimension_numbers<[1], [1], [0], [0], [0, 0, 1, 0], [], []>} : vector<8x8xf32>, vector<8x8xf32>, vector<8x8xf32> -> vector<8x8xf32>
    %cst_97 = arith.constant 0.353553385 : f32
    %163 = vector.broadcast %cst_97 : f32 to vector<8x8xf32>
    %164 = arith.mulf %162, %163 : vector<8x8xf32>
    %165 = arith.addf %164, %50 : vector<8x8xf32>
    %cst_98 = arith.constant dense<0xFF800000> : vector<8xf32>
    %166 = vector.multi_reduction <maximumf>, %165, %cst_98 [1] : vector<8x8xf32> to vector<8xf32>
    %167 = vector.shape_cast %166 : vector<8xf32> to vector<8x1xf32>
    %168 = vector.broadcast %167 : vector<8x1xf32> to vector<8x8xf32>
    %169 = arith.subf %165, %168 : vector<8x8xf32>
    %170 = math.exp %169 : vector<8x8xf32>
    %cst_99 = arith.constant dense<0.000000e+00> : vector<8xf32>
    %171 = vector.multi_reduction <add>, %170, %cst_99 [1] : vector<8x8xf32> to vector<8xf32>
    %172 = vector.shape_cast %171 : vector<8xf32> to vector<8x1xf32>
    %173 = tpu.reciprocal %172 {approx = true} : vector<8x1xf32> -> vector<8x1xf32>
    %174 = vector.broadcast %173 : vector<8x1xf32> to vector<8x8xf32>
    %175 = arith.mulf %170, %174 : vector<8x8xf32>
    %cst_100 = arith.constant dense<0.000000e+00> : vector<8x8xf32>
    %176 = tpu.matmul %175, %161, %cst_100 {dimension_numbers = #tpu.dot_dimension_numbers<[1], [0], [0], [1], [0, 0, 1, 1], [], []>} : vector<8x8xf32>, vector<8x8xf32>, vector<8x8xf32> -> vector<8x8xf32>
    %177 = arith.truncf %176 : vector<8x8xf32> to vector<8x8xbf16>
    %cst_101 = arith.constant dense<0.000000e+00> : vector<8x32xf32>
    %178 = tpu.matmul %177, %149, %cst_101 {dimension_numbers = #tpu.dot_dimension_numbers<[1], [0], [0], [1], [0, 0, 1, 1], [], []>} : vector<8x8xbf16>, vector<8x32xbf16>, vector<8x32xf32> -> vector<8x32xf32>
    %179 = arith.addf %115, %178 : vector<8x32xf32>
    %180 = vector.extract_strided_slice %152 {offsets = [8, 0], sizes = [8, 8], strides = [1, 1]} : vector<16x8xf32> to vector<8x8xf32>
    %181 = vector.extract_strided_slice %155 {offsets = [8, 0], sizes = [8, 8], strides = [1, 1]} : vector<16x8xf32> to vector<8x8xf32>
    %182 = vector.extract_strided_slice %158 {offsets = [8, 0], sizes = [8, 8], strides = [1, 1]} : vector<16x8xf32> to vector<8x8xf32>
    %cst_102 = arith.constant dense<0.000000e+00> : vector<8x8xf32>
    %183 = tpu.matmul %180, %181, %cst_102 {dimension_numbers = #tpu.dot_dimension_numbers<[1], [1], [0], [0], [0, 0, 1, 0], [], []>} : vector<8x8xf32>, vector<8x8xf32>, vector<8x8xf32> -> vector<8x8xf32>
    %cst_103 = arith.constant 0.353553385 : f32
    %184 = vector.broadcast %cst_103 : f32 to vector<8x8xf32>
    %185 = arith.mulf %183, %184 : vector<8x8xf32>
    %186 = arith.addf %185, %57 : vector<8x8xf32>
    %cst_104 = arith.constant dense<0xFF800000> : vector<8xf32>
    %187 = vector.multi_reduction <maximumf>, %186, %cst_104 [1] : vector<8x8xf32> to vector<8xf32>
    %188 = vector.shape_cast %187 : vector<8xf32> to vector<8x1xf32>
    %189 = vector.broadcast %188 : vector<8x1xf32> to vector<8x8xf32>
    %190 = arith.subf %186, %189 : vector<8x8xf32>
    %191 = math.exp %190 : vector<8x8xf32>
    %cst_105 = arith.constant dense<0.000000e+00> : vector<8xf32>
    %192 = vector.multi_reduction <add>, %191, %cst_105 [1] : vector<8x8xf32> to vector<8xf32>
    %193 = vector.shape_cast %192 : vector<8xf32> to vector<8x1xf32>
    %194 = tpu.reciprocal %193 {approx = true} : vector<8x1xf32> -> vector<8x1xf32>
    %195 = vector.broadcast %194 : vector<8x1xf32> to vector<8x8xf32>
    %196 = arith.mulf %191, %195 : vector<8x8xf32>
    %cst_106 = arith.constant dense<0.000000e+00> : vector<8x8xf32>
    %197 = tpu.matmul %196, %182, %cst_106 {dimension_numbers = #tpu.dot_dimension_numbers<[1], [0], [0], [1], [0, 0, 1, 1], [], []>} : vector<8x8xf32>, vector<8x8xf32>, vector<8x8xf32> -> vector<8x8xf32>
    %198 = arith.truncf %197 : vector<8x8xf32> to vector<8x8xbf16>
    %cst_107 = arith.constant dense<0.000000e+00> : vector<8x32xf32>
    %199 = tpu.matmul %198, %149, %cst_107 {dimension_numbers = #tpu.dot_dimension_numbers<[1], [0], [0], [1], [0, 0, 1, 1], [], []>} : vector<8x8xbf16>, vector<8x32xbf16>, vector<8x32xf32> -> vector<8x32xf32>
    %200 = arith.addf %135, %199 : vector<8x32xf32>
    %c0_108 = arith.constant 0 : index
    %c0_109 = arith.constant 0 : index
    %c16 = arith.constant 16 : index
    %201 = vector.load %arg7[%c0_108, %c0_109, %c16] : memref<2x32x96xbf16, #tpu.memory_space<vmem>>, vector<1x32x8xbf16>
    %202 = vector.shape_cast %201 : vector<1x32x8xbf16> to vector<32x8xbf16>
    %c0_110 = arith.constant 0 : index
    %c0_111 = arith.constant 0 : index
    %c48 = arith.constant 48 : index
    %203 = vector.load %arg7[%c0_110, %c0_111, %c48] : memref<2x32x96xbf16, #tpu.memory_space<vmem>>, vector<1x32x8xbf16>
    %204 = vector.shape_cast %203 : vector<1x32x8xbf16> to vector<32x8xbf16>
    %c0_112 = arith.constant 0 : index
    %c0_113 = arith.constant 0 : index
    %c80 = arith.constant 80 : index
    %205 = vector.load %arg7[%c0_112, %c0_113, %c80] : memref<2x32x96xbf16, #tpu.memory_space<vmem>>, vector<1x32x8xbf16>
    %206 = vector.shape_cast %205 : vector<1x32x8xbf16> to vector<32x8xbf16>
    %c0_114 = arith.constant 0 : index
    %c0_115 = arith.constant 0 : index
    %c16_116 = arith.constant 16 : index
    %207 = vector.load %arg11[%c0_114, %c0_115, %c16_116] : memref<2x8x96xf32, #tpu.memory_space<vmem>>, vector<1x1x8xf32>
    %208 = vector.shape_cast %207 : vector<1x1x8xf32> to vector<1x8xf32>
    %c0_117 = arith.constant 0 : index
    %c0_118 = arith.constant 0 : index
    %c48_119 = arith.constant 48 : index
    %209 = vector.load %arg11[%c0_117, %c0_118, %c48_119] : memref<2x8x96xf32, #tpu.memory_space<vmem>>, vector<1x1x8xf32>
    %210 = vector.shape_cast %209 : vector<1x1x8xf32> to vector<1x8xf32>
    %c0_120 = arith.constant 0 : index
    %c0_121 = arith.constant 0 : index
    %c80_122 = arith.constant 80 : index
    %211 = vector.load %arg11[%c0_120, %c0_121, %c80_122] : memref<2x8x96xf32, #tpu.memory_space<vmem>>, vector<1x1x8xf32>
    %212 = vector.shape_cast %211 : vector<1x1x8xf32> to vector<1x8xf32>
    %c0_123 = arith.constant 0 : index
    %c16_124 = arith.constant 16 : index
    %c0_125 = arith.constant 0 : index
    %213 = vector.load %arg8[%c0_123, %c16_124, %c0_125] : memref<2x32x32xbf16, #tpu.memory_space<vmem>>, vector<1x8x32xbf16>
    %214 = vector.shape_cast %213 : vector<1x8x32xbf16> to vector<8x32xbf16>
    %cst_126 = arith.constant dense<0.000000e+00> : vector<16x8xf32>
    %215 = tpu.matmul %72, %202, %cst_126 {dimension_numbers = #tpu.dot_dimension_numbers<[1], [0], [0], [1], [0, 0, 1, 1], [], []>} : vector<16x32xbf16>, vector<32x8xbf16>, vector<16x8xf32> -> vector<16x8xf32>
    %216 = vector.broadcast %208 : vector<1x8xf32> to vector<16x8xf32>
    %217 = arith.addf %215, %216 : vector<16x8xf32>
    %cst_127 = arith.constant dense<0.000000e+00> : vector<16x8xf32>
    %218 = tpu.matmul %72, %204, %cst_127 {dimension_numbers = #tpu.dot_dimension_numbers<[1], [0], [0], [1], [0, 0, 1, 1], [], []>} : vector<16x32xbf16>, vector<32x8xbf16>, vector<16x8xf32> -> vector<16x8xf32>
    %219 = vector.broadcast %210 : vector<1x8xf32> to vector<16x8xf32>
    %220 = arith.addf %218, %219 : vector<16x8xf32>
    %cst_128 = arith.constant dense<0.000000e+00> : vector<16x8xf32>
    %221 = tpu.matmul %72, %206, %cst_128 {dimension_numbers = #tpu.dot_dimension_numbers<[1], [0], [0], [1], [0, 0, 1, 1], [], []>} : vector<16x32xbf16>, vector<32x8xbf16>, vector<16x8xf32> -> vector<16x8xf32>
    %222 = vector.broadcast %212 : vector<1x8xf32> to vector<16x8xf32>
    %223 = arith.addf %221, %222 : vector<16x8xf32>
    %224 = vector.extract_strided_slice %217 {offsets = [0, 0], sizes = [8, 8], strides = [1, 1]} : vector<16x8xf32> to vector<8x8xf32>
    %225 = vector.extract_strided_slice %220 {offsets = [0, 0], sizes = [8, 8], strides = [1, 1]} : vector<16x8xf32> to vector<8x8xf32>
    %226 = vector.extract_strided_slice %223 {offsets = [0, 0], sizes = [8, 8], strides = [1, 1]} : vector<16x8xf32> to vector<8x8xf32>
    %cst_129 = arith.constant dense<0.000000e+00> : vector<8x8xf32>
    %227 = tpu.matmul %224, %225, %cst_129 {dimension_numbers = #tpu.dot_dimension_numbers<[1], [1], [0], [0], [0, 0, 1, 0], [], []>} : vector<8x8xf32>, vector<8x8xf32>, vector<8x8xf32> -> vector<8x8xf32>
    %cst_130 = arith.constant 0.353553385 : f32
    %228 = vector.broadcast %cst_130 : f32 to vector<8x8xf32>
    %229 = arith.mulf %227, %228 : vector<8x8xf32>
    %230 = arith.addf %229, %50 : vector<8x8xf32>
    %cst_131 = arith.constant dense<0xFF800000> : vector<8xf32>
    %231 = vector.multi_reduction <maximumf>, %230, %cst_131 [1] : vector<8x8xf32> to vector<8xf32>
    %232 = vector.shape_cast %231 : vector<8xf32> to vector<8x1xf32>
    %233 = vector.broadcast %232 : vector<8x1xf32> to vector<8x8xf32>
    %234 = arith.subf %230, %233 : vector<8x8xf32>
    %235 = math.exp %234 : vector<8x8xf32>
    %cst_132 = arith.constant dense<0.000000e+00> : vector<8xf32>
    %236 = vector.multi_reduction <add>, %235, %cst_132 [1] : vector<8x8xf32> to vector<8xf32>
    %237 = vector.shape_cast %236 : vector<8xf32> to vector<8x1xf32>
    %238 = tpu.reciprocal %237 {approx = true} : vector<8x1xf32> -> vector<8x1xf32>
    %239 = vector.broadcast %238 : vector<8x1xf32> to vector<8x8xf32>
    %240 = arith.mulf %235, %239 : vector<8x8xf32>
    %cst_133 = arith.constant dense<0.000000e+00> : vector<8x8xf32>
    %241 = tpu.matmul %240, %226, %cst_133 {dimension_numbers = #tpu.dot_dimension_numbers<[1], [0], [0], [1], [0, 0, 1, 1], [], []>} : vector<8x8xf32>, vector<8x8xf32>, vector<8x8xf32> -> vector<8x8xf32>
    %242 = arith.truncf %241 : vector<8x8xf32> to vector<8x8xbf16>
    %cst_134 = arith.constant dense<0.000000e+00> : vector<8x32xf32>
    %243 = tpu.matmul %242, %214, %cst_134 {dimension_numbers = #tpu.dot_dimension_numbers<[1], [0], [0], [1], [0, 0, 1, 1], [], []>} : vector<8x8xbf16>, vector<8x32xbf16>, vector<8x32xf32> -> vector<8x32xf32>
    %244 = arith.addf %179, %243 : vector<8x32xf32>
    %245 = vector.extract_strided_slice %217 {offsets = [8, 0], sizes = [8, 8], strides = [1, 1]} : vector<16x8xf32> to vector<8x8xf32>
    %246 = vector.extract_strided_slice %220 {offsets = [8, 0], sizes = [8, 8], strides = [1, 1]} : vector<16x8xf32> to vector<8x8xf32>
    %247 = vector.extract_strided_slice %223 {offsets = [8, 0], sizes = [8, 8], strides = [1, 1]} : vector<16x8xf32> to vector<8x8xf32>
    %cst_135 = arith.constant dense<0.000000e+00> : vector<8x8xf32>
    %248 = tpu.matmul %245, %246, %cst_135 {dimension_numbers = #tpu.dot_dimension_numbers<[1], [1], [0], [0], [0, 0, 1, 0], [], []>} : vector<8x8xf32>, vector<8x8xf32>, vector<8x8xf32> -> vector<8x8xf32>
    %cst_136 = arith.constant 0.353553385 : f32
    %249 = vector.broadcast %cst_136 : f32 to vector<8x8xf32>
    %250 = arith.mulf %248, %249 : vector<8x8xf32>
    %251 = arith.addf %250, %57 : vector<8x8xf32>
    %cst_137 = arith.constant dense<0xFF800000> : vector<8xf32>
    %252 = vector.multi_reduction <maximumf>, %251, %cst_137 [1] : vector<8x8xf32> to vector<8xf32>
    %253 = vector.shape_cast %252 : vector<8xf32> to vector<8x1xf32>
    %254 = vector.broadcast %253 : vector<8x1xf32> to vector<8x8xf32>
    %255 = arith.subf %251, %254 : vector<8x8xf32>
    %256 = math.exp %255 : vector<8x8xf32>
    %cst_138 = arith.constant dense<0.000000e+00> : vector<8xf32>
    %257 = vector.multi_reduction <add>, %256, %cst_138 [1] : vector<8x8xf32> to vector<8xf32>
    %258 = vector.shape_cast %257 : vector<8xf32> to vector<8x1xf32>
    %259 = tpu.reciprocal %258 {approx = true} : vector<8x1xf32> -> vector<8x1xf32>
    %260 = vector.broadcast %259 : vector<8x1xf32> to vector<8x8xf32>
    %261 = arith.mulf %256, %260 : vector<8x8xf32>
    %cst_139 = arith.constant dense<0.000000e+00> : vector<8x8xf32>
    %262 = tpu.matmul %261, %247, %cst_139 {dimension_numbers = #tpu.dot_dimension_numbers<[1], [0], [0], [1], [0, 0, 1, 1], [], []>} : vector<8x8xf32>, vector<8x8xf32>, vector<8x8xf32> -> vector<8x8xf32>
    %263 = arith.truncf %262 : vector<8x8xf32> to vector<8x8xbf16>
    %cst_140 = arith.constant dense<0.000000e+00> : vector<8x32xf32>
    %264 = tpu.matmul %263, %214, %cst_140 {dimension_numbers = #tpu.dot_dimension_numbers<[1], [0], [0], [1], [0, 0, 1, 1], [], []>} : vector<8x8xbf16>, vector<8x32xbf16>, vector<8x32xf32> -> vector<8x32xf32>
    %265 = arith.addf %200, %264 : vector<8x32xf32>
    %c0_141 = arith.constant 0 : index
    %c0_142 = arith.constant 0 : index
    %c24 = arith.constant 24 : index
    %266 = vector.load %arg7[%c0_141, %c0_142, %c24] : memref<2x32x96xbf16, #tpu.memory_space<vmem>>, vector<1x32x8xbf16>
    %267 = vector.shape_cast %266 : vector<1x32x8xbf16> to vector<32x8xbf16>
    %c0_143 = arith.constant 0 : index
    %c0_144 = arith.constant 0 : index
    %c56 = arith.constant 56 : index
    %268 = vector.load %arg7[%c0_143, %c0_144, %c56] : memref<2x32x96xbf16, #tpu.memory_space<vmem>>, vector<1x32x8xbf16>
    %269 = vector.shape_cast %268 : vector<1x32x8xbf16> to vector<32x8xbf16>
    %c0_145 = arith.constant 0 : index
    %c0_146 = arith.constant 0 : index
    %c88 = arith.constant 88 : index
    %270 = vector.load %arg7[%c0_145, %c0_146, %c88] : memref<2x32x96xbf16, #tpu.memory_space<vmem>>, vector<1x32x8xbf16>
    %271 = vector.shape_cast %270 : vector<1x32x8xbf16> to vector<32x8xbf16>
    %c0_147 = arith.constant 0 : index
    %c0_148 = arith.constant 0 : index
    %c24_149 = arith.constant 24 : index
    %272 = vector.load %arg11[%c0_147, %c0_148, %c24_149] : memref<2x8x96xf32, #tpu.memory_space<vmem>>, vector<1x1x8xf32>
    %273 = vector.shape_cast %272 : vector<1x1x8xf32> to vector<1x8xf32>
    %c0_150 = arith.constant 0 : index
    %c0_151 = arith.constant 0 : index
    %c56_152 = arith.constant 56 : index
    %274 = vector.load %arg11[%c0_150, %c0_151, %c56_152] : memref<2x8x96xf32, #tpu.memory_space<vmem>>, vector<1x1x8xf32>
    %275 = vector.shape_cast %274 : vector<1x1x8xf32> to vector<1x8xf32>
    %c0_153 = arith.constant 0 : index
    %c0_154 = arith.constant 0 : index
    %c88_155 = arith.constant 88 : index
    %276 = vector.load %arg11[%c0_153, %c0_154, %c88_155] : memref<2x8x96xf32, #tpu.memory_space<vmem>>, vector<1x1x8xf32>
    %277 = vector.shape_cast %276 : vector<1x1x8xf32> to vector<1x8xf32>
    %c0_156 = arith.constant 0 : index
    %c24_157 = arith.constant 24 : index
    %c0_158 = arith.constant 0 : index
    %278 = vector.load %arg8[%c0_156, %c24_157, %c0_158] : memref<2x32x32xbf16, #tpu.memory_space<vmem>>, vector<1x8x32xbf16>
    %279 = vector.shape_cast %278 : vector<1x8x32xbf16> to vector<8x32xbf16>
    %cst_159 = arith.constant dense<0.000000e+00> : vector<16x8xf32>
    %280 = tpu.matmul %72, %267, %cst_159 {dimension_numbers = #tpu.dot_dimension_numbers<[1], [0], [0], [1], [0, 0, 1, 1], [], []>} : vector<16x32xbf16>, vector<32x8xbf16>, vector<16x8xf32> -> vector<16x8xf32>
    %281 = vector.broadcast %273 : vector<1x8xf32> to vector<16x8xf32>
    %282 = arith.addf %280, %281 : vector<16x8xf32>
    %cst_160 = arith.constant dense<0.000000e+00> : vector<16x8xf32>
    %283 = tpu.matmul %72, %269, %cst_160 {dimension_numbers = #tpu.dot_dimension_numbers<[1], [0], [0], [1], [0, 0, 1, 1], [], []>} : vector<16x32xbf16>, vector<32x8xbf16>, vector<16x8xf32> -> vector<16x8xf32>
    %284 = vector.broadcast %275 : vector<1x8xf32> to vector<16x8xf32>
    %285 = arith.addf %283, %284 : vector<16x8xf32>
    %cst_161 = arith.constant dense<0.000000e+00> : vector<16x8xf32>
    %286 = tpu.matmul %72, %271, %cst_161 {dimension_numbers = #tpu.dot_dimension_numbers<[1], [0], [0], [1], [0, 0, 1, 1], [], []>} : vector<16x32xbf16>, vector<32x8xbf16>, vector<16x8xf32> -> vector<16x8xf32>
    %287 = vector.broadcast %277 : vector<1x8xf32> to vector<16x8xf32>
    %288 = arith.addf %286, %287 : vector<16x8xf32>
    %289 = vector.extract_strided_slice %282 {offsets = [0, 0], sizes = [8, 8], strides = [1, 1]} : vector<16x8xf32> to vector<8x8xf32>
    %290 = vector.extract_strided_slice %285 {offsets = [0, 0], sizes = [8, 8], strides = [1, 1]} : vector<16x8xf32> to vector<8x8xf32>
    %291 = vector.extract_strided_slice %288 {offsets = [0, 0], sizes = [8, 8], strides = [1, 1]} : vector<16x8xf32> to vector<8x8xf32>
    %cst_162 = arith.constant dense<0.000000e+00> : vector<8x8xf32>
    %292 = tpu.matmul %289, %290, %cst_162 {dimension_numbers = #tpu.dot_dimension_numbers<[1], [1], [0], [0], [0, 0, 1, 0], [], []>} : vector<8x8xf32>, vector<8x8xf32>, vector<8x8xf32> -> vector<8x8xf32>
    %cst_163 = arith.constant 0.353553385 : f32
    %293 = vector.broadcast %cst_163 : f32 to vector<8x8xf32>
    %294 = arith.mulf %292, %293 : vector<8x8xf32>
    %295 = arith.addf %294, %50 : vector<8x8xf32>
    %cst_164 = arith.constant dense<0xFF800000> : vector<8xf32>
    %296 = vector.multi_reduction <maximumf>, %295, %cst_164 [1] : vector<8x8xf32> to vector<8xf32>
    %297 = vector.shape_cast %296 : vector<8xf32> to vector<8x1xf32>
    %298 = vector.broadcast %297 : vector<8x1xf32> to vector<8x8xf32>
    %299 = arith.subf %295, %298 : vector<8x8xf32>
    %300 = math.exp %299 : vector<8x8xf32>
    %cst_165 = arith.constant dense<0.000000e+00> : vector<8xf32>
    %301 = vector.multi_reduction <add>, %300, %cst_165 [1] : vector<8x8xf32> to vector<8xf32>
    %302 = vector.shape_cast %301 : vector<8xf32> to vector<8x1xf32>
    %303 = tpu.reciprocal %302 {approx = true} : vector<8x1xf32> -> vector<8x1xf32>
    %304 = vector.broadcast %303 : vector<8x1xf32> to vector<8x8xf32>
    %305 = arith.mulf %300, %304 : vector<8x8xf32>
    %cst_166 = arith.constant dense<0.000000e+00> : vector<8x8xf32>
    %306 = tpu.matmul %305, %291, %cst_166 {dimension_numbers = #tpu.dot_dimension_numbers<[1], [0], [0], [1], [0, 0, 1, 1], [], []>} : vector<8x8xf32>, vector<8x8xf32>, vector<8x8xf32> -> vector<8x8xf32>
    %307 = arith.truncf %306 : vector<8x8xf32> to vector<8x8xbf16>
    %cst_167 = arith.constant dense<0.000000e+00> : vector<8x32xf32>
    %308 = tpu.matmul %307, %279, %cst_167 {dimension_numbers = #tpu.dot_dimension_numbers<[1], [0], [0], [1], [0, 0, 1, 1], [], []>} : vector<8x8xbf16>, vector<8x32xbf16>, vector<8x32xf32> -> vector<8x32xf32>
    %309 = arith.addf %244, %308 : vector<8x32xf32>
    %310 = vector.extract_strided_slice %282 {offsets = [8, 0], sizes = [8, 8], strides = [1, 1]} : vector<16x8xf32> to vector<8x8xf32>
    %311 = vector.extract_strided_slice %285 {offsets = [8, 0], sizes = [8, 8], strides = [1, 1]} : vector<16x8xf32> to vector<8x8xf32>
    %312 = vector.extract_strided_slice %288 {offsets = [8, 0], sizes = [8, 8], strides = [1, 1]} : vector<16x8xf32> to vector<8x8xf32>
    %cst_168 = arith.constant dense<0.000000e+00> : vector<8x8xf32>
    %313 = tpu.matmul %310, %311, %cst_168 {dimension_numbers = #tpu.dot_dimension_numbers<[1], [1], [0], [0], [0, 0, 1, 0], [], []>} : vector<8x8xf32>, vector<8x8xf32>, vector<8x8xf32> -> vector<8x8xf32>
    %cst_169 = arith.constant 0.353553385 : f32
    %314 = vector.broadcast %cst_169 : f32 to vector<8x8xf32>
    %315 = arith.mulf %313, %314 : vector<8x8xf32>
    %316 = arith.addf %315, %57 : vector<8x8xf32>
    %cst_170 = arith.constant dense<0xFF800000> : vector<8xf32>
    %317 = vector.multi_reduction <maximumf>, %316, %cst_170 [1] : vector<8x8xf32> to vector<8xf32>
    %318 = vector.shape_cast %317 : vector<8xf32> to vector<8x1xf32>
    %319 = vector.broadcast %318 : vector<8x1xf32> to vector<8x8xf32>
    %320 = arith.subf %316, %319 : vector<8x8xf32>
    %321 = math.exp %320 : vector<8x8xf32>
    %cst_171 = arith.constant dense<0.000000e+00> : vector<8xf32>
    %322 = vector.multi_reduction <add>, %321, %cst_171 [1] : vector<8x8xf32> to vector<8xf32>
    %323 = vector.shape_cast %322 : vector<8xf32> to vector<8x1xf32>
    %324 = tpu.reciprocal %323 {approx = true} : vector<8x1xf32> -> vector<8x1xf32>
    %325 = vector.broadcast %324 : vector<8x1xf32> to vector<8x8xf32>
    %326 = arith.mulf %321, %325 : vector<8x8xf32>
    %cst_172 = arith.constant dense<0.000000e+00> : vector<8x8xf32>
    %327 = tpu.matmul %326, %312, %cst_172 {dimension_numbers = #tpu.dot_dimension_numbers<[1], [0], [0], [1], [0, 0, 1, 1], [], []>} : vector<8x8xf32>, vector<8x8xf32>, vector<8x8xf32> -> vector<8x8xf32>
    %328 = arith.truncf %327 : vector<8x8xf32> to vector<8x8xbf16>
    %cst_173 = arith.constant dense<0.000000e+00> : vector<8x32xf32>
    %329 = tpu.matmul %328, %279, %cst_173 {dimension_numbers = #tpu.dot_dimension_numbers<[1], [0], [0], [1], [0, 0, 1, 1], [], []>} : vector<8x8xbf16>, vector<8x32xbf16>, vector<8x32xf32> -> vector<8x32xf32>
    %330 = arith.addf %265, %329 : vector<8x32xf32>
    %331 = tpu.concatenate %309, %330 in 0 : vector<8x32xf32>, vector<8x32xf32> -> vector<16x32xf32>
    %332 = vector.broadcast %59 : vector<1x32xf32> to vector<16x32xf32>
    %333 = arith.addf %331, %332 : vector<16x32xf32>
    %334 = arith.addf %333, %43 : vector<16x32xf32>
    %cst_174 = arith.constant dense<0.000000e+00> : vector<16xf32>
    %335 = vector.multi_reduction <add>, %334, %cst_174 [1] : vector<16x32xf32> to vector<16xf32>
    %336 = vector.shape_cast %335 : vector<16xf32> to vector<16x1xf32>
    %cst_175 = arith.constant 3.200000e+01 : f32
    %337 = vector.broadcast %cst_175 : f32 to vector<16x1xf32>
    %338 = arith.divf %336, %337 : vector<16x1xf32>
    %339 = vector.broadcast %338 : vector<16x1xf32> to vector<16x32xf32>
    %340 = arith.subf %334, %339 : vector<16x32xf32>
    %341 = arith.mulf %340, %340 : vector<16x32xf32>
    %cst_176 = arith.constant dense<0.000000e+00> : vector<16xf32>
    %342 = vector.multi_reduction <add>, %341, %cst_176 [1] : vector<16x32xf32> to vector<16xf32>
    %343 = vector.shape_cast %342 : vector<16xf32> to vector<16x1xf32>
    %cst_177 = arith.constant 3.200000e+01 : f32
    %344 = vector.broadcast %cst_177 : f32 to vector<16x1xf32>
    %345 = arith.divf %343, %344 : vector<16x1xf32>
    %346 = vector.broadcast %338 : vector<16x1xf32> to vector<16x32xf32>
    %347 = arith.subf %334, %346 : vector<16x32xf32>
    %cst_178 = arith.constant 9.99999996E-13 : f32
    %348 = vector.broadcast %cst_178 : f32 to vector<16x1xf32>
    %349 = arith.addf %345, %348 : vector<16x1xf32>
    %350 = math.rsqrt %349 : vector<16x1xf32>
    %351 = vector.broadcast %350 : vector<16x1xf32> to vector<16x32xf32>
    %352 = arith.mulf %347, %351 : vector<16x32xf32>
    %353 = vector.broadcast %61 : vector<1x32xf32> to vector<16x32xf32>
    %354 = arith.mulf %352, %353 : vector<16x32xf32>
    %355 = vector.broadcast %63 : vector<1x32xf32> to vector<16x32xf32>
    %356 = arith.addf %354, %355 : vector<16x32xf32>
    %357 = arith.truncf %356 : vector<16x32xf32> to vector<16x32xbf16>
    %c0_179 = arith.constant 0 : index
    %c0_180 = arith.constant 0 : index
    %c0_181 = arith.constant 0 : index
    %358 = vector.load %arg9[%c0_179, %c0_180, %c0_181] : memref<2x32x64xbf16, #tpu.memory_space<vmem>>, vector<1x32x64xbf16>
    %359 = vector.shape_cast %358 : vector<1x32x64xbf16> to vector<32x64xbf16>
    %cst_182 = arith.constant dense<0.000000e+00> : vector<16x64xf32>
    %360 = tpu.matmul %357, %359, %cst_182 {dimension_numbers = #tpu.dot_dimension_numbers<[1], [0], [0], [1], [0, 0, 1, 1], [], []>} : vector<16x32xbf16>, vector<32x64xbf16>, vector<16x64xf32> -> vector<16x64xf32>
    %361 = vector.broadcast %65 : vector<1x64xf32> to vector<16x64xf32>
    %362 = arith.addf %360, %361 : vector<16x64xf32>
    %363 = arith.mulf %362, %362 : vector<16x64xf32>
    %364 = arith.mulf %362, %363 : vector<16x64xf32>
    %cst_183 = arith.constant 4.471500e-02 : f32
    %365 = vector.broadcast %cst_183 : f32 to vector<16x64xf32>
    %366 = arith.mulf %365, %364 : vector<16x64xf32>
    %367 = arith.addf %362, %366 : vector<16x64xf32>
    %cst_184 = arith.constant 0.797884583 : f32
    %368 = vector.broadcast %cst_184 : f32 to vector<16x64xf32>
    %369 = arith.mulf %368, %367 : vector<16x64xf32>
    %370 = math.tanh %369 : vector<16x64xf32>
    %cst_185 = arith.constant 1.000000e+00 : f32
    %371 = vector.broadcast %cst_185 : f32 to vector<16x64xf32>
    %372 = arith.addf %371, %370 : vector<16x64xf32>
    %cst_186 = arith.constant 5.000000e-01 : f32
    %373 = vector.broadcast %cst_186 : f32 to vector<16x64xf32>
    %374 = arith.mulf %373, %372 : vector<16x64xf32>
    %375 = arith.mulf %362, %374 : vector<16x64xf32>
    %376 = arith.truncf %375 : vector<16x64xf32> to vector<16x64xbf16>
    %c0_187 = arith.constant 0 : index
    %c0_188 = arith.constant 0 : index
    %c0_189 = arith.constant 0 : index
    %377 = vector.load %arg10[%c0_187, %c0_188, %c0_189] : memref<2x64x32xbf16, #tpu.memory_space<vmem>>, vector<1x64x32xbf16>
    %378 = vector.shape_cast %377 : vector<1x64x32xbf16> to vector<64x32xbf16>
    %cst_190 = arith.constant dense<0.000000e+00> : vector<16x32xf32>
    %379 = tpu.matmul %376, %378, %cst_190 {dimension_numbers = #tpu.dot_dimension_numbers<[1], [0], [0], [1], [0, 0, 1, 1], [], []>} : vector<16x64xbf16>, vector<64x32xbf16>, vector<16x32xf32> -> vector<16x32xf32>
    %380 = vector.broadcast %67 : vector<1x32xf32> to vector<16x32xf32>
    %381 = arith.addf %379, %380 : vector<16x32xf32>
    %382 = arith.addf %381, %356 : vector<16x32xf32>
    %cst_191 = arith.constant dense<0.000000e+00> : vector<16xf32>
    %383 = vector.multi_reduction <add>, %382, %cst_191 [1] : vector<16x32xf32> to vector<16xf32>
    %384 = vector.shape_cast %383 : vector<16xf32> to vector<16x1xf32>
    %cst_192 = arith.constant 3.200000e+01 : f32
    %385 = vector.broadcast %cst_192 : f32 to vector<16x1xf32>
    %386 = arith.divf %384, %385 : vector<16x1xf32>
    %387 = vector.broadcast %386 : vector<16x1xf32> to vector<16x32xf32>
    %388 = arith.subf %382, %387 : vector<16x32xf32>
    %389 = arith.mulf %388, %388 : vector<16x32xf32>
    %cst_193 = arith.constant dense<0.000000e+00> : vector<16xf32>
    %390 = vector.multi_reduction <add>, %389, %cst_193 [1] : vector<16x32xf32> to vector<16xf32>
    %391 = vector.shape_cast %390 : vector<16xf32> to vector<16x1xf32>
    %cst_194 = arith.constant 3.200000e+01 : f32
    %392 = vector.broadcast %cst_194 : f32 to vector<16x1xf32>
    %393 = arith.divf %391, %392 : vector<16x1xf32>
    %394 = vector.broadcast %386 : vector<16x1xf32> to vector<16x32xf32>
    %395 = arith.subf %382, %394 : vector<16x32xf32>
    %cst_195 = arith.constant 9.99999996E-13 : f32
    %396 = vector.broadcast %cst_195 : f32 to vector<16x1xf32>
    %397 = arith.addf %393, %396 : vector<16x1xf32>
    %398 = math.rsqrt %397 : vector<16x1xf32>
    %399 = vector.broadcast %398 : vector<16x1xf32> to vector<16x32xf32>
    %400 = arith.mulf %395, %399 : vector<16x32xf32>
    %401 = vector.broadcast %69 : vector<1x32xf32> to vector<16x32xf32>
    %402 = arith.mulf %400, %401 : vector<16x32xf32>
    %403 = vector.broadcast %71 : vector<1x32xf32> to vector<16x32xf32>
    %404 = arith.addf %402, %403 : vector<16x32xf32>
    %c1_196 = arith.constant 1 : index
    %c2_197 = arith.constant 2 : index
    %c0_198 = arith.constant 0 : index
    %405 = vector.load %arg11[%c1_196, %c2_197, %c0_198] : memref<2x8x96xf32, #tpu.memory_space<vmem>>, vector<1x1x32xf32>
    %406 = vector.shape_cast %405 : vector<1x1x32xf32> to vector<1x32xf32>
    %c1_199 = arith.constant 1 : index
    %c3_200 = arith.constant 3 : index
    %c0_201 = arith.constant 0 : index
    %407 = vector.load %arg11[%c1_199, %c3_200, %c0_201] : memref<2x8x96xf32, #tpu.memory_space<vmem>>, vector<1x1x32xf32>
    %408 = vector.shape_cast %407 : vector<1x1x32xf32> to vector<1x32xf32>
    %c1_202 = arith.constant 1 : index
    %c4_203 = arith.constant 4 : index
    %c0_204 = arith.constant 0 : index
    %409 = vector.load %arg11[%c1_202, %c4_203, %c0_204] : memref<2x8x96xf32, #tpu.memory_space<vmem>>, vector<1x1x32xf32>
    %410 = vector.shape_cast %409 : vector<1x1x32xf32> to vector<1x32xf32>
    %c1_205 = arith.constant 1 : index
    %c1_206 = arith.constant 1 : index
    %c0_207 = arith.constant 0 : index
    %411 = vector.load %arg11[%c1_205, %c1_206, %c0_207] : memref<2x8x96xf32, #tpu.memory_space<vmem>>, vector<1x1x64xf32>
    %412 = vector.shape_cast %411 : vector<1x1x64xf32> to vector<1x64xf32>
    %c1_208 = arith.constant 1 : index
    %c5_209 = arith.constant 5 : index
    %c0_210 = arith.constant 0 : index
    %413 = vector.load %arg11[%c1_208, %c5_209, %c0_210] : memref<2x8x96xf32, #tpu.memory_space<vmem>>, vector<1x1x32xf32>
    %414 = vector.shape_cast %413 : vector<1x1x32xf32> to vector<1x32xf32>
    %c1_211 = arith.constant 1 : index
    %c6_212 = arith.constant 6 : index
    %c0_213 = arith.constant 0 : index
    %415 = vector.load %arg11[%c1_211, %c6_212, %c0_213] : memref<2x8x96xf32, #tpu.memory_space<vmem>>, vector<1x1x32xf32>
    %416 = vector.shape_cast %415 : vector<1x1x32xf32> to vector<1x32xf32>
    %c1_214 = arith.constant 1 : index
    %c7_215 = arith.constant 7 : index
    %c0_216 = arith.constant 0 : index
    %417 = vector.load %arg11[%c1_214, %c7_215, %c0_216] : memref<2x8x96xf32, #tpu.memory_space<vmem>>, vector<1x1x32xf32>
    %418 = vector.shape_cast %417 : vector<1x1x32xf32> to vector<1x32xf32>
    %419 = arith.truncf %404 : vector<16x32xf32> to vector<16x32xbf16>
    %c1_217 = arith.constant 1 : index
    %c0_218 = arith.constant 0 : index
    %c0_219 = arith.constant 0 : index
    %420 = vector.load %arg7[%c1_217, %c0_218, %c0_219] : memref<2x32x96xbf16, #tpu.memory_space<vmem>>, vector<1x32x8xbf16>
    %421 = vector.shape_cast %420 : vector<1x32x8xbf16> to vector<32x8xbf16>
    %c1_220 = arith.constant 1 : index
    %c0_221 = arith.constant 0 : index
    %c32_222 = arith.constant 32 : index
    %422 = vector.load %arg7[%c1_220, %c0_221, %c32_222] : memref<2x32x96xbf16, #tpu.memory_space<vmem>>, vector<1x32x8xbf16>
    %423 = vector.shape_cast %422 : vector<1x32x8xbf16> to vector<32x8xbf16>
    %c1_223 = arith.constant 1 : index
    %c0_224 = arith.constant 0 : index
    %c64_225 = arith.constant 64 : index
    %424 = vector.load %arg7[%c1_223, %c0_224, %c64_225] : memref<2x32x96xbf16, #tpu.memory_space<vmem>>, vector<1x32x8xbf16>
    %425 = vector.shape_cast %424 : vector<1x32x8xbf16> to vector<32x8xbf16>
    %c1_226 = arith.constant 1 : index
    %c0_227 = arith.constant 0 : index
    %c0_228 = arith.constant 0 : index
    %426 = vector.load %arg11[%c1_226, %c0_227, %c0_228] : memref<2x8x96xf32, #tpu.memory_space<vmem>>, vector<1x1x8xf32>
    %427 = vector.shape_cast %426 : vector<1x1x8xf32> to vector<1x8xf32>
    %c1_229 = arith.constant 1 : index
    %c0_230 = arith.constant 0 : index
    %c32_231 = arith.constant 32 : index
    %428 = vector.load %arg11[%c1_229, %c0_230, %c32_231] : memref<2x8x96xf32, #tpu.memory_space<vmem>>, vector<1x1x8xf32>
    %429 = vector.shape_cast %428 : vector<1x1x8xf32> to vector<1x8xf32>
    %c1_232 = arith.constant 1 : index
    %c0_233 = arith.constant 0 : index
    %c64_234 = arith.constant 64 : index
    %430 = vector.load %arg11[%c1_232, %c0_233, %c64_234] : memref<2x8x96xf32, #tpu.memory_space<vmem>>, vector<1x1x8xf32>
    %431 = vector.shape_cast %430 : vector<1x1x8xf32> to vector<1x8xf32>
    %c1_235 = arith.constant 1 : index
    %c0_236 = arith.constant 0 : index
    %c0_237 = arith.constant 0 : index
    %432 = vector.load %arg8[%c1_235, %c0_236, %c0_237] : memref<2x32x32xbf16, #tpu.memory_space<vmem>>, vector<1x8x32xbf16>
    %433 = vector.shape_cast %432 : vector<1x8x32xbf16> to vector<8x32xbf16>
    %cst_238 = arith.constant dense<0.000000e+00> : vector<16x8xf32>
    %434 = tpu.matmul %419, %421, %cst_238 {dimension_numbers = #tpu.dot_dimension_numbers<[1], [0], [0], [1], [0, 0, 1, 1], [], []>} : vector<16x32xbf16>, vector<32x8xbf16>, vector<16x8xf32> -> vector<16x8xf32>
    %435 = vector.broadcast %427 : vector<1x8xf32> to vector<16x8xf32>
    %436 = arith.addf %434, %435 : vector<16x8xf32>
    %cst_239 = arith.constant dense<0.000000e+00> : vector<16x8xf32>
    %437 = tpu.matmul %419, %423, %cst_239 {dimension_numbers = #tpu.dot_dimension_numbers<[1], [0], [0], [1], [0, 0, 1, 1], [], []>} : vector<16x32xbf16>, vector<32x8xbf16>, vector<16x8xf32> -> vector<16x8xf32>
    %438 = vector.broadcast %429 : vector<1x8xf32> to vector<16x8xf32>
    %439 = arith.addf %437, %438 : vector<16x8xf32>
    %cst_240 = arith.constant dense<0.000000e+00> : vector<16x8xf32>
    %440 = tpu.matmul %419, %425, %cst_240 {dimension_numbers = #tpu.dot_dimension_numbers<[1], [0], [0], [1], [0, 0, 1, 1], [], []>} : vector<16x32xbf16>, vector<32x8xbf16>, vector<16x8xf32> -> vector<16x8xf32>
    %441 = vector.broadcast %431 : vector<1x8xf32> to vector<16x8xf32>
    %442 = arith.addf %440, %441 : vector<16x8xf32>
    %443 = vector.extract_strided_slice %436 {offsets = [0, 0], sizes = [8, 8], strides = [1, 1]} : vector<16x8xf32> to vector<8x8xf32>
    %444 = vector.extract_strided_slice %439 {offsets = [0, 0], sizes = [8, 8], strides = [1, 1]} : vector<16x8xf32> to vector<8x8xf32>
    %445 = vector.extract_strided_slice %442 {offsets = [0, 0], sizes = [8, 8], strides = [1, 1]} : vector<16x8xf32> to vector<8x8xf32>
    %cst_241 = arith.constant dense<0.000000e+00> : vector<8x8xf32>
    %446 = tpu.matmul %443, %444, %cst_241 {dimension_numbers = #tpu.dot_dimension_numbers<[1], [1], [0], [0], [0, 0, 1, 0], [], []>} : vector<8x8xf32>, vector<8x8xf32>, vector<8x8xf32> -> vector<8x8xf32>
    %cst_242 = arith.constant 0.353553385 : f32
    %447 = vector.broadcast %cst_242 : f32 to vector<8x8xf32>
    %448 = arith.mulf %446, %447 : vector<8x8xf32>
    %449 = arith.addf %448, %50 : vector<8x8xf32>
    %cst_243 = arith.constant dense<0xFF800000> : vector<8xf32>
    %450 = vector.multi_reduction <maximumf>, %449, %cst_243 [1] : vector<8x8xf32> to vector<8xf32>
    %451 = vector.shape_cast %450 : vector<8xf32> to vector<8x1xf32>
    %452 = vector.broadcast %451 : vector<8x1xf32> to vector<8x8xf32>
    %453 = arith.subf %449, %452 : vector<8x8xf32>
    %454 = math.exp %453 : vector<8x8xf32>
    %cst_244 = arith.constant dense<0.000000e+00> : vector<8xf32>
    %455 = vector.multi_reduction <add>, %454, %cst_244 [1] : vector<8x8xf32> to vector<8xf32>
    %456 = vector.shape_cast %455 : vector<8xf32> to vector<8x1xf32>
    %457 = tpu.reciprocal %456 {approx = true} : vector<8x1xf32> -> vector<8x1xf32>
    %458 = vector.broadcast %457 : vector<8x1xf32> to vector<8x8xf32>
    %459 = arith.mulf %454, %458 : vector<8x8xf32>
    %cst_245 = arith.constant dense<0.000000e+00> : vector<8x8xf32>
    %460 = tpu.matmul %459, %445, %cst_245 {dimension_numbers = #tpu.dot_dimension_numbers<[1], [0], [0], [1], [0, 0, 1, 1], [], []>} : vector<8x8xf32>, vector<8x8xf32>, vector<8x8xf32> -> vector<8x8xf32>
    %461 = arith.truncf %460 : vector<8x8xf32> to vector<8x8xbf16>
    %cst_246 = arith.constant dense<0.000000e+00> : vector<8x32xf32>
    %462 = tpu.matmul %461, %433, %cst_246 {dimension_numbers = #tpu.dot_dimension_numbers<[1], [0], [0], [1], [0, 0, 1, 1], [], []>} : vector<8x8xbf16>, vector<8x32xbf16>, vector<8x32xf32> -> vector<8x32xf32>
    %463 = vector.extract_strided_slice %436 {offsets = [8, 0], sizes = [8, 8], strides = [1, 1]} : vector<16x8xf32> to vector<8x8xf32>
    %464 = vector.extract_strided_slice %439 {offsets = [8, 0], sizes = [8, 8], strides = [1, 1]} : vector<16x8xf32> to vector<8x8xf32>
    %465 = vector.extract_strided_slice %442 {offsets = [8, 0], sizes = [8, 8], strides = [1, 1]} : vector<16x8xf32> to vector<8x8xf32>
    %cst_247 = arith.constant dense<0.000000e+00> : vector<8x8xf32>
    %466 = tpu.matmul %463, %464, %cst_247 {dimension_numbers = #tpu.dot_dimension_numbers<[1], [1], [0], [0], [0, 0, 1, 0], [], []>} : vector<8x8xf32>, vector<8x8xf32>, vector<8x8xf32> -> vector<8x8xf32>
    %cst_248 = arith.constant 0.353553385 : f32
    %467 = vector.broadcast %cst_248 : f32 to vector<8x8xf32>
    %468 = arith.mulf %466, %467 : vector<8x8xf32>
    %469 = arith.addf %468, %57 : vector<8x8xf32>
    %cst_249 = arith.constant dense<0xFF800000> : vector<8xf32>
    %470 = vector.multi_reduction <maximumf>, %469, %cst_249 [1] : vector<8x8xf32> to vector<8xf32>
    %471 = vector.shape_cast %470 : vector<8xf32> to vector<8x1xf32>
    %472 = vector.broadcast %471 : vector<8x1xf32> to vector<8x8xf32>
    %473 = arith.subf %469, %472 : vector<8x8xf32>
    %474 = math.exp %473 : vector<8x8xf32>
    %cst_250 = arith.constant dense<0.000000e+00> : vector<8xf32>
    %475 = vector.multi_reduction <add>, %474, %cst_250 [1] : vector<8x8xf32> to vector<8xf32>
    %476 = vector.shape_cast %475 : vector<8xf32> to vector<8x1xf32>
    %477 = tpu.reciprocal %476 {approx = true} : vector<8x1xf32> -> vector<8x1xf32>
    %478 = vector.broadcast %477 : vector<8x1xf32> to vector<8x8xf32>
    %479 = arith.mulf %474, %478 : vector<8x8xf32>
    %cst_251 = arith.constant dense<0.000000e+00> : vector<8x8xf32>
    %480 = tpu.matmul %479, %465, %cst_251 {dimension_numbers = #tpu.dot_dimension_numbers<[1], [0], [0], [1], [0, 0, 1, 1], [], []>} : vector<8x8xf32>, vector<8x8xf32>, vector<8x8xf32> -> vector<8x8xf32>
    %481 = arith.truncf %480 : vector<8x8xf32> to vector<8x8xbf16>
    %cst_252 = arith.constant dense<0.000000e+00> : vector<8x32xf32>
    %482 = tpu.matmul %481, %433, %cst_252 {dimension_numbers = #tpu.dot_dimension_numbers<[1], [0], [0], [1], [0, 0, 1, 1], [], []>} : vector<8x8xbf16>, vector<8x32xbf16>, vector<8x32xf32> -> vector<8x32xf32>
    %c1_253 = arith.constant 1 : index
    %c0_254 = arith.constant 0 : index
    %c8_255 = arith.constant 8 : index
    %483 = vector.load %arg7[%c1_253, %c0_254, %c8_255] : memref<2x32x96xbf16, #tpu.memory_space<vmem>>, vector<1x32x8xbf16>
    %484 = vector.shape_cast %483 : vector<1x32x8xbf16> to vector<32x8xbf16>
    %c1_256 = arith.constant 1 : index
    %c0_257 = arith.constant 0 : index
    %c40_258 = arith.constant 40 : index
    %485 = vector.load %arg7[%c1_256, %c0_257, %c40_258] : memref<2x32x96xbf16, #tpu.memory_space<vmem>>, vector<1x32x8xbf16>
    %486 = vector.shape_cast %485 : vector<1x32x8xbf16> to vector<32x8xbf16>
    %c1_259 = arith.constant 1 : index
    %c0_260 = arith.constant 0 : index
    %c72_261 = arith.constant 72 : index
    %487 = vector.load %arg7[%c1_259, %c0_260, %c72_261] : memref<2x32x96xbf16, #tpu.memory_space<vmem>>, vector<1x32x8xbf16>
    %488 = vector.shape_cast %487 : vector<1x32x8xbf16> to vector<32x8xbf16>
    %c1_262 = arith.constant 1 : index
    %c0_263 = arith.constant 0 : index
    %c8_264 = arith.constant 8 : index
    %489 = vector.load %arg11[%c1_262, %c0_263, %c8_264] : memref<2x8x96xf32, #tpu.memory_space<vmem>>, vector<1x1x8xf32>
    %490 = vector.shape_cast %489 : vector<1x1x8xf32> to vector<1x8xf32>
    %c1_265 = arith.constant 1 : index
    %c0_266 = arith.constant 0 : index
    %c40_267 = arith.constant 40 : index
    %491 = vector.load %arg11[%c1_265, %c0_266, %c40_267] : memref<2x8x96xf32, #tpu.memory_space<vmem>>, vector<1x1x8xf32>
    %492 = vector.shape_cast %491 : vector<1x1x8xf32> to vector<1x8xf32>
    %c1_268 = arith.constant 1 : index
    %c0_269 = arith.constant 0 : index
    %c72_270 = arith.constant 72 : index
    %493 = vector.load %arg11[%c1_268, %c0_269, %c72_270] : memref<2x8x96xf32, #tpu.memory_space<vmem>>, vector<1x1x8xf32>
    %494 = vector.shape_cast %493 : vector<1x1x8xf32> to vector<1x8xf32>
    %c1_271 = arith.constant 1 : index
    %c8_272 = arith.constant 8 : index
    %c0_273 = arith.constant 0 : index
    %495 = vector.load %arg8[%c1_271, %c8_272, %c0_273] : memref<2x32x32xbf16, #tpu.memory_space<vmem>>, vector<1x8x32xbf16>
    %496 = vector.shape_cast %495 : vector<1x8x32xbf16> to vector<8x32xbf16>
    %cst_274 = arith.constant dense<0.000000e+00> : vector<16x8xf32>
    %497 = tpu.matmul %419, %484, %cst_274 {dimension_numbers = #tpu.dot_dimension_numbers<[1], [0], [0], [1], [0, 0, 1, 1], [], []>} : vector<16x32xbf16>, vector<32x8xbf16>, vector<16x8xf32> -> vector<16x8xf32>
    %498 = vector.broadcast %490 : vector<1x8xf32> to vector<16x8xf32>
    %499 = arith.addf %497, %498 : vector<16x8xf32>
    %cst_275 = arith.constant dense<0.000000e+00> : vector<16x8xf32>
    %500 = tpu.matmul %419, %486, %cst_275 {dimension_numbers = #tpu.dot_dimension_numbers<[1], [0], [0], [1], [0, 0, 1, 1], [], []>} : vector<16x32xbf16>, vector<32x8xbf16>, vector<16x8xf32> -> vector<16x8xf32>
    %501 = vector.broadcast %492 : vector<1x8xf32> to vector<16x8xf32>
    %502 = arith.addf %500, %501 : vector<16x8xf32>
    %cst_276 = arith.constant dense<0.000000e+00> : vector<16x8xf32>
    %503 = tpu.matmul %419, %488, %cst_276 {dimension_numbers = #tpu.dot_dimension_numbers<[1], [0], [0], [1], [0, 0, 1, 1], [], []>} : vector<16x32xbf16>, vector<32x8xbf16>, vector<16x8xf32> -> vector<16x8xf32>
    %504 = vector.broadcast %494 : vector<1x8xf32> to vector<16x8xf32>
    %505 = arith.addf %503, %504 : vector<16x8xf32>
    %506 = vector.extract_strided_slice %499 {offsets = [0, 0], sizes = [8, 8], strides = [1, 1]} : vector<16x8xf32> to vector<8x8xf32>
    %507 = vector.extract_strided_slice %502 {offsets = [0, 0], sizes = [8, 8], strides = [1, 1]} : vector<16x8xf32> to vector<8x8xf32>
    %508 = vector.extract_strided_slice %505 {offsets = [0, 0], sizes = [8, 8], strides = [1, 1]} : vector<16x8xf32> to vector<8x8xf32>
    %cst_277 = arith.constant dense<0.000000e+00> : vector<8x8xf32>
    %509 = tpu.matmul %506, %507, %cst_277 {dimension_numbers = #tpu.dot_dimension_numbers<[1], [1], [0], [0], [0, 0, 1, 0], [], []>} : vector<8x8xf32>, vector<8x8xf32>, vector<8x8xf32> -> vector<8x8xf32>
    %cst_278 = arith.constant 0.353553385 : f32
    %510 = vector.broadcast %cst_278 : f32 to vector<8x8xf32>
    %511 = arith.mulf %509, %510 : vector<8x8xf32>
    %512 = arith.addf %511, %50 : vector<8x8xf32>
    %cst_279 = arith.constant dense<0xFF800000> : vector<8xf32>
    %513 = vector.multi_reduction <maximumf>, %512, %cst_279 [1] : vector<8x8xf32> to vector<8xf32>
    %514 = vector.shape_cast %513 : vector<8xf32> to vector<8x1xf32>
    %515 = vector.broadcast %514 : vector<8x1xf32> to vector<8x8xf32>
    %516 = arith.subf %512, %515 : vector<8x8xf32>
    %517 = math.exp %516 : vector<8x8xf32>
    %cst_280 = arith.constant dense<0.000000e+00> : vector<8xf32>
    %518 = vector.multi_reduction <add>, %517, %cst_280 [1] : vector<8x8xf32> to vector<8xf32>
    %519 = vector.shape_cast %518 : vector<8xf32> to vector<8x1xf32>
    %520 = tpu.reciprocal %519 {approx = true} : vector<8x1xf32> -> vector<8x1xf32>
    %521 = vector.broadcast %520 : vector<8x1xf32> to vector<8x8xf32>
    %522 = arith.mulf %517, %521 : vector<8x8xf32>
    %cst_281 = arith.constant dense<0.000000e+00> : vector<8x8xf32>
    %523 = tpu.matmul %522, %508, %cst_281 {dimension_numbers = #tpu.dot_dimension_numbers<[1], [0], [0], [1], [0, 0, 1, 1], [], []>} : vector<8x8xf32>, vector<8x8xf32>, vector<8x8xf32> -> vector<8x8xf32>
    %524 = arith.truncf %523 : vector<8x8xf32> to vector<8x8xbf16>
    %cst_282 = arith.constant dense<0.000000e+00> : vector<8x32xf32>
    %525 = tpu.matmul %524, %496, %cst_282 {dimension_numbers = #tpu.dot_dimension_numbers<[1], [0], [0], [1], [0, 0, 1, 1], [], []>} : vector<8x8xbf16>, vector<8x32xbf16>, vector<8x32xf32> -> vector<8x32xf32>
    %526 = arith.addf %462, %525 : vector<8x32xf32>
    %527 = vector.extract_strided_slice %499 {offsets = [8, 0], sizes = [8, 8], strides = [1, 1]} : vector<16x8xf32> to vector<8x8xf32>
    %528 = vector.extract_strided_slice %502 {offsets = [8, 0], sizes = [8, 8], strides = [1, 1]} : vector<16x8xf32> to vector<8x8xf32>
    %529 = vector.extract_strided_slice %505 {offsets = [8, 0], sizes = [8, 8], strides = [1, 1]} : vector<16x8xf32> to vector<8x8xf32>
    %cst_283 = arith.constant dense<0.000000e+00> : vector<8x8xf32>
    %530 = tpu.matmul %527, %528, %cst_283 {dimension_numbers = #tpu.dot_dimension_numbers<[1], [1], [0], [0], [0, 0, 1, 0], [], []>} : vector<8x8xf32>, vector<8x8xf32>, vector<8x8xf32> -> vector<8x8xf32>
    %cst_284 = arith.constant 0.353553385 : f32
    %531 = vector.broadcast %cst_284 : f32 to vector<8x8xf32>
    %532 = arith.mulf %530, %531 : vector<8x8xf32>
    %533 = arith.addf %532, %57 : vector<8x8xf32>
    %cst_285 = arith.constant dense<0xFF800000> : vector<8xf32>
    %534 = vector.multi_reduction <maximumf>, %533, %cst_285 [1] : vector<8x8xf32> to vector<8xf32>
    %535 = vector.shape_cast %534 : vector<8xf32> to vector<8x1xf32>
    %536 = vector.broadcast %535 : vector<8x1xf32> to vector<8x8xf32>
    %537 = arith.subf %533, %536 : vector<8x8xf32>
    %538 = math.exp %537 : vector<8x8xf32>
    %cst_286 = arith.constant dense<0.000000e+00> : vector<8xf32>
    %539 = vector.multi_reduction <add>, %538, %cst_286 [1] : vector<8x8xf32> to vector<8xf32>
    %540 = vector.shape_cast %539 : vector<8xf32> to vector<8x1xf32>
    %541 = tpu.reciprocal %540 {approx = true} : vector<8x1xf32> -> vector<8x1xf32>
    %542 = vector.broadcast %541 : vector<8x1xf32> to vector<8x8xf32>
    %543 = arith.mulf %538, %542 : vector<8x8xf32>
    %cst_287 = arith.constant dense<0.000000e+00> : vector<8x8xf32>
    %544 = tpu.matmul %543, %529, %cst_287 {dimension_numbers = #tpu.dot_dimension_numbers<[1], [0], [0], [1], [0, 0, 1, 1], [], []>} : vector<8x8xf32>, vector<8x8xf32>, vector<8x8xf32> -> vector<8x8xf32>
    %545 = arith.truncf %544 : vector<8x8xf32> to vector<8x8xbf16>
    %cst_288 = arith.constant dense<0.000000e+00> : vector<8x32xf32>
    %546 = tpu.matmul %545, %496, %cst_288 {dimension_numbers = #tpu.dot_dimension_numbers<[1], [0], [0], [1], [0, 0, 1, 1], [], []>} : vector<8x8xbf16>, vector<8x32xbf16>, vector<8x32xf32> -> vector<8x32xf32>
    %547 = arith.addf %482, %546 : vector<8x32xf32>
    %c1_289 = arith.constant 1 : index
    %c0_290 = arith.constant 0 : index
    %c16_291 = arith.constant 16 : index
    %548 = vector.load %arg7[%c1_289, %c0_290, %c16_291] : memref<2x32x96xbf16, #tpu.memory_space<vmem>>, vector<1x32x8xbf16>
    %549 = vector.shape_cast %548 : vector<1x32x8xbf16> to vector<32x8xbf16>
    %c1_292 = arith.constant 1 : index
    %c0_293 = arith.constant 0 : index
    %c48_294 = arith.constant 48 : index
    %550 = vector.load %arg7[%c1_292, %c0_293, %c48_294] : memref<2x32x96xbf16, #tpu.memory_space<vmem>>, vector<1x32x8xbf16>
    %551 = vector.shape_cast %550 : vector<1x32x8xbf16> to vector<32x8xbf16>
    %c1_295 = arith.constant 1 : index
    %c0_296 = arith.constant 0 : index
    %c80_297 = arith.constant 80 : index
    %552 = vector.load %arg7[%c1_295, %c0_296, %c80_297] : memref<2x32x96xbf16, #tpu.memory_space<vmem>>, vector<1x32x8xbf16>
    %553 = vector.shape_cast %552 : vector<1x32x8xbf16> to vector<32x8xbf16>
    %c1_298 = arith.constant 1 : index
    %c0_299 = arith.constant 0 : index
    %c16_300 = arith.constant 16 : index
    %554 = vector.load %arg11[%c1_298, %c0_299, %c16_300] : memref<2x8x96xf32, #tpu.memory_space<vmem>>, vector<1x1x8xf32>
    %555 = vector.shape_cast %554 : vector<1x1x8xf32> to vector<1x8xf32>
    %c1_301 = arith.constant 1 : index
    %c0_302 = arith.constant 0 : index
    %c48_303 = arith.constant 48 : index
    %556 = vector.load %arg11[%c1_301, %c0_302, %c48_303] : memref<2x8x96xf32, #tpu.memory_space<vmem>>, vector<1x1x8xf32>
    %557 = vector.shape_cast %556 : vector<1x1x8xf32> to vector<1x8xf32>
    %c1_304 = arith.constant 1 : index
    %c0_305 = arith.constant 0 : index
    %c80_306 = arith.constant 80 : index
    %558 = vector.load %arg11[%c1_304, %c0_305, %c80_306] : memref<2x8x96xf32, #tpu.memory_space<vmem>>, vector<1x1x8xf32>
    %559 = vector.shape_cast %558 : vector<1x1x8xf32> to vector<1x8xf32>
    %c1_307 = arith.constant 1 : index
    %c16_308 = arith.constant 16 : index
    %c0_309 = arith.constant 0 : index
    %560 = vector.load %arg8[%c1_307, %c16_308, %c0_309] : memref<2x32x32xbf16, #tpu.memory_space<vmem>>, vector<1x8x32xbf16>
    %561 = vector.shape_cast %560 : vector<1x8x32xbf16> to vector<8x32xbf16>
    %cst_310 = arith.constant dense<0.000000e+00> : vector<16x8xf32>
    %562 = tpu.matmul %419, %549, %cst_310 {dimension_numbers = #tpu.dot_dimension_numbers<[1], [0], [0], [1], [0, 0, 1, 1], [], []>} : vector<16x32xbf16>, vector<32x8xbf16>, vector<16x8xf32> -> vector<16x8xf32>
    %563 = vector.broadcast %555 : vector<1x8xf32> to vector<16x8xf32>
    %564 = arith.addf %562, %563 : vector<16x8xf32>
    %cst_311 = arith.constant dense<0.000000e+00> : vector<16x8xf32>
    %565 = tpu.matmul %419, %551, %cst_311 {dimension_numbers = #tpu.dot_dimension_numbers<[1], [0], [0], [1], [0, 0, 1, 1], [], []>} : vector<16x32xbf16>, vector<32x8xbf16>, vector<16x8xf32> -> vector<16x8xf32>
    %566 = vector.broadcast %557 : vector<1x8xf32> to vector<16x8xf32>
    %567 = arith.addf %565, %566 : vector<16x8xf32>
    %cst_312 = arith.constant dense<0.000000e+00> : vector<16x8xf32>
    %568 = tpu.matmul %419, %553, %cst_312 {dimension_numbers = #tpu.dot_dimension_numbers<[1], [0], [0], [1], [0, 0, 1, 1], [], []>} : vector<16x32xbf16>, vector<32x8xbf16>, vector<16x8xf32> -> vector<16x8xf32>
    %569 = vector.broadcast %559 : vector<1x8xf32> to vector<16x8xf32>
    %570 = arith.addf %568, %569 : vector<16x8xf32>
    %571 = vector.extract_strided_slice %564 {offsets = [0, 0], sizes = [8, 8], strides = [1, 1]} : vector<16x8xf32> to vector<8x8xf32>
    %572 = vector.extract_strided_slice %567 {offsets = [0, 0], sizes = [8, 8], strides = [1, 1]} : vector<16x8xf32> to vector<8x8xf32>
    %573 = vector.extract_strided_slice %570 {offsets = [0, 0], sizes = [8, 8], strides = [1, 1]} : vector<16x8xf32> to vector<8x8xf32>
    %cst_313 = arith.constant dense<0.000000e+00> : vector<8x8xf32>
    %574 = tpu.matmul %571, %572, %cst_313 {dimension_numbers = #tpu.dot_dimension_numbers<[1], [1], [0], [0], [0, 0, 1, 0], [], []>} : vector<8x8xf32>, vector<8x8xf32>, vector<8x8xf32> -> vector<8x8xf32>
    %cst_314 = arith.constant 0.353553385 : f32
    %575 = vector.broadcast %cst_314 : f32 to vector<8x8xf32>
    %576 = arith.mulf %574, %575 : vector<8x8xf32>
    %577 = arith.addf %576, %50 : vector<8x8xf32>
    %cst_315 = arith.constant dense<0xFF800000> : vector<8xf32>
    %578 = vector.multi_reduction <maximumf>, %577, %cst_315 [1] : vector<8x8xf32> to vector<8xf32>
    %579 = vector.shape_cast %578 : vector<8xf32> to vector<8x1xf32>
    %580 = vector.broadcast %579 : vector<8x1xf32> to vector<8x8xf32>
    %581 = arith.subf %577, %580 : vector<8x8xf32>
    %582 = math.exp %581 : vector<8x8xf32>
    %cst_316 = arith.constant dense<0.000000e+00> : vector<8xf32>
    %583 = vector.multi_reduction <add>, %582, %cst_316 [1] : vector<8x8xf32> to vector<8xf32>
    %584 = vector.shape_cast %583 : vector<8xf32> to vector<8x1xf32>
    %585 = tpu.reciprocal %584 {approx = true} : vector<8x1xf32> -> vector<8x1xf32>
    %586 = vector.broadcast %585 : vector<8x1xf32> to vector<8x8xf32>
    %587 = arith.mulf %582, %586 : vector<8x8xf32>
    %cst_317 = arith.constant dense<0.000000e+00> : vector<8x8xf32>
    %588 = tpu.matmul %587, %573, %cst_317 {dimension_numbers = #tpu.dot_dimension_numbers<[1], [0], [0], [1], [0, 0, 1, 1], [], []>} : vector<8x8xf32>, vector<8x8xf32>, vector<8x8xf32> -> vector<8x8xf32>
    %589 = arith.truncf %588 : vector<8x8xf32> to vector<8x8xbf16>
    %cst_318 = arith.constant dense<0.000000e+00> : vector<8x32xf32>
    %590 = tpu.matmul %589, %561, %cst_318 {dimension_numbers = #tpu.dot_dimension_numbers<[1], [0], [0], [1], [0, 0, 1, 1], [], []>} : vector<8x8xbf16>, vector<8x32xbf16>, vector<8x32xf32> -> vector<8x32xf32>
    %591 = arith.addf %526, %590 : vector<8x32xf32>
    %592 = vector.extract_strided_slice %564 {offsets = [8, 0], sizes = [8, 8], strides = [1, 1]} : vector<16x8xf32> to vector<8x8xf32>
    %593 = vector.extract_strided_slice %567 {offsets = [8, 0], sizes = [8, 8], strides = [1, 1]} : vector<16x8xf32> to vector<8x8xf32>
    %594 = vector.extract_strided_slice %570 {offsets = [8, 0], sizes = [8, 8], strides = [1, 1]} : vector<16x8xf32> to vector<8x8xf32>
    %cst_319 = arith.constant dense<0.000000e+00> : vector<8x8xf32>
    %595 = tpu.matmul %592, %593, %cst_319 {dimension_numbers = #tpu.dot_dimension_numbers<[1], [1], [0], [0], [0, 0, 1, 0], [], []>} : vector<8x8xf32>, vector<8x8xf32>, vector<8x8xf32> -> vector<8x8xf32>
    %cst_320 = arith.constant 0.353553385 : f32
    %596 = vector.broadcast %cst_320 : f32 to vector<8x8xf32>
    %597 = arith.mulf %595, %596 : vector<8x8xf32>
    %598 = arith.addf %597, %57 : vector<8x8xf32>
    %cst_321 = arith.constant dense<0xFF800000> : vector<8xf32>
    %599 = vector.multi_reduction <maximumf>, %598, %cst_321 [1] : vector<8x8xf32> to vector<8xf32>
    %600 = vector.shape_cast %599 : vector<8xf32> to vector<8x1xf32>
    %601 = vector.broadcast %600 : vector<8x1xf32> to vector<8x8xf32>
    %602 = arith.subf %598, %601 : vector<8x8xf32>
    %603 = math.exp %602 : vector<8x8xf32>
    %cst_322 = arith.constant dense<0.000000e+00> : vector<8xf32>
    %604 = vector.multi_reduction <add>, %603, %cst_322 [1] : vector<8x8xf32> to vector<8xf32>
    %605 = vector.shape_cast %604 : vector<8xf32> to vector<8x1xf32>
    %606 = tpu.reciprocal %605 {approx = true} : vector<8x1xf32> -> vector<8x1xf32>
    %607 = vector.broadcast %606 : vector<8x1xf32> to vector<8x8xf32>
    %608 = arith.mulf %603, %607 : vector<8x8xf32>
    %cst_323 = arith.constant dense<0.000000e+00> : vector<8x8xf32>
    %609 = tpu.matmul %608, %594, %cst_323 {dimension_numbers = #tpu.dot_dimension_numbers<[1], [0], [0], [1], [0, 0, 1, 1], [], []>} : vector<8x8xf32>, vector<8x8xf32>, vector<8x8xf32> -> vector<8x8xf32>
    %610 = arith.truncf %609 : vector<8x8xf32> to vector<8x8xbf16>
    %cst_324 = arith.constant dense<0.000000e+00> : vector<8x32xf32>
    %611 = tpu.matmul %610, %561, %cst_324 {dimension_numbers = #tpu.dot_dimension_numbers<[1], [0], [0], [1], [0, 0, 1, 1], [], []>} : vector<8x8xbf16>, vector<8x32xbf16>, vector<8x32xf32> -> vector<8x32xf32>
    %612 = arith.addf %547, %611 : vector<8x32xf32>
    %c1_325 = arith.constant 1 : index
    %c0_326 = arith.constant 0 : index
    %c24_327 = arith.constant 24 : index
    %613 = vector.load %arg7[%c1_325, %c0_326, %c24_327] : memref<2x32x96xbf16, #tpu.memory_space<vmem>>, vector<1x32x8xbf16>
    %614 = vector.shape_cast %613 : vector<1x32x8xbf16> to vector<32x8xbf16>
    %c1_328 = arith.constant 1 : index
    %c0_329 = arith.constant 0 : index
    %c56_330 = arith.constant 56 : index
    %615 = vector.load %arg7[%c1_328, %c0_329, %c56_330] : memref<2x32x96xbf16, #tpu.memory_space<vmem>>, vector<1x32x8xbf16>
    %616 = vector.shape_cast %615 : vector<1x32x8xbf16> to vector<32x8xbf16>
    %c1_331 = arith.constant 1 : index
    %c0_332 = arith.constant 0 : index
    %c88_333 = arith.constant 88 : index
    %617 = vector.load %arg7[%c1_331, %c0_332, %c88_333] : memref<2x32x96xbf16, #tpu.memory_space<vmem>>, vector<1x32x8xbf16>
    %618 = vector.shape_cast %617 : vector<1x32x8xbf16> to vector<32x8xbf16>
    %c1_334 = arith.constant 1 : index
    %c0_335 = arith.constant 0 : index
    %c24_336 = arith.constant 24 : index
    %619 = vector.load %arg11[%c1_334, %c0_335, %c24_336] : memref<2x8x96xf32, #tpu.memory_space<vmem>>, vector<1x1x8xf32>
    %620 = vector.shape_cast %619 : vector<1x1x8xf32> to vector<1x8xf32>
    %c1_337 = arith.constant 1 : index
    %c0_338 = arith.constant 0 : index
    %c56_339 = arith.constant 56 : index
    %621 = vector.load %arg11[%c1_337, %c0_338, %c56_339] : memref<2x8x96xf32, #tpu.memory_space<vmem>>, vector<1x1x8xf32>
    %622 = vector.shape_cast %621 : vector<1x1x8xf32> to vector<1x8xf32>
    %c1_340 = arith.constant 1 : index
    %c0_341 = arith.constant 0 : index
    %c88_342 = arith.constant 88 : index
    %623 = vector.load %arg11[%c1_340, %c0_341, %c88_342] : memref<2x8x96xf32, #tpu.memory_space<vmem>>, vector<1x1x8xf32>
    %624 = vector.shape_cast %623 : vector<1x1x8xf32> to vector<1x8xf32>
    %c1_343 = arith.constant 1 : index
    %c24_344 = arith.constant 24 : index
    %c0_345 = arith.constant 0 : index
    %625 = vector.load %arg8[%c1_343, %c24_344, %c0_345] : memref<2x32x32xbf16, #tpu.memory_space<vmem>>, vector<1x8x32xbf16>
    %626 = vector.shape_cast %625 : vector<1x8x32xbf16> to vector<8x32xbf16>
    %cst_346 = arith.constant dense<0.000000e+00> : vector<16x8xf32>
    %627 = tpu.matmul %419, %614, %cst_346 {dimension_numbers = #tpu.dot_dimension_numbers<[1], [0], [0], [1], [0, 0, 1, 1], [], []>} : vector<16x32xbf16>, vector<32x8xbf16>, vector<16x8xf32> -> vector<16x8xf32>
    %628 = vector.broadcast %620 : vector<1x8xf32> to vector<16x8xf32>
    %629 = arith.addf %627, %628 : vector<16x8xf32>
    %cst_347 = arith.constant dense<0.000000e+00> : vector<16x8xf32>
    %630 = tpu.matmul %419, %616, %cst_347 {dimension_numbers = #tpu.dot_dimension_numbers<[1], [0], [0], [1], [0, 0, 1, 1], [], []>} : vector<16x32xbf16>, vector<32x8xbf16>, vector<16x8xf32> -> vector<16x8xf32>
    %631 = vector.broadcast %622 : vector<1x8xf32> to vector<16x8xf32>
    %632 = arith.addf %630, %631 : vector<16x8xf32>
    %cst_348 = arith.constant dense<0.000000e+00> : vector<16x8xf32>
    %633 = tpu.matmul %419, %618, %cst_348 {dimension_numbers = #tpu.dot_dimension_numbers<[1], [0], [0], [1], [0, 0, 1, 1], [], []>} : vector<16x32xbf16>, vector<32x8xbf16>, vector<16x8xf32> -> vector<16x8xf32>
    %634 = vector.broadcast %624 : vector<1x8xf32> to vector<16x8xf32>
    %635 = arith.addf %633, %634 : vector<16x8xf32>
    %636 = vector.extract_strided_slice %629 {offsets = [0, 0], sizes = [8, 8], strides = [1, 1]} : vector<16x8xf32> to vector<8x8xf32>
    %637 = vector.extract_strided_slice %632 {offsets = [0, 0], sizes = [8, 8], strides = [1, 1]} : vector<16x8xf32> to vector<8x8xf32>
    %638 = vector.extract_strided_slice %635 {offsets = [0, 0], sizes = [8, 8], strides = [1, 1]} : vector<16x8xf32> to vector<8x8xf32>
    %cst_349 = arith.constant dense<0.000000e+00> : vector<8x8xf32>
    %639 = tpu.matmul %636, %637, %cst_349 {dimension_numbers = #tpu.dot_dimension_numbers<[1], [1], [0], [0], [0, 0, 1, 0], [], []>} : vector<8x8xf32>, vector<8x8xf32>, vector<8x8xf32> -> vector<8x8xf32>
    %cst_350 = arith.constant 0.353553385 : f32
    %640 = vector.broadcast %cst_350 : f32 to vector<8x8xf32>
    %641 = arith.mulf %639, %640 : vector<8x8xf32>
    %642 = arith.addf %641, %50 : vector<8x8xf32>
    %cst_351 = arith.constant dense<0xFF800000> : vector<8xf32>
    %643 = vector.multi_reduction <maximumf>, %642, %cst_351 [1] : vector<8x8xf32> to vector<8xf32>
    %644 = vector.shape_cast %643 : vector<8xf32> to vector<8x1xf32>
    %645 = vector.broadcast %644 : vector<8x1xf32> to vector<8x8xf32>
    %646 = arith.subf %642, %645 : vector<8x8xf32>
    %647 = math.exp %646 : vector<8x8xf32>
    %cst_352 = arith.constant dense<0.000000e+00> : vector<8xf32>
    %648 = vector.multi_reduction <add>, %647, %cst_352 [1] : vector<8x8xf32> to vector<8xf32>
    %649 = vector.shape_cast %648 : vector<8xf32> to vector<8x1xf32>
    %650 = tpu.reciprocal %649 {approx = true} : vector<8x1xf32> -> vector<8x1xf32>
    %651 = vector.broadcast %650 : vector<8x1xf32> to vector<8x8xf32>
    %652 = arith.mulf %647, %651 : vector<8x8xf32>
    %cst_353 = arith.constant dense<0.000000e+00> : vector<8x8xf32>
    %653 = tpu.matmul %652, %638, %cst_353 {dimension_numbers = #tpu.dot_dimension_numbers<[1], [0], [0], [1], [0, 0, 1, 1], [], []>} : vector<8x8xf32>, vector<8x8xf32>, vector<8x8xf32> -> vector<8x8xf32>
    %654 = arith.truncf %653 : vector<8x8xf32> to vector<8x8xbf16>
    %cst_354 = arith.constant dense<0.000000e+00> : vector<8x32xf32>
    %655 = tpu.matmul %654, %626, %cst_354 {dimension_numbers = #tpu.dot_dimension_numbers<[1], [0], [0], [1], [0, 0, 1, 1], [], []>} : vector<8x8xbf16>, vector<8x32xbf16>, vector<8x32xf32> -> vector<8x32xf32>
    %656 = arith.addf %591, %655 : vector<8x32xf32>
    %657 = vector.extract_strided_slice %629 {offsets = [8, 0], sizes = [8, 8], strides = [1, 1]} : vector<16x8xf32> to vector<8x8xf32>
    %658 = vector.extract_strided_slice %632 {offsets = [8, 0], sizes = [8, 8], strides = [1, 1]} : vector<16x8xf32> to vector<8x8xf32>
    %659 = vector.extract_strided_slice %635 {offsets = [8, 0], sizes = [8, 8], strides = [1, 1]} : vector<16x8xf32> to vector<8x8xf32>
    %cst_355 = arith.constant dense<0.000000e+00> : vector<8x8xf32>
    %660 = tpu.matmul %657, %658, %cst_355 {dimension_numbers = #tpu.dot_dimension_numbers<[1], [1], [0], [0], [0, 0, 1, 0], [], []>} : vector<8x8xf32>, vector<8x8xf32>, vector<8x8xf32> -> vector<8x8xf32>
    %cst_356 = arith.constant 0.353553385 : f32
    %661 = vector.broadcast %cst_356 : f32 to vector<8x8xf32>
    %662 = arith.mulf %660, %661 : vector<8x8xf32>
    %663 = arith.addf %662, %57 : vector<8x8xf32>
    %cst_357 = arith.constant dense<0xFF800000> : vector<8xf32>
    %664 = vector.multi_reduction <maximumf>, %663, %cst_357 [1] : vector<8x8xf32> to vector<8xf32>
    %665 = vector.shape_cast %664 : vector<8xf32> to vector<8x1xf32>
    %666 = vector.broadcast %665 : vector<8x1xf32> to vector<8x8xf32>
    %667 = arith.subf %663, %666 : vector<8x8xf32>
    %668 = math.exp %667 : vector<8x8xf32>
    %cst_358 = arith.constant dense<0.000000e+00> : vector<8xf32>
    %669 = vector.multi_reduction <add>, %668, %cst_358 [1] : vector<8x8xf32> to vector<8xf32>
    %670 = vector.shape_cast %669 : vector<8xf32> to vector<8x1xf32>
    %671 = tpu.reciprocal %670 {approx = true} : vector<8x1xf32> -> vector<8x1xf32>
    %672 = vector.broadcast %671 : vector<8x1xf32> to vector<8x8xf32>
    %673 = arith.mulf %668, %672 : vector<8x8xf32>
    %cst_359 = arith.constant dense<0.000000e+00> : vector<8x8xf32>
    %674 = tpu.matmul %673, %659, %cst_359 {dimension_numbers = #tpu.dot_dimension_numbers<[1], [0], [0], [1], [0, 0, 1, 1], [], []>} : vector<8x8xf32>, vector<8x8xf32>, vector<8x8xf32> -> vector<8x8xf32>
    %675 = arith.truncf %674 : vector<8x8xf32> to vector<8x8xbf16>
    %cst_360 = arith.constant dense<0.000000e+00> : vector<8x32xf32>
    %676 = tpu.matmul %675, %626, %cst_360 {dimension_numbers = #tpu.dot_dimension_numbers<[1], [0], [0], [1], [0, 0, 1, 1], [], []>} : vector<8x8xbf16>, vector<8x32xbf16>, vector<8x32xf32> -> vector<8x32xf32>
    %677 = arith.addf %612, %676 : vector<8x32xf32>
    %678 = tpu.concatenate %656, %677 in 0 : vector<8x32xf32>, vector<8x32xf32> -> vector<16x32xf32>
    %679 = vector.broadcast %406 : vector<1x32xf32> to vector<16x32xf32>
    %680 = arith.addf %678, %679 : vector<16x32xf32>
    %681 = arith.addf %680, %404 : vector<16x32xf32>
    %cst_361 = arith.constant dense<0.000000e+00> : vector<16xf32>
    %682 = vector.multi_reduction <add>, %681, %cst_361 [1] : vector<16x32xf32> to vector<16xf32>
    %683 = vector.shape_cast %682 : vector<16xf32> to vector<16x1xf32>
    %cst_362 = arith.constant 3.200000e+01 : f32
    %684 = vector.broadcast %cst_362 : f32 to vector<16x1xf32>
    %685 = arith.divf %683, %684 : vector<16x1xf32>
    %686 = vector.broadcast %685 : vector<16x1xf32> to vector<16x32xf32>
    %687 = arith.subf %681, %686 : vector<16x32xf32>
    %688 = arith.mulf %687, %687 : vector<16x32xf32>
    %cst_363 = arith.constant dense<0.000000e+00> : vector<16xf32>
    %689 = vector.multi_reduction <add>, %688, %cst_363 [1] : vector<16x32xf32> to vector<16xf32>
    %690 = vector.shape_cast %689 : vector<16xf32> to vector<16x1xf32>
    %cst_364 = arith.constant 3.200000e+01 : f32
    %691 = vector.broadcast %cst_364 : f32 to vector<16x1xf32>
    %692 = arith.divf %690, %691 : vector<16x1xf32>
    %693 = vector.broadcast %685 : vector<16x1xf32> to vector<16x32xf32>
    %694 = arith.subf %681, %693 : vector<16x32xf32>
    %cst_365 = arith.constant 9.99999996E-13 : f32
    %695 = vector.broadcast %cst_365 : f32 to vector<16x1xf32>
    %696 = arith.addf %692, %695 : vector<16x1xf32>
    %697 = math.rsqrt %696 : vector<16x1xf32>
    %698 = vector.broadcast %697 : vector<16x1xf32> to vector<16x32xf32>
    %699 = arith.mulf %694, %698 : vector<16x32xf32>
    %700 = vector.broadcast %408 : vector<1x32xf32> to vector<16x32xf32>
    %701 = arith.mulf %699, %700 : vector<16x32xf32>
    %702 = vector.broadcast %410 : vector<1x32xf32> to vector<16x32xf32>
    %703 = arith.addf %701, %702 : vector<16x32xf32>
    %704 = arith.truncf %703 : vector<16x32xf32> to vector<16x32xbf16>
    %c1_366 = arith.constant 1 : index
    %c0_367 = arith.constant 0 : index
    %c0_368 = arith.constant 0 : index
    %705 = vector.load %arg9[%c1_366, %c0_367, %c0_368] : memref<2x32x64xbf16, #tpu.memory_space<vmem>>, vector<1x32x64xbf16>
    %706 = vector.shape_cast %705 : vector<1x32x64xbf16> to vector<32x64xbf16>
    %cst_369 = arith.constant dense<0.000000e+00> : vector<16x64xf32>
    %707 = tpu.matmul %704, %706, %cst_369 {dimension_numbers = #tpu.dot_dimension_numbers<[1], [0], [0], [1], [0, 0, 1, 1], [], []>} : vector<16x32xbf16>, vector<32x64xbf16>, vector<16x64xf32> -> vector<16x64xf32>
    %708 = vector.broadcast %412 : vector<1x64xf32> to vector<16x64xf32>
    %709 = arith.addf %707, %708 : vector<16x64xf32>
    %710 = arith.mulf %709, %709 : vector<16x64xf32>
    %711 = arith.mulf %709, %710 : vector<16x64xf32>
    %cst_370 = arith.constant 4.471500e-02 : f32
    %712 = vector.broadcast %cst_370 : f32 to vector<16x64xf32>
    %713 = arith.mulf %712, %711 : vector<16x64xf32>
    %714 = arith.addf %709, %713 : vector<16x64xf32>
    %cst_371 = arith.constant 0.797884583 : f32
    %715 = vector.broadcast %cst_371 : f32 to vector<16x64xf32>
    %716 = arith.mulf %715, %714 : vector<16x64xf32>
    %717 = math.tanh %716 : vector<16x64xf32>
    %cst_372 = arith.constant 1.000000e+00 : f32
    %718 = vector.broadcast %cst_372 : f32 to vector<16x64xf32>
    %719 = arith.addf %718, %717 : vector<16x64xf32>
    %cst_373 = arith.constant 5.000000e-01 : f32
    %720 = vector.broadcast %cst_373 : f32 to vector<16x64xf32>
    %721 = arith.mulf %720, %719 : vector<16x64xf32>
    %722 = arith.mulf %709, %721 : vector<16x64xf32>
    %723 = arith.truncf %722 : vector<16x64xf32> to vector<16x64xbf16>
    %c1_374 = arith.constant 1 : index
    %c0_375 = arith.constant 0 : index
    %c0_376 = arith.constant 0 : index
    %724 = vector.load %arg10[%c1_374, %c0_375, %c0_376] : memref<2x64x32xbf16, #tpu.memory_space<vmem>>, vector<1x64x32xbf16>
    %725 = vector.shape_cast %724 : vector<1x64x32xbf16> to vector<64x32xbf16>
    %cst_377 = arith.constant dense<0.000000e+00> : vector<16x32xf32>
    %726 = tpu.matmul %723, %725, %cst_377 {dimension_numbers = #tpu.dot_dimension_numbers<[1], [0], [0], [1], [0, 0, 1, 1], [], []>} : vector<16x64xbf16>, vector<64x32xbf16>, vector<16x32xf32> -> vector<16x32xf32>
    %727 = vector.broadcast %414 : vector<1x32xf32> to vector<16x32xf32>
    %728 = arith.addf %726, %727 : vector<16x32xf32>
    %729 = arith.addf %728, %703 : vector<16x32xf32>
    %cst_378 = arith.constant dense<0.000000e+00> : vector<16xf32>
    %730 = vector.multi_reduction <add>, %729, %cst_378 [1] : vector<16x32xf32> to vector<16xf32>
    %731 = vector.shape_cast %730 : vector<16xf32> to vector<16x1xf32>
    %cst_379 = arith.constant 3.200000e+01 : f32
    %732 = vector.broadcast %cst_379 : f32 to vector<16x1xf32>
    %733 = arith.divf %731, %732 : vector<16x1xf32>
    %734 = vector.broadcast %733 : vector<16x1xf32> to vector<16x32xf32>
    %735 = arith.subf %729, %734 : vector<16x32xf32>
    %736 = arith.mulf %735, %735 : vector<16x32xf32>
    %cst_380 = arith.constant dense<0.000000e+00> : vector<16xf32>
    %737 = vector.multi_reduction <add>, %736, %cst_380 [1] : vector<16x32xf32> to vector<16xf32>
    %738 = vector.shape_cast %737 : vector<16xf32> to vector<16x1xf32>
    %cst_381 = arith.constant 3.200000e+01 : f32
    %739 = vector.broadcast %cst_381 : f32 to vector<16x1xf32>
    %740 = arith.divf %738, %739 : vector<16x1xf32>
    %741 = vector.broadcast %733 : vector<16x1xf32> to vector<16x32xf32>
    %742 = arith.subf %729, %741 : vector<16x32xf32>
    %cst_382 = arith.constant 9.99999996E-13 : f32
    %743 = vector.broadcast %cst_382 : f32 to vector<16x1xf32>
    %744 = arith.addf %740, %743 : vector<16x1xf32>
    %745 = math.rsqrt %744 : vector<16x1xf32>
    %746 = vector.broadcast %745 : vector<16x1xf32> to vector<16x32xf32>
    %747 = arith.mulf %742, %746 : vector<16x32xf32>
    %748 = vector.broadcast %416 : vector<1x32xf32> to vector<16x32xf32>
    %749 = arith.mulf %747, %748 : vector<16x32xf32>
    %750 = vector.broadcast %418 : vector<1x32xf32> to vector<16x32xf32>
    %751 = arith.addf %749, %750 : vector<16x32xf32>
    %752 = vector.extract_strided_slice %751 {offsets = [0, 0], sizes = [1, 32], strides = [1, 1]} : vector<16x32xf32> to vector<1x32xf32>
    %753 = vector.extract_strided_slice %751 {offsets = [8, 0], sizes = [1, 32], strides = [1, 1]} : vector<16x32xf32> to vector<1x32xf32>
    %754 = tpu.concatenate %752, %753 in 0 : vector<1x32xf32>, vector<1x32xf32> -> vector<2x32xf32>
    %c0_383 = arith.constant 0 : index
    %c0_384 = arith.constant 0 : index
    %755 = vector.load %arg12[%c0_383, %c0_384] : memref<2x32xf32, #tpu.memory_space<vmem>>, vector<2x32xf32>
    tpu.vector_store %arg12[%c0_383, %c0_384], %754 {strides = array<i32>} : memref<2x32xf32, #tpu.memory_space<vmem>>, vector<2x32xf32>,
    return
  }
}

</mosaic_0001>

<bundles_post_ra>
// kernel: simcse_forward.1
= control target key start
LH: loop header
LB: loop body
LE: loop exit
PB: predicated region body
PF: predicated region fallthrough
CT: control target
= control target key end

     0   :  { %17 = vsyncpa [#allocation3], 0  ;;  %s3715_s0 = inlined_call_operand.vmem [shape: s32[16,1], index: 0, kind: input, shape index: {}]   ;;  %s3716_s1 = inlined_call_operand.vmem [shape: s32[16,1], index: 1, kind: input, shape index: {}]   ;;  %s3717_s2 = inlined_call_operand.vmem [shape: f32[2,8], index: 2, kind: input, shape index: {}]   ;;  %s3718_s3 = inlined_call_operand.vmem [shape: f32[32,32], index: 3, kind: input, shape index: {}]   ;;  %s3719_s4 = inlined_call_operand.hbm [shape: f32[16,32], index: 4, kind: input, shape index: {}]   ;;  %s3720_s5 = inlined_call_operand.hbm [shape: f32[8,32], index: 5, kind: input, shape index: {}]   ;;  %s3721_s6 = inlined_call_operand.vmem [shape: f32[2,32], index: 6, kind: input, shape index: {}]   ;;  %s3722_s7 = inlined_call_operand.vmem [shape: bf16[2,32,96], index: 7, kind: input, shape index: {}]   ;;  %s3723_s8 = inlined_call_operand.vmem [shape: bf16[2,32,32], index: 8, kind: input, shape index: {}]   ;;  %s3724_s9 = inlined_call_operand.hbm [shape: bf16[2,32,64], index: 9, kind: input, shape index: {}]   ;;  %s3725_s10 = inlined_call_operand.vmem [shape: bf16[2,64,32], index: 10, kind: input, shape index: {}]   ;;  %s3726_s11 = inlined_call_operand.hbm [shape: f32[2,8,96], index: 11, kind: input, shape index: {}]   ;;  %s3727_s12 = inlined_call_operand.hbm [shape: f32[2,32], index: 12, kind: output, shape index: {}]  }
   0x1   :  { %18 = vsyncpa [#allocation6], 0 }
   0x2   :  { %19 = vsyncpa [#allocation9], 0  ;;  %s47_s23 = sshll.u32 %s3720_s5, 4  ;;  %s48_s23 = int_to_ptr.hbm [resolvable:$true] %s47_s23 }
   0x3   :  { %20 = vsyncpa [#allocation4], 0  ;;  %s3082_s24 = smov [#allocation5]   ;;  %s33_s28 = sshll.u32 %s3719_s4, 4  ;;  %s34_s28 = int_to_ptr.hbm [resolvable:$true] %s33_s28 }
   0x4   :  { %s49_s25 = sshll.u32 %s3082_s24, 4  ;;  %s3083_s29 = smov [#allocation2]   ;;  %s50_s25 = int_to_ptr.vmem [resolvable:$true] %s49_s25 }
   0x5   :  { %52 = dma.hbm_to_vmem [thread:$0]  %s48_s23, 128, %s50_s25, [#allocation6]  }
   0x6   :  { %s35_s30 = sshll.u32 %s3083_s29, 4  ;;  %s3084_s13 = smov 128   ;;  %s36_s30 = int_to_ptr.vmem [resolvable:$true] %s35_s30 }
   0x7   :  { %s3085_s14 = smov 8   ;;  %s63_s5 = sshll.u32 %s3724_s9, 4  ;;  %s64_s5 = int_to_ptr.hbm [resolvable:$true] %s63_s5 }
   0x8   :  { %41 = dma.hbm_to_vmem [thread:$0]  %s34_s28, 256, %s36_s30, [#allocation3], %s3084_s13, %s3084_s13, %s3085_s14  }
   0x9   :  { %s3086_s17 = smov [#allocation7]   ;;  %s78_s4 = sshll.u32 %s3726_s11, 4  ;;  %s79_s4 = int_to_ptr.hbm [resolvable:$true] %s78_s4 }
   0xa   :  { %s65_s18 = sshll.u32 %s3086_s17, 4  ;;  %s3087_s21 = smov 64   ;;  %s66_s18 = int_to_ptr.vmem [resolvable:$true] %s65_s18 }
   0xb   :  { %s3088_s22 = smov 4   ;;  %s3089_s23 = smov [#allocation8]  }
   0xc   :  { %71 = dma.hbm_to_vmem [thread:$0]  %s64_s5, 512, %s66_s18, [#allocation6], %s3087_s21, %s3087_s21, %s3088_s22  }
   0xd   :  { %s80_s24 = sshll.u32 %s3089_s23, 4  ;;  %s81_s24 = int_to_ptr.vmem [resolvable:$true] %s80_s24 }
   0xe   :  { %86 = dma.hbm_to_vmem [thread:$0]  %s79_s4, 256, %s81_s24, [#allocation9], %s3084_s13, %s3084_s13, %s3085_s14  }
   0xf   :  { %3074 = dma.done.wait [#allocation3], 256  }
  0x10   :  { %3075 = vsyncadd [#allocation3], 4294967040 }
  0x11   :  { %3076 = dma.done.wait [#allocation6], 640  }
  0x12   :  { %3077 = vsyncadd [#allocation6], 4294966656 }
  0x13   :  { %3078 = dma.done.wait [#allocation9], 256  }
  0x14   :  { %3079 = vsyncadd [#allocation9], 4294967040  ;;  %v3090_v0 = vmov 0   ;;  %v105_v1 = vld [vmem:[%s3715_s0 + $0x8] sm:$0xff]  ;;  %v104_v2 = vld [vmem:[%s3715_s0] sm:$0xff]  ;;  %v108_v10 = vlaneseq  ;;  %vm169_vm0 = vcmask 261120  }
  0x15   :  { %2841 = vset.pattern.permute.xlu1 %v3090_v0  ;;  %2840 = vset.pattern.permute.xlu0 %v3090_v0  ;;  %v137_v3 = vld [vmem:[%s3718_s3 + $0x18] sm:$0xff]  ;;  %v136_v4 = vld [vmem:[%s3718_s3 + $0x10] sm:$0xff]  ;;  %v135_v5 = vld [vmem:[%s3718_s3 + $0x8] sm:$0xff]  ;;  %v3091_v14 = vmov 0.0   ;;  %vm139_vm3 = vcmask 64512   ;;  %v3092_v32 = vmov 32.0  }
  0x16   :  { %114 = vperm.xlu1 %2841, %v105_v1   ;;  %111 = vperm.xlu0 %2840, %v104_v2   ;;  %v107_v6 = vld [vmem:[%s3716_s1 + $0x8] sm:$0xff]  ;;  %v106_v7 = vld [vmem:[%s3716_s1] sm:$0xff]  ;;  %v138_v9 = vld [vmem:[#allocation5] sm:$0xff]  ;;  %v109_v11 = vand.u32 127, %v108_v10  ;;  %2860 = vrcp.f32 %v3092_v32  ;;  %s3093_s19 = smov 96   ;;  %s3094_s22 = smov 120  }
  0x17   :  { %188 = vmatpush.msra.mxu1 %v137_v3  ;;  %v134_v8 = vld [vmem:[%s3718_s3] sm:$0xff]  ;;  %161 = vmatpush.msra.mxu0 %v138_v9  ;;  %v3216_v35 = vld [vmem:[%s3722_s7 + $0x8] sm:$0xff]  ;;  %v3231_v41 = vld [vmem:[#allocation8] ss:$0 sm:$0xff]  ;;  %s3095_s23 = smov 88   ;;  %vm622_vm13 = vcmask 1043456  }
  0x18   :  { %v199_v23 = vld [vmem:[#allocation2] sm:$0xff]  ;;  %305 = vmatpush.bf16.msra.mxu2 %v3216_v35  ;;  %s3097_s13 = smov 112   ;;  %s3098_s14 = smov 80  }
  0x19   :  { %189 = vmatpush.msra.mxu1 %v136_v4  ;;  %v3224_v37 = vld [vmem:[%s3722_s7] sm:$0xff]  ;;  %s3099_s15 = smov 48   ;;  %s3100_s16 = smov 72  }
  0x1a   :  { %s3101_s17 = smov 104   ;;  %s3102_s18 = smov 40  }
  0x1b   :  { %190 = vmatpush.msra.mxu1 %v135_v5  ;;  %s2610_s11 = sshll.u32 %s3727_s12, 4  ;;  %s2611_s11 = int_to_ptr.hbm [resolvable:$true] %s2610_s11 }
  0x1c   :  { %v2861_v33 = vpop.eup %2860  ;;  %306 = vmatpush.bf16.msra.mxu2 %v3224_v37 }
  0x1d   :  { %191 = vmatpush.msra.mxu1 %v134_v8  ;;  %v211_v34 = vmul.f32 32.0, %v2861_v33  ;;  %vm215_vm6 = vweird.f32 %v2861_v33 }
  0x1e   :  { %126 = vperm.xlu1 %2841, %v107_v6   ;;  %123 = vperm.xlu0 %2840, %v106_v7  }
  0x1f   :  { %v212_v36 = vsub.f32 1.0, %v211_v34 }
  0x21   :  { %v213_v38 = vmul.f32 %v2861_v33, %v212_v36 }
  0x23   :  { %v214_v39 = vadd.f32 %v2861_v33, %v213_v38 }
  0x25   :  { %v3229_v40 = vsel %vm215_vm6, %v2861_v33, %v214_v39  ;;  %vm1361_vm6 = vcmask 523264  }
  0x88   :  { %v112_v12 = vpop.permute.xlu0 %111  ;;  %v115_v13 = vpop.permute.xlu1 %114 }
  0x89   :  { %vm116_vm1 = vcmp.eq.s32.totalorder %v112_v12, %v109_v11  ;;  %vm117_vm2 = vcmp.eq.s32.totalorder %v115_v13, %v109_v11  ;;  %v2843_v12 = vld [vmem:[%s3721_s6] ss:$0 sm:$0xff] }
  0x8a   :  { %v2622_v15 = vsel %vm116_vm1, 1.0, %v3091_v14  ;;  %v2623_v16 = vsel %vm117_vm2, 1.0, %v3091_v14 }
  0x8b   :  { %2628 = vmatmul.msk.f32.vlgmr.msra.gmra.mxu1 %vm169_vm0, %v2622_v15 }
  0x90   :  { %v124_v17 = vpop.permute.xlu0 %123  ;;  %v127_v19 = vpop.permute.xlu1 %126 }
  0x91   :  { %vm128_vm4 = vcmp.eq.s32.totalorder %v124_v17, %v109_v11  ;;  %vm129_vm5 = vcmp.eq.s32.totalorder %v127_v19, %v109_v11  ;;  %v2844_v17 = vld [vmem:[%s3721_s6 + $0x1] ss:$0 sm:$0xff] }
  0x92   :  { %v2624_v18 = vsel %vm128_vm4, 1.0, %v3091_v14  ;;  %v2625_v20 = vsel %vm129_vm5, 1.0, %v3091_v14 }
  0x93   :  { %2626 = vmatmul.msk.f32.vlgmr.msra.gmra.mxu0 %vm139_vm3, %v2624_v18  ;;  %2629 = vmatmul.msk.f32.gmra.mxu1 %vm169_vm0, %v2623_v16 }
  0x9b   :  { %2627 = vmatmul.msk.f32.gmra.mxu0 %vm139_vm3, %v2625_v20 }
 0x108   :  { %v193_v21 = vpop.f32.mrf.mxu1 }
 0x110   :  { %v163_v22 = vpop.f32.mrf.mxu0  ;;  %v196_v27 = vpop.f32.mrf.mxu1 }
 0x111   :  { %v194_v24 = vadd.f32 %v193_v21, %v163_v22 }
 0x113   :  { %v200_v25 = vadd.f32 %v199_v23, %v194_v24 }
 0x115   :  { %v204_v26 = vsel %vm169_vm0, %v200_v25, 0.0 }
 0x116   :  { %205 = vadd.xlane.f32.xlu2 %v204_v26 }
 0x118   :  { %v166_v28 = vpop.f32.mrf.mxu0 }
 0x119   :  { %v197_v29 = vadd.f32 %v196_v27, %v166_v28 }
 0x11b   :  { %v201_v30 = vadd.f32 %v199_v23, %v197_v29 }
 0x11d   :  { %v207_v31 = vsel %vm169_vm0, %v201_v30, 0.0 }
 0x11e   :  { %208 = vadd.xlane.f32.xlu2 %v207_v31 }
 0x136   :  { %315 = vrot.lane.b32.xlu2 %v3216_v35, %s3093_s19 }
 0x13e   :  { %313 = vrot.lane.b32.xlu2 %v3224_v37, %s3093_s19 }
 0x146   :  { %320 = vrot.lane.b32.xlu2 %v3231_v41, %s3093_s19 }
 0x14e   :  { %339 = vrot.lane.b32.xlu2 %v3216_v35, %s3087_s21 }
 0x156   :  { %489 = vrot.lane.b32.xlu2 %v3216_v35, %s3094_s22 }
 0x15e   :  { %510 = vrot.lane.b32.xlu2 %v3224_v37, %s3095_s23 }
 0x189   :  { %v206_v42 = vpop.xlane.xlu2 %205 }
 0x18a   :  { %v217_v43 = vmul.f32 %v3229_v40, %v206_v42 }
 0x18c   :  { %v219_v44 = vsub.f32 %v200_v25, %v217_v43  ;;  %v261_v43 = vld [vmem:[%s3717_s2] sm:$0x1] }
 0x18e   :  { %v221_v45 = vmul.f32 %v219_v44, %v219_v44 }
 0x190   :  { %v223_v46 = vsel %vm169_vm0, %v221_v45, 0.0 }
 0x191   :  { %224 = vadd.xlane.f32.xlu0 %v223_v46  ;;  %v209_v47 = vpop.xlane.xlu2 %208 }
 0x192   :  { %v218_v48 = vmul.f32 %v3229_v40, %v209_v47 }
 0x194   :  { %v220_v49 = vsub.f32 %v201_v30, %v218_v48 }
 0x196   :  { %v222_v50 = vmul.f32 %v220_v49, %v220_v49 }
 0x198   :  { %v226_v51 = vsel %vm169_vm0, %v222_v50, 0.0 }
 0x199   :  { %227 = vadd.xlane.f32.xlu1 %v226_v51  ;;  %v316_v52 = vpop.permute.xlu2 %315 }
 0x19a   :  { %329 = vmatpush.bf16.msra.mxu3 %v316_v52 }
 0x1a1   :  { %v314_v53 = vpop.permute.xlu2 %313 }
 0x1a2   :  { %330 = vmatpush.bf16.msra.mxu3 %v314_v53 }
 0x1a5   :  { %337 = vrot.lane.b32.xlu0 %v3224_v37, %s3087_s21 }
 0x1a9   :  { %v3257_v54 = vpop.permute.xlu2 %320 }
 0x1ad   :  { %487 = vrot.lane.b32.xlu0 %v3224_v37, %s3094_s22 }
 0x1b1   :  { %v340_v55 = vpop.permute.xlu2 %339 }
 0x1b2   :  { %512 = vrot.lane.b32.xlu1 %v3216_v35, %s3095_s23  ;;  %352 = vmatpush.bf16.msrb.mxu0 %v340_v55 }
 0x1b5   :  { %343 = vrot.lane.b32.xlu0 %v3231_v41, %s3087_s21 }
 0x1b9   :  { %v490_v60 = vpop.permute.xlu2 %489 }
 0x1ba   :  { %502 = vmatpush.bf16.msrb.mxu2 %v490_v60 }
 0x1bd   :  { %516 = vrot.lane.b32.xlu0 %v3231_v41, %s3095_s23 }
 0x1c1   :  { %v511_v42 = vpop.permute.xlu2 %510 }
 0x1c5   :  { %493 = vrot.lane.b32.xlu0 %v3231_v41, %s3094_s22 }
 0x204   :  { %v225_v56 = vpop.xlane.xlu0 %224 }
 0x205   :  { %v229_v57 = vmul.f32 %v225_v56, %v3229_v40 }
 0x207   :  { %v231_v58 = vadd.f32 1e-12, %v229_v57 }
 0x209   :  { %2862 = vrsqrt.f32 %v231_v58  ;;  %vm239_vm8 = vweird.f32 %v231_v58 }
 0x20c   :  { %v228_v59 = vpop.xlane.xlu1 %227 }
 0x20d   :  { %v230_v61 = vmul.f32 %v228_v59, %v3229_v40 }
 0x20f   :  { %v2863_v62 = vpop.eup %2862  ;;  %v232_v63 = vadd.f32 1e-12, %v230_v61 }
 0x210   :  { %v234_v0 = vmul.f32 %v2863_v62, %v231_v58  ;;  %vm240_vm7 = vweird.f32 %v2863_v62 }
 0x211   :  { %2864 = vrsqrt.f32 %v232_v63  ;;  %vm241_vm9 = vmor %vm239_vm8, %vm240_vm7  ;;  %vm249_vm11 = vweird.f32 %v232_v63 }
 0x212   :  { %v235_v1 = vmul.f32 %v2863_v62, %v234_v0 }
 0x214   :  { %v236_v2 = vmul.f32 0.5, %v235_v1 }
 0x216   :  { %v237_v3 = vsub.f32 1.5, %v236_v2 }
 0x217   :  { %v2865_v4 = vpop.eup %2864  ;;  %v338_v5 = vpop.permute.xlu0 %337 }
 0x218   :  { %v238_v6 = vmul.f32 %v2863_v62, %v237_v3  ;;  %v244_v7 = vmul.f32 %v2865_v4, %v232_v63  ;;  %353 = vmatpush.bf16.msrb.mxu0 %v338_v5  ;;  %vm250_vm10 = vweird.f32 %v2865_v4 }
 0x219   :  { %vm251_vm12 = vmor %vm249_vm11, %vm250_vm10 }
 0x21a   :  { %v245_v8 = vmul.f32 %v2865_v4, %v244_v7  ;;  %v242_v9 = vsel %vm241_vm9, %v2863_v62, %v238_v6 }
 0x21b   :  { %v253_v13 = vmul.f32 %v242_v9, %v219_v44  ;;  %v262_v44 = vsub.f32 1.0, %v261_v43 }
 0x21c   :  { %v246_v10 = vmul.f32 0.5, %v245_v8 }
 0x21d   :  { %v256_v18 = vmul.f32 %v2843_v12, %v253_v13  ;;  %v263_v45 = vmul.f32 -10000.0, %v262_v44 }
 0x21e   :  { %v247_v11 = vsub.f32 1.5, %v246_v10 }
 0x21f   :  { %v488_v14 = vpop.permute.xlu0 %487  ;;  %v3267_v21 = vadd.f32 %v2844_v17, %v256_v18  ;;  %v3296_v46 = vperm.slane %v263_v45, 0 }
 0x220   :  { %v248_v15 = vmul.f32 %v2865_v4, %v247_v11  ;;  %503 = vmatpush.bf16.msrb.mxu2 %v488_v14 }
 0x222   :  { %v252_v16 = vsel %vm251_vm12, %v2865_v4, %v248_v15 }
 0x223   :  { %v254_v19 = vmul.f32 %v252_v16, %v220_v49  ;;  %v265_v49 = vld [vmem:[%s3717_s2 + $0x1] sm:$0x1]  ;;  %s3096_s2 = smov 56  }
 0x224   :  { %v513_v38 = vpop.permute.xlu1 %512  ;;  %v266_v51 = vsub.f32 1.0, %v265_v49 }
 0x225   :  { %v257_v20 = vmul.f32 %v2843_v12, %v254_v19 }
 0x226   :  { %v267_v53 = vmul.f32 -10000.0, %v266_v51 }
 0x227   :  { %v3269_v22 = vadd.f32 %v2844_v17, %v257_v20  ;;  %v344_v24 = vpop.permute.xlu0 %343 }
 0x229   :  { %v3273_v23 = vpack.c.bf16 %v3269_v22, %v3267_v21 }
 0x22b   :  { %2638 = vmatmul.msk.bf16.vlgmr.msra.gmra.mxu2 %vm169_vm0, %v3273_v23  ;;  %2639 = vmatmul.msk.bf16.vlgmr.msra.gmra.mxu3 %vm169_vm0, %v3273_v23 }
 0x22c   :  { %2640 = vmatmul.msk.bf16.vlgmr.msrb.gmra.mxu0 %vm169_vm0, %v3273_v23 }
 0x22f   :  { %v517_v59 = vpop.permute.xlu0 %516 }
 0x237   :  { %v494_v62 = vpop.permute.xlu0 %493 }
 0x23b   :  { %2647 = vmatmul.msk.bf16.vlgmr.msrb.gmra.mxu2 %vm169_vm0, %v3273_v23 }
 0x2a9   :  { %v355_v25 = vpop.f32.mrf.mxu0 }
 0x2aa   :  { %v356_v26 = vadd.f32 %v355_v25, %v344_v24 }
 0x2ac   :  { %417 = vmatpush.msra.mxu0 %v356_v26  ;;  %v282_v26 = vld [vmem:[%s3723_s8] sm:$0xf] }
 0x2ae   :  { %v308_v27 = vpop.f32.mrf.mxu2  ;;  %v332_v28 = vpop.f32.mrf.mxu3 }
 0x2af   :  { %v333_v29 = vadd.f32 %v332_v28, %v3257_v54  ;;  %v309_v32 = vadd.f32 %v3231_v41, %v308_v27  ;;  %v643_v27 = vsel %vm622_vm13, %v282_v26, 0 }
 0x2b1   :  { %v357_v30 = vpop.f32.mrf.mxu0  ;;  %2641 = vmatpush.xpose.msk.msrb.mxu1 %vm139_vm3, %v333_v29 }
 0x2b2   :  { %v358_v31 = vadd.f32 %v357_v30, %v344_v24 }
 0x2b4   :  { %2642 = vmatmul.msk.f32.vlgmr.msrb.gmra.mxu1 %vm139_vm3, %v309_v32 }
 0x2b5   :  { %480 = vmatpush.msra.mxu1 %v358_v31 }
 0x2b6   :  { %v334_v33 = vpop.f32.mrf.mxu3  ;;  %v310_v34 = vpop.f32.mrf.mxu2 }
 0x2b7   :  { %v335_v36 = vadd.f32 %v334_v33, %v3257_v54  ;;  %v311_v39 = vadd.f32 %v3231_v41, %v310_v34  ;;  %v3303_v54 = vperm.slane %v267_v53, 0 }
 0x2b9   :  { %2644 = vmatpush.xpose.msk.msrb.mxu3 %vm139_vm3, %v335_v36 }
 0x2bc   :  { %2645 = vmatmul.msk.f32.vlgmr.msrb.gmra.mxu3 %vm139_vm3, %v311_v39 }
 0x2bd   :  { %525 = vmatpush.bf16.msra.mxu3 %v513_v38 }
 0x2be   :  { %v505_v15 = vpop.f32.mrf.mxu2 }
 0x2bf   :  { %v506_v16 = vadd.f32 %v505_v15, %v494_v62 }
 0x2c1   :  { %526 = vmatpush.bf16.msra.mxu3 %v511_v42 }
 0x2c4   :  { %2648 = vmatmul.msk.bf16.vlgmr.msra.gmra.mxu3 %vm169_vm0, %v3273_v23 }
 0x2c5   :  { %652 = vmatpush.bf16.msrb.mxu3 %v643_v27 }
 0x2c6   :  { %v507_v24 = vpop.f32.mrf.mxu2 }
 0x2c7   :  { %v508_v25 = vadd.f32 %v507_v24, %v494_v62 }
 0x331   :  { %v383_v47 = vpop.f32.mrf.mxu1 }
 0x332   :  { %v386_v48 = vmul.f32 0.35355338, %v383_v47 }
 0x334   :  { %v387_v50 = vadd.f32 %v386_v48, %v3296_v46 }
 0x336   :  { %v388_v52 = vsel %vm139_vm3, %v387_v50, -inf }
 0x337   :  { %389 = vmax.xlane.f32.xlu0 %v388_v52 }
 0x33f   :  { %v446_v55 = vpop.f32.mrf.mxu3 }
 0x340   :  { %v449_v56 = vmul.f32 0.35355338, %v446_v55 }
 0x342   :  { %v450_v57 = vadd.f32 %v449_v56, %v3303_v54 }
 0x344   :  { %v451_v58 = vsel %vm139_vm3, %v450_v57, -inf }
 0x345   :  { %452 = vmax.xlane.f32.xlu2 %v451_v58 }
 0x347   :  { %v528_v60 = vpop.f32.mrf.mxu3 }
 0x348   :  { %v529_v61 = vadd.f32 %v528_v60, %v517_v59 }
 0x34a   :  { %2650 = vmatpush.xpose.msk.msrb.mxu1 %vm139_vm3, %v529_v61 }
 0x34f   :  { %v530_v18 = vpop.f32.mrf.mxu3 }
 0x350   :  { %v531_v20 = vadd.f32 %v530_v18, %v517_v59 }
 0x3aa   :  { %v390_v63 = vpop.xlane.xlu0 %389 }
 0x3ab   :  { %v391_v0 = vsub.f32 %v387_v50, %v390_v63  ;;  %v486_v63 = vld [vmem:[%s3723_s8 + $0x4] sm:$0xf] }
 0x3ad   :  { %v392_v1 = vmul.f32 1.442695, %v391_v0  ;;  %v624_v0 = vsel %vm622_vm13, %v486_v63, 0 }
 0x3ae   :  { %633 = vmatpush.bf16.msra.mxu2 %v624_v0 }
 0x3af   :  { %2866 = vpow2.f32 %v392_v1 }
 0x3b5   :  { %v2867_v2 = vpop.eup %2866 }
 0x3b6   :  { %v394_v3 = vsel %vm139_vm3, %v2867_v2, 0.0 }
 0x3b7   :  { %395 = vadd.xlane.f32.xlu2 %v394_v3 }
 0x3b8   :  { %v453_v4 = vpop.xlane.xlu2 %452 }
 0x3b9   :  { %v454_v5 = vsub.f32 %v450_v57, %v453_v4 }
 0x3bb   :  { %v455_v6 = vmul.f32 1.442695, %v454_v5 }
 0x3bd   :  { %2868 = vpow2.f32 %v455_v6 }
 0x3c3   :  { %v2869_v7 = vpop.eup %2868 }
 0x3c4   :  { %v457_v8 = vsel %vm139_vm3, %v2869_v7, 0.0 }
 0x3c5   :  { %458 = vadd.xlane.f32.xlu1 %v457_v8 }
 0x3cf   :  { %533 = vrot.lane.b32.xlu2 %v3224_v37, %s3096_s2 }
 0x3d7   :  { %539 = vrot.lane.b32.xlu2 %v3231_v41, %s3096_s2 }
 0x3de   :  { %535 = vrot.lane.b32.xlu1 %v3216_v35, %s3096_s2 }
 0x3df   :  { %756 = vrot.lane.b32.xlu2 %v3216_v35, %s3097_s13 }
 0x3e7   :  { %777 = vrot.lane.b32.xlu2 %v3224_v37, %s3098_s14 }
 0x3ef   :  { %754 = vrot.lane.b32.xlu2 %v3224_v37, %s3097_s13 }
 0x42a   :  { %v396_v9 = vpop.xlane.xlu2 %395 }
 0x42b   :  { %2870 = vrcp.f32 %v396_v9 }
 0x431   :  { %v2871_v10 = vpop.eup %2870 }
 0x432   :  { %v398_v11 = vmul.f32 %v2871_v10, %v2867_v2  ;;  %v534_v19 = vpop.permute.xlu2 %533 }
 0x434   :  { %2643 = vmatmul.msk.f32.vlgmr.msra.gmra.mxu0 %vm139_vm3, %v398_v11 }
 0x438   :  { %v459_v12 = vpop.xlane.xlu1 %458 }
 0x439   :  { %2872 = vrcp.f32 %v459_v12 }
 0x43a   :  { %v540_v36 = vpop.permute.xlu2 %539 }
 0x43f   :  { %v2873_v13 = vpop.eup %2872 }
 0x440   :  { %v461_v14 = vmul.f32 %v2873_v13, %v2869_v7 }
 0x442   :  { %2646 = vmatmul.msk.f32.vlgmr.msra.gmra.mxu1 %vm139_vm3, %v461_v14  ;;  %v757_v60 = vpop.permute.xlu2 %756 }
 0x443   :  { %769 = vmatpush.bf16.msrb.mxu2 %v757_v60 }
 0x44a   :  { %2651 = vmatmul.msk.f32.vlgmr.msrb.gmra.mxu1 %vm139_vm3, %v506_v16  ;;  %v778_v62 = vpop.permute.xlu2 %777 }
 0x450   :  { %v536_v17 = vpop.permute.xlu1 %535 }
 0x451   :  { %548 = vmatpush.bf16.msrb.mxu0 %v536_v17 }
 0x452   :  { %v755_v6 = vpop.permute.xlu2 %754 }
 0x453   :  { %770 = vmatpush.bf16.msrb.mxu2 %v755_v6 }
 0x455   :  { %549 = vmatpush.bf16.msrb.mxu0 %v534_v19 }
 0x458   :  { %2649 = vmatmul.msk.bf16.vlgmr.msrb.gmra.mxu0 %vm169_vm0, %v3273_v23 }
 0x459   :  { %2655 = vmatpush.xpose.msk.msra.mxu0 %vm139_vm3, %v531_v20 }
 0x45d   :  { %731 = vmatpush.bf16.msrb.mxu0 %v624_v0 }
 0x468   :  { %2656 = vmatmul.msk.f32.vlgmr.msra.gmra.mxu0 %vm139_vm3, %v508_v25 }
 0x4b1   :  { %v419_v28 = vpop.f32.mrf.mxu0 }
 0x4b2   :  { %v422_v29 = vpack.c.bf16 %v419_v28, %v419_v28 }
 0x4b4   :  { %2654 = vmatmul.msk.bf16.vlgmr.msrb.gmra.mxu3 %vm139_vm3, %v422_v29 }
 0x4bf   :  { %v3328_v30 = vpop.f32.mrf.mxu1 }
 0x4c0   :  { %v485_v17 = vpack.c.bf16 %v3328_v30, %v3328_v30 }
 0x4c7   :  { %v579_v31 = vpop.f32.mrf.mxu1 }
 0x4c8   :  { %v582_v32 = vmul.f32 0.35355338, %v579_v31 }
 0x4ca   :  { %v583_v33 = vadd.f32 %v582_v32, %v3296_v46 }
 0x4cc   :  { %v584_v34 = vsel %vm139_vm3, %v583_v33, -inf }
 0x4cd   :  { %585 = vmax.xlane.f32.xlu1 %v584_v34 }
 0x4d5   :  { %v551_v38 = vpop.f32.mrf.mxu0 }
 0x4d6   :  { %v552_v39 = vadd.f32 %v551_v38, %v540_v36 }
 0x4d8   :  { %613 = vmatpush.msra.mxu1 %v552_v39 }
 0x4dd   :  { %v553_v42 = vpop.f32.mrf.mxu0 }
 0x4de   :  { %v554_v43 = vadd.f32 %v553_v42, %v540_v36 }
 0x4e0   :  { %715 = vmatpush.msrb.mxu1 %v554_v43 }
 0x4e5   :  { %v681_v52 = vpop.f32.mrf.mxu0 }
 0x4e6   :  { %783 = vrot.lane.b32.xlu1 %v3231_v41, %s3098_s14  ;;  %v684_v53 = vmul.f32 0.35355338, %v681_v52 }
 0x4e8   :  { %v685_v55 = vadd.f32 %v684_v53, %v3303_v54 }
 0x4ea   :  { %v686_v56 = vsel %vm139_vm3, %v685_v55, -inf }
 0x4ee   :  { %760 = vrot.lane.b32.xlu1 %v3231_v41, %s3097_s13 }
 0x4f6   :  { %800 = vrot.lane.b32.xlu1 %v3224_v37, %s3099_s15 }
 0x537   :  { %v3342_v44 = vpop.f32.mrf.mxu3 }
 0x53f   :  { %v656_v45 = vpop.f32.mrf.mxu3 }
 0x540   :  { %v586_v47 = vpop.xlane.xlu1 %585 }
 0x541   :  { %v587_v48 = vsub.f32 %v583_v33, %v586_v47 }
 0x543   :  { %v588_v49 = vmul.f32 1.442695, %v587_v48 }
 0x545   :  { %2874 = vpow2.f32 %v588_v49 }
 0x54b   :  { %v2875_v50 = vpop.eup %2874 }
 0x54c   :  { %v590_v51 = vsel %vm139_vm3, %v2875_v50, 0.0 }
 0x54d   :  { %591 = vadd.xlane.f32.xlu0 %v590_v51 }
 0x558   :  { %v784_v12 = vpop.permute.xlu1 %783 }
 0x560   :  { %v761_v26 = vpop.permute.xlu1 %760 }
 0x561   :  { %779 = vrot.lane.b32.xlu0 %v3216_v35, %s3098_s14 }
 0x568   :  { %v801_v32 = vpop.permute.xlu1 %800 }
 0x58b   :  { %687 = vmax.xlane.f32.xlu0 %v686_v56 }
 0x59f   :  { %802 = vrot.lane.b32.xlu0 %v3216_v35, %s3099_s15 }
 0x5a7   :  { %806 = vrot.lane.b32.xlu0 %v3231_v41, %s3099_s15 }
 0x5af   :  { %1012 = vrot.lane.b32.xlu0 %v3216_v35, %s3100_s16 }
 0x5b7   :  { %989 = vrot.lane.b32.xlu0 %v3216_v35, %s3101_s17 }
 0x5bf   :  { %987 = vrot.lane.b32.xlu0 %v3224_v37, %s3101_s17 }
 0x5c0   :  { %v592_v57 = vpop.xlane.xlu0 %591 }
 0x5c1   :  { %2876 = vrcp.f32 %v592_v57 }
 0x5c7   :  { %v2877_v58 = vpop.eup %2876  ;;  %1035 = vrot.lane.b32.xlu0 %v3216_v35, %s3102_s18 }
 0x5c8   :  { %v594_v59 = vmul.f32 %v2877_v58, %v2875_v50 }
 0x5ca   :  { %2652 = vmatmul.msk.f32.vlgmr.msra.gmra.mxu1 %vm139_vm3, %v594_v59 }
 0x5cb   :  { %747 = vmatpush.bf16.msra.mxu1 %v643_v27 }
 0x5cf   :  { %993 = vrot.lane.b32.xlu0 %v3231_v41, %s3101_s17 }
 0x5d3   :  { %v780_v61 = vpop.permute.xlu0 %779 }
 0x5d4   :  { %792 = vmatpush.bf16.msra.mxu3 %v780_v61 }
 0x5d8   :  { %793 = vmatpush.bf16.msra.mxu3 %v778_v62 }
 0x5db   :  { %2661 = vmatmul.msk.bf16.vlgmr.msra.gmra.mxu3 %vm169_vm0, %v3273_v23 }
 0x5fe   :  { %v688_v1 = vpop.xlane.xlu0 %687 }
 0x5ff   :  { %v689_v2 = vsub.f32 %v685_v55, %v688_v1 }
 0x601   :  { %v690_v3 = vmul.f32 1.442695, %v689_v2 }
 0x603   :  { %2878 = vpow2.f32 %v690_v3 }
 0x609   :  { %v2879_v4 = vpop.eup %2878 }
 0x60a   :  { %v692_v5 = vsel %vm139_vm3, %v2879_v4, 0.0 }
 0x60b   :  { %693 = vadd.xlane.f32.xlu2 %v692_v5 }
 0x611   :  { %v803_v9 = vpop.permute.xlu0 %802 }
 0x612   :  { %815 = vmatpush.bf16.msra.mxu0 %v803_v9 }
 0x616   :  { %816 = vmatpush.bf16.msra.mxu0 %v801_v32 }
 0x619   :  { %v807_v18 = vpop.permute.xlu0 %806 }
 0x621   :  { %v3384_v20 = vpop.permute.xlu0 %1012 }
 0x629   :  { %v990_v25 = vpop.permute.xlu0 %989 }
 0x631   :  { %v988_v29 = vpop.permute.xlu0 %987 }
 0x647   :  { %v615_v7 = vpop.f32.mrf.mxu1 }
 0x648   :  { %v618_v8 = vpack.c.bf16 %v615_v7, %v615_v7 }
 0x64a   :  { %2653 = vmatmul.msk.bf16.vlgmr.msra.gmra.mxu2 %vm139_vm3, %v618_v8 }
 0x65a   :  { %2660 = vmatmul.msk.bf16.vlgmr.msrb.gmra.mxu2 %vm169_vm0, %v3273_v23 }
 0x65e   :  { %v795_v11 = vpop.f32.mrf.mxu3 }
 0x65f   :  { %v796_v15 = vadd.f32 %v795_v11, %v784_v12 }
 0x666   :  { %v797_v16 = vpop.f32.mrf.mxu3 }
 0x667   :  { %v798_v35 = vadd.f32 %v797_v16, %v784_v12  ;;  %v1036_v12 = vpop.permute.xlu0 %1035 }
 0x67e   :  { %v694_v10 = vpop.xlane.xlu2 %693 }
 0x67f   :  { %2880 = vrcp.f32 %v694_v10 }
 0x685   :  { %v2881_v13 = vpop.eup %2880 }
 0x686   :  { %v696_v14 = vmul.f32 %v2881_v13, %v2879_v4 }
 0x688   :  { %2657 = vmatmul.msk.f32.vlgmr.msrb.gmra.mxu1 %vm139_vm3, %v696_v14 }
 0x689   :  { %2663 = vmatpush.xpose.msk.msrb.mxu1 %vm139_vm3, %v796_v15 }
 0x690   :  { %2659 = vmatmul.msk.bf16.vlgmr.msra.gmra.mxu1 %vm139_vm3, %v485_v17 }
 0x691   :  { %2667 = vmatpush.xpose.msk.msra.mxu1 %vm139_vm3, %v798_v35 }
 0x6cd   :  { %v3382_v19 = vpop.f32.mrf.mxu2 }
 0x6d5   :  { %v637_v24 = vpop.f32.mrf.mxu2 }
 0x6dd   :  { %v772_v27 = vpop.f32.mrf.mxu2 }
 0x6de   :  { %v773_v28 = vadd.f32 %v772_v27, %v761_v26 }
 0x6e0   :  { %2664 = vmatmul.msk.f32.vlgmr.msrb.gmra.mxu1 %vm139_vm3, %v773_v28 }
 0x6e1   :  { %1002 = vmatpush.bf16.msrb.mxu1 %v990_v25  ;;  %v994_v25 = vpop.permute.xlu0 %993 }
 0x6e5   :  { %v774_v30 = vpop.f32.mrf.mxu2  ;;  %1003 = vmatpush.bf16.msrb.mxu1 %v988_v29 }
 0x6e6   :  { %v775_v31 = vadd.f32 %v774_v30, %v761_v26 }
 0x6e8   :  { %2668 = vmatmul.msk.f32.vlgmr.msra.gmra.mxu1 %vm139_vm3, %v775_v31 }
 0x6f0   :  { %2671 = vmatmul.msk.bf16.vlgmr.msrb.gmra.mxu1 %vm169_vm0, %v3273_v23 }
 0x705   :  { %v717_v33 = vpop.f32.mrf.mxu1 }
 0x706   :  { %v720_v34 = vpack.c.bf16 %v717_v33, %v717_v33 }
 0x708   :  { %2658 = vmatmul.msk.bf16.vlgmr.msrb.gmra.mxu0 %vm139_vm3, %v720_v34 }
 0x70d   :  { %v3391_v36 = vpop.f32.mrf.mxu1 }
 0x715   :  { %v751_v38 = vpop.f32.mrf.mxu1 }
 0x718   :  { %2662 = vmatmul.msk.bf16.vlgmr.msra.gmra.mxu0 %vm169_vm0, %v3273_v23 }
 0x75d   :  { %v846_v39 = vpop.f32.mrf.mxu1 }
 0x75e   :  { %v849_v42 = vmul.f32 0.35355338, %v846_v39 }
 0x760   :  { %v850_v43 = vadd.f32 %v849_v42, %v3296_v46 }
 0x762   :  { %v851_v45 = vsel %vm139_vm3, %v850_v43, -inf }
 0x763   :  { %852 = vmax.xlane.f32.xlu2 %v851_v45 }
 0x765   :  { %v929_v47 = vpop.f32.mrf.mxu1 }
 0x766   :  { %v932_v48 = vmul.f32 0.35355338, %v929_v47 }
 0x768   :  { %v933_v49 = vadd.f32 %v932_v48, %v3303_v54 }
 0x76a   :  { %v934_v50 = vsel %vm139_vm3, %v933_v49, -inf }
 0x76b   :  { %935 = vmax.xlane.f32.xlu1 %v934_v50 }
 0x76d   :  { %v1005_v24 = vpop.f32.mrf.mxu1 }
 0x76e   :  { %v1006_v27 = vadd.f32 %v1005_v24, %v994_v25 }
 0x775   :  { %v1007_v29 = vpop.f32.mrf.mxu1 }
 0x776   :  { %v1008_v30 = vadd.f32 %v1007_v29, %v994_v25 }
 0x784   :  { %1016 = vrot.lane.b32.xlu1 %v3231_v41, %s3100_s16 }
 0x785   :  { %v3401_v51 = vpop.f32.mrf.mxu0 }
 0x786   :  { %v750_v32 = vadd.f32 %v3391_v36, %v3401_v51 }
 0x78d   :  { %v735_v52 = vpop.f32.mrf.mxu0 }
 0x795   :  { %v818_v53 = vpop.f32.mrf.mxu0 }
 0x796   :  { %v819_v55 = vadd.f32 %v818_v53, %v807_v18 }
 0x798   :  { %880 = vmatpush.msra.mxu2 %v819_v55 }
 0x79d   :  { %v820_v56 = vpop.f32.mrf.mxu0 }
 0x79e   :  { %v821_v57 = vadd.f32 %v820_v56, %v807_v18 }
 0x7a0   :  { %963 = vmatpush.msrb.mxu2 %v821_v57 }
 0x7d6   :  { %v853_v58 = vpop.xlane.xlu2 %852 }
 0x7d7   :  { %v854_v59 = vsub.f32 %v850_v43, %v853_v58 }
 0x7d9   :  { %v855_v60 = vmul.f32 1.442695, %v854_v59 }
 0x7db   :  { %2882 = vpow2.f32 %v855_v60 }
 0x7de   :  { %v936_v61 = vpop.xlane.xlu1 %935 }
 0x7df   :  { %v937_v62 = vsub.f32 %v933_v49, %v936_v61 }
 0x7e1   :  { %v2883_v63 = vpop.eup %2882  ;;  %v938_v0 = vmul.f32 1.442695, %v937_v62 }
 0x7e2   :  { %v857_v1 = vsel %vm139_vm3, %v2883_v63, 0.0 }
 0x7e3   :  { %2884 = vpow2.f32 %v938_v0  ;;  %858 = vadd.xlane.f32.xlu2 %v857_v1 }
 0x7e9   :  { %v2885_v2 = vpop.eup %2884 }
 0x7ea   :  { %v940_v3 = vsel %vm139_vm3, %v2885_v2, 0.0 }
 0x7eb   :  { %941 = vadd.xlane.f32.xlu2 %v940_v3 }
 0x7f6   :  { %v1017_v35 = vpop.permute.xlu1 %1016 }
 0x803   :  { %1010 = vrot.lane.b32.xlu2 %v3224_v37, %s3100_s16 }
 0x80b   :  { %1033 = vrot.lane.b32.xlu2 %v3224_v37, %s3102_s18  ;;  %v753_v37 = vld [vmem:[%s3723_s8 + $0x8] sm:$0xf] }
 0x80c   :  { %v890_v11 = vsel %vm622_vm13, %v753_v37, 0 }
 0x80d   :  { %899 = vmatpush.bf16.msrb.mxu3 %v890_v11  ;;  %979 = vmatpush.bf16.msrb.mxu0 %v890_v11 }
 0x811   :  { %1048 = vmatpush.bf16.msra.mxu3 %v1036_v12 }
 0x856   :  { %v859_v4 = vpop.xlane.xlu2 %858 }
 0x857   :  { %2886 = vrcp.f32 %v859_v4 }
 0x85d   :  { %v2887_v5 = vpop.eup %2886 }
 0x85e   :  { %v861_v6 = vmul.f32 %v2887_v5, %v2883_v63  ;;  %v942_v7 = vpop.xlane.xlu2 %941 }
 0x85f   :  { %2888 = vrcp.f32 %v942_v7 }
 0x860   :  { %2665 = vmatmul.msk.f32.vlgmr.msra.gmra.mxu2 %vm139_vm3, %v861_v6 }
 0x861   :  { %1025 = vmatpush.bf16.msra.mxu2 %v3384_v20 }
 0x865   :  { %v2889_v8 = vpop.eup %2888 }
 0x866   :  { %v944_v9 = vmul.f32 %v2889_v8, %v2885_v2  ;;  %v1011_v10 = vpop.permute.xlu2 %1010 }
 0x867   :  { %1026 = vmatpush.bf16.msra.mxu2 %v1011_v10 }
 0x868   :  { %2669 = vmatmul.msk.f32.vlgmr.msrb.gmra.mxu2 %vm139_vm3, %v944_v9 }
 0x86e   :  { %v1034_v13 = vpop.permute.xlu2 %1033 }
 0x86f   :  { %1049 = vmatpush.bf16.msra.mxu3 %v1034_v13  ;;  %v655_v13 = vadd.f32 %v3342_v44, %v3382_v19 }
 0x870   :  { %2672 = vmatmul.msk.bf16.vlgmr.msra.gmra.mxu2 %vm169_vm0, %v3273_v23 }
 0x8e3   :  { %v882_v14 = vpop.f32.mrf.mxu2 }
 0x8e4   :  { %v885_v15 = vpack.c.bf16 %v882_v14, %v882_v14 }
 0x8e6   :  { %2666 = vmatmul.msk.bf16.vlgmr.msrb.gmra.mxu3 %vm139_vm3, %v885_v15 }
 0x8eb   :  { %v965_v16 = vpop.f32.mrf.mxu2 }
 0x8ec   :  { %v968_v17 = vpack.c.bf16 %v965_v16, %v965_v16  ;;  %v2845_v16 = vld [vmem:[#allocation8 + $0x2] ss:$0 sm:$0xff] }
 0x8ee   :  { %2670 = vmatmul.msk.bf16.vlgmr.msrb.gmra.mxu0 %vm139_vm3, %v968_v17 }
 0x8f3   :  { %v1028_v18 = vpop.f32.mrf.mxu2 }
 0x8f4   :  { %v1029_v20 = vadd.f32 %v1028_v18, %v1017_v35 }
 0x8f6   :  { %2673 = vmatmul.msk.bf16.vlgmr.msra.gmra.mxu3 %vm169_vm0, %v3273_v23  ;;  %2674 = vmatpush.xpose.msk.msra.mxu0 %vm139_vm3, %v1029_v20 }
 0x8fb   :  { %v1030_v26 = vpop.f32.mrf.mxu2 }
 0x8fc   :  { %v1031_v28 = vadd.f32 %v1030_v26, %v1017_v35 }
 0x8fe   :  { %2675 = vmatmul.msk.f32.vlgmr.msra.gmra.mxu0 %vm139_vm3, %v1006_v27  ;;  %2678 = vmatpush.xpose.msk.msrb.mxu3 %vm139_vm3, %v1031_v28 }
 0x906   :  { %2679 = vmatmul.msk.f32.vlgmr.msrb.gmra.mxu3 %vm139_vm3, %v1008_v30 }
 0x969   :  { %v901_v31 = vpop.f32.mrf.mxu3 }
 0x96a   :  { %v905_v14 = vadd.f32 %v901_v31, %v655_v13 }
 0x96b   :  { %v981_v23 = vpop.f32.mrf.mxu0 }
 0x96c   :  { %v985_v33 = vadd.f32 %v981_v23, %v750_v32 }
 0x971   :  { %v903_v34 = vpop.f32.mrf.mxu3 }
 0x973   :  { %v983_v38 = vpop.f32.mrf.mxu0 }
 0x979   :  { %v1051_v39 = vpop.f32.mrf.mxu3 }
 0x97b   :  { %v1079_v42 = vpop.f32.mrf.mxu0 }
 0x97c   :  { %v1082_v43 = vmul.f32 0.35355338, %v1079_v42 }
 0x97e   :  { %v1083_v45 = vadd.f32 %v1082_v43, %v3296_v46 }
 0x980   :  { %v1084_v47 = vsel %vm139_vm3, %v1083_v45, -inf }
 0x981   :  { %1085 = vmax.xlane.f32.xlu2 %v1084_v47  ;;  %v1053_v48 = vpop.f32.mrf.mxu3 }
 0x989   :  { %v1162_v49 = vpop.f32.mrf.mxu3 }
 0x98a   :  { %v1165_v50 = vmul.f32 0.35355338, %v1162_v49 }
 0x98c   :  { %v1166_v52 = vadd.f32 %v1165_v50, %v3303_v54 }
 0x98e   :  { %v1167_v53 = vsel %vm139_vm3, %v1166_v52, -inf }
 0x98f   :  { %1168 = vmax.xlane.f32.xlu0 %v1167_v53 }
 0x9f4   :  { %v1086_v36 = vpop.xlane.xlu2 %1085 }
 0x9f5   :  { %v1087_v51 = vsub.f32 %v1083_v45, %v1086_v36  ;;  %v2804_v45 = vld [vmem:[#allocation7] sm:$0xff] }
 0x9f7   :  { %v1088_v55 = vmul.f32 1.442695, %v1087_v51 }
 0x9f9   :  { %2890 = vpow2.f32 %v1088_v55 }
 0x9ff   :  { %v2891_v56 = vpop.eup %2890 }
 0xa00   :  { %v1090_v57 = vsel %vm139_vm3, %v2891_v56, 0.0 }
 0xa01   :  { %1091 = vadd.xlane.f32.xlu1 %v1090_v57 }
 0xa02   :  { %v1169_v58 = vpop.xlane.xlu0 %1168 }
 0xa03   :  { %v1170_v59 = vsub.f32 %v1166_v52, %v1169_v58 }
 0xa05   :  { %v1171_v60 = vmul.f32 1.442695, %v1170_v59 }
 0xa07   :  { %2892 = vpow2.f32 %v1171_v60 }
 0xa0d   :  { %v2893_v61 = vpop.eup %2892 }
 0xa0e   :  { %v1173_v62 = vsel %vm139_vm3, %v2893_v61, 0.0 }
 0xa0f   :  { %1174 = vadd.xlane.f32.xlu2 %v1173_v62  ;;  %v2846_v62 = vld [vmem:[#allocation8 + $0x3] ss:$0 sm:$0xff] }
 0xa27   :  { %1039 = vrot.lane.b32.xlu2 %v3231_v41, %s3102_s18  ;;  %v986_v41 = vld [vmem:[%s3723_s8 + $0xc] sm:$0xf] }
 0xa28   :  { %v1123_v8 = vsel %vm622_vm13, %v986_v41, 0 }
 0xa29   :  { %1132 = vmatpush.bf16.msrb.mxu2 %v1123_v8 }
 0xa74   :  { %v1092_v63 = vpop.xlane.xlu1 %1091 }
 0xa75   :  { %2894 = vrcp.f32 %v1092_v63 }
 0xa7b   :  { %v2895_v1 = vpop.eup %2894 }
 0xa7c   :  { %v1094_v6 = vmul.f32 %v2895_v1, %v2891_v56 }
 0xa82   :  { %v1175_v0 = vpop.xlane.xlu2 %1174 }
 0xa83   :  { %2896 = vrcp.f32 %v1175_v0 }
 0xa89   :  { %v2897_v2 = vpop.eup %2896 }
 0xa8a   :  { %v1040_v3 = vpop.permute.xlu2 %1039  ;;  %v1177_v7 = vmul.f32 %v2897_v2, %v2893_v61  ;;  %v2847_v2 = vld [vmem:[#allocation8 + $0x4] ss:$0 sm:$0xff] }
 0xa8b   :  { %v1052_v4 = vadd.f32 %v1051_v39, %v1040_v3  ;;  %v1054_v5 = vadd.f32 %v1053_v48, %v1040_v3 }
 0xa8d   :  { %1113 = vmatpush.msra.mxu1 %v1052_v4  ;;  %1196 = vmatpush.msrb.mxu0 %v1054_v5 }
 0xa8e   :  { %2676 = vmatmul.msk.f32.vlgmr.msra.gmra.mxu1 %vm139_vm3, %v1094_v6  ;;  %2680 = vmatmul.msk.f32.vlgmr.msrb.gmra.mxu0 %vm139_vm3, %v1177_v7 }
 0xa8f   :  { %1212 = vmatpush.bf16.msrb.mxu1 %v1123_v8  ;;  %v2809_v8 = vld [vmem:[%s3725_s10 + $0x18] sm:$0xff] }
 0xa90   :  { %1369 = vmatpush.bf16.msra.mxu2 %v2809_v8 }
 0xb0b   :  { %v1115_v9 = vpop.f32.mrf.mxu1  ;;  %v1198_v10 = vpop.f32.mrf.mxu0 }
 0xb0c   :  { %v1118_v37 = vpack.c.bf16 %v1115_v9, %v1115_v9  ;;  %v1201_v11 = vpack.c.bf16 %v1198_v10, %v1198_v10  ;;  %v2808_v9 = vld [vmem:[%s3725_s10 + $0x10] sm:$0xff]  ;;  %v2807_v10 = vld [vmem:[%s3725_s10 + $0x8] sm:$0xff] }
 0xb0d   :  { %1370 = vmatpush.bf16.msra.mxu2 %v2808_v9 }
 0xb0e   :  { %2677 = vmatmul.msk.bf16.vlgmr.msrb.gmra.mxu2 %vm139_vm3, %v1118_v37  ;;  %2681 = vmatmul.msk.bf16.vlgmr.msrb.gmra.mxu1 %vm139_vm3, %v1201_v11  ;;  %v2848_v37 = vld [vmem:[#allocation8 + $0x1] ss:$0 sm:$0xff] }
 0xb11   :  { %1371 = vmatpush.bf16.msra.mxu2 %v2807_v10 }
 0xb8b   :  { %v1214_v12 = vpop.f32.mrf.mxu1 }
 0xb8c   :  { %v1218_v18 = vadd.f32 %v1214_v12, %v985_v33  ;;  %v2806_v12 = vld [vmem:[%s3725_s10] sm:$0xff] }
 0xb8d   :  { %1372 = vmatpush.bf16.msra.mxu2 %v2806_v12 }
 0xb8e   :  { %v1221_v25 = vadd.f32 %v2845_v16, %v1218_v18 }
 0xb90   :  { %v1223_v28 = vadd.f32 %v1221_v25, %v3269_v22  ;;  %v2805_v22 = vld [vmem:[#allocation7 + $0x8] sm:$0xff] }
 0xb91   :  { %v1134_v15 = vpop.f32.mrf.mxu2  ;;  %1301 = vmatpush.bf16.msra.mxu3 %v2805_v22 }
 0xb92   :  { %v1138_v17 = vadd.f32 %v1134_v15, %v905_v14  ;;  %v1227_v29 = vsel %vm169_vm0, %v1223_v28, 0.0 }
 0xb93   :  { %v1216_v35 = vpop.f32.mrf.mxu1 }
 0xb94   :  { %v1220_v20 = vadd.f32 %v2845_v16, %v1138_v17 }
 0xb95   :  { %1302 = vmatpush.bf16.msra.mxu3 %v2804_v45 }
 0xb96   :  { %v1222_v24 = vadd.f32 %v1220_v20, %v3267_v21 }
 0xb98   :  { %v1224_v26 = vsel %vm169_vm0, %v1222_v24, 0.0 }
 0xb99   :  { %1225 = vadd.xlane.f32.xlu0 %v1224_v26  ;;  %v1136_v27 = vpop.f32.mrf.mxu2 }
 0xba1   :  { %1228 = vadd.xlane.f32.xlu0 %v1227_v29 }
 0xc0c   :  { %v1226_v44 = vpop.xlane.xlu0 %1225 }
 0xc0d   :  { %v1230_v19 = vmul.f32 %v1226_v44, %v3229_v40 }
 0xc0f   :  { %v1232_v30 = vsub.f32 %v1222_v24, %v1230_v19 }
 0xc11   :  { %v1234_v31 = vmul.f32 %v1232_v30, %v1232_v30 }
 0xc13   :  { %v1236_v32 = vsel %vm169_vm0, %v1234_v31, 0.0 }
 0xc14   :  { %1237 = vadd.xlane.f32.xlu1 %v1236_v32  ;;  %v1229_v23 = vpop.xlane.xlu0 %1228 }
 0xc15   :  { %v1231_v21 = vmul.f32 %v1229_v23, %v3229_v40 }
 0xc17   :  { %v1233_v33 = vsub.f32 %v1223_v28, %v1231_v21 }
 0xc19   :  { %v1235_v34 = vmul.f32 %v1233_v33, %v1233_v33 }
 0xc1b   :  { %v1239_v38 = vsel %vm169_vm0, %v1235_v34, 0.0  ;;  %v2849_v34 = vld [vmem:[#allocation8 + $0x5] ss:$0 sm:$0xff] }
 0xc1c   :  { %1240 = vadd.xlane.f32.xlu0 %v1239_v38 }
 0xc87   :  { %v1238_v39 = vpop.xlane.xlu1 %1237 }
 0xc88   :  { %v1242_v42 = vmul.f32 %v1238_v39, %v3229_v40 }
 0xc8a   :  { %v1244_v43 = vadd.f32 1e-12, %v1242_v42 }
 0xc8c   :  { %2898 = vrsqrt.f32 %v1244_v43  ;;  %vm1252_vm15 = vweird.f32 %v1244_v43 }
 0xc8f   :  { %v1241_v47 = vpop.xlane.xlu0 %1240 }
 0xc90   :  { %v1243_v48 = vmul.f32 %v1241_v47, %v3229_v40 }
 0xc92   :  { %v2899_v49 = vpop.eup %2898  ;;  %v1245_v50 = vadd.f32 1e-12, %v1243_v48 }
 0xc93   :  { %v1247_v52 = vmul.f32 %v2899_v49, %v1244_v43  ;;  %vm1253_vm14 = vweird.f32 %v2899_v49 }
 0xc94   :  { %2900 = vrsqrt.f32 %v1245_v50  ;;  %vm1254_vm1 = vmor %vm1252_vm15, %vm1253_vm14  ;;  %vm1262_vm4 = vweird.f32 %v1245_v50 }
 0xc95   :  { %v1248_v53 = vmul.f32 %v2899_v49, %v1247_v52 }
 0xc97   :  { %v1249_v36 = vmul.f32 0.5, %v1248_v53 }
 0xc99   :  { %v1250_v51 = vsub.f32 1.5, %v1249_v36 }
 0xc9a   :  { %v2901_v55 = vpop.eup %2900 }
 0xc9b   :  { %v1251_v56 = vmul.f32 %v2899_v49, %v1250_v51  ;;  %v1257_v57 = vmul.f32 %v2901_v55, %v1245_v50  ;;  %vm1263_vm2 = vweird.f32 %v2901_v55  ;;  %v3481_v50 = vld [vmem:[%s3722_s7 + $0x10] sm:$0xff] }
 0xc9c   :  { %vm1264_vm5 = vmor %vm1262_vm4, %vm1263_vm2 }
 0xc9d   :  { %v1258_v58 = vmul.f32 %v2901_v55, %v1257_v57  ;;  %v1255_v59 = vsel %vm1254_vm1, %v2899_v49, %v1251_v56  ;;  %v3475_v49 = vld [vmem:[%s3722_s7 + $0x18] sm:$0xff] }
 0xc9e   :  { %v1266_v63 = vmul.f32 %v1255_v59, %v1232_v30  ;;  %1470 = vmatpush.bf16.msra.mxu0 %v3475_v49 }
 0xc9f   :  { %v1259_v60 = vmul.f32 0.5, %v1258_v58 }
 0xca0   :  { %v1269_v3 = vmul.f32 %v2846_v62, %v1266_v63 }
 0xca1   :  { %v1260_v61 = vsub.f32 1.5, %v1259_v60 }
 0xca2   :  { %v1272_v6 = vadd.f32 %v2847_v2, %v1269_v3  ;;  %1471 = vmatpush.bf16.msra.mxu0 %v3481_v50 }
 0xca3   :  { %v1261_v0 = vmul.f32 %v2901_v55, %v1260_v61  ;;  %v3490_v61 = vld [vmem:[#allocation8 + $0x8] ss:$0 sm:$0xff] }
 0xca5   :  { %v1265_v1 = vsel %vm1264_vm5, %v2901_v55, %v1261_v0 }
 0xca6   :  { %v1267_v4 = vmul.f32 %v1265_v1, %v1233_v33 }
 0xca8   :  { %v1270_v5 = vmul.f32 %v2846_v62, %v1267_v4 }
 0xcaa   :  { %v1273_v7 = vadd.f32 %v2847_v2, %v1270_v5 }
 0xcac   :  { %v1274_v41 = vpack.c.bf16 %v1273_v7, %v1272_v6 }
 0xcae   :  { %2690 = vmatmul.msk.bf16.vlgmr.msra.gmra.mxu3 %vm169_vm0, %v1274_v41 }
 0xd31   :  { %v1304_v11 = vpop.f32.mrf.mxu3 }
 0xd32   :  { %v1305_v13 = vadd.f32 %v2848_v37, %v1304_v11 }
 0xd34   :  { %v1309_v14 = vmul.f32 %v1305_v13, %v1305_v13 }
 0xd36   :  { %v1311_v15 = vmul.f32 %v1309_v14, %v1305_v13 }
 0xd38   :  { %v1313_v16 = vmul.f32 0.044715, %v1311_v15  ;;  %v2851_v15 = vld [vmem:[#allocation8 + $0x6] ss:$0 sm:$0xff] }
 0xd39   :  { %v1306_v17 = vpop.f32.mrf.mxu3 }
 0xd3a   :  { %v1315_v35 = vadd.f32 %v1313_v16, %v1305_v13  ;;  %v1307_v18 = vadd.f32 %v2848_v37, %v1306_v17 }
 0xd3c   :  { %v1317_v20 = vmul.f32 0.7978846, %v1315_v35  ;;  %v1310_v24 = vmul.f32 %v1307_v18, %v1307_v18 }
 0xd3e   :  { %v1312_v25 = vmul.f32 %v1310_v24, %v1307_v18  ;;  %2902 = vtanh.f32 %v1317_v20 }
 0xd40   :  { %v1314_v26 = vmul.f32 0.044715, %v1312_v25 }
 0xd42   :  { %v1316_v27 = vadd.f32 %v1314_v26, %v1307_v18 }
 0xd44   :  { %v1318_v28 = vmul.f32 0.7978846, %v1316_v27  ;;  %v2903_v29 = vpop.eup %2902 }
 0xd45   :  { %v1321_v44 = vadd.f32 1.0, %v2903_v29 }
 0xd46   :  { %2904 = vtanh.f32 %v1318_v28 }
 0xd47   :  { %v1323_v30 = vmul.f32 0.5, %v1321_v44 }
 0xd49   :  { %v1325_v23 = vmul.f32 %v1323_v30, %v1305_v13 }
 0xd4c   :  { %v2905_v19 = vpop.eup %2904 }
 0xd4d   :  { %v1322_v31 = vadd.f32 1.0, %v2905_v19 }
 0xd4f   :  { %v1324_v32 = vmul.f32 0.5, %v1322_v31 }
 0xd51   :  { %v1326_v21 = vmul.f32 %v1324_v32, %v1307_v18  ;;  %v2852_v18 = vld [vmem:[#allocation8 + $0x7] ss:$0 sm:$0xff] }
 0xd53   :  { %v1327_v33 = vpack.c.bf16 %v1326_v21, %v1325_v23 }
 0xd55   :  { %2707 = vmatmul.msk.bf16.vlgmr.msra.gmra.mxu2 %vm1361_vm6, %v1327_v33 }
 0xdd8   :  { %v1374_v38 = vpop.f32.mrf.mxu2 }
 0xdd9   :  { %v1375_v22 = vadd.f32 %v2849_v34, %v1374_v38 }
 0xddb   :  { %v1379_v39 = vadd.f32 %v1375_v22, %v1272_v6 }
 0xddd   :  { %v1381_v42 = vsel %vm169_vm0, %v1379_v39, 0.0 }
 0xdde   :  { %1382 = vadd.xlane.f32.xlu1 %v1381_v42 }
 0xde0   :  { %v1376_v43 = vpop.f32.mrf.mxu2 }
 0xde1   :  { %v1377_v45 = vadd.f32 %v2849_v34, %v1376_v43 }
 0xde3   :  { %v1380_v47 = vadd.f32 %v1377_v45, %v1273_v7 }
 0xde5   :  { %v1384_v48 = vsel %vm169_vm0, %v1380_v47, 0.0 }
 0xde6   :  { %1385 = vadd.xlane.f32.xlu2 %v1384_v48 }
 0xe51   :  { %v1383_v52 = vpop.xlane.xlu1 %1382 }
 0xe52   :  { %v1387_v53 = vmul.f32 %v1383_v52, %v3229_v40 }
 0xe54   :  { %v1389_v36 = vsub.f32 %v1379_v39, %v1387_v53 }
 0xe56   :  { %v1391_v51 = vmul.f32 %v1389_v36, %v1389_v36 }
 0xe58   :  { %v1393_v55 = vsel %vm169_vm0, %v1391_v51, 0.0 }
 0xe59   :  { %v1386_v56 = vpop.xlane.xlu2 %1385  ;;  %1394 = vadd.xlane.f32.xlu0 %v1393_v55 }
 0xe5a   :  { %v1388_v57 = vmul.f32 %v1386_v56, %v3229_v40 }
 0xe5c   :  { %v1390_v58 = vsub.f32 %v1380_v47, %v1388_v57 }
 0xe5e   :  { %v1392_v59 = vmul.f32 %v1390_v58, %v1390_v58 }
 0xe60   :  { %v1396_v60 = vsel %vm169_vm0, %v1392_v59, 0.0 }
 0xe61   :  { %1397 = vadd.xlane.f32.xlu1 %v1396_v60 }
 0xe6d   :  { %1480 = vrot.lane.b32.xlu0 %v3475_v49, %s3093_s19 }
 0xe75   :  { %1485 = vrot.lane.b32.xlu0 %v3490_v61, %s3093_s19 }
 0xe7a   :  { %1478 = vrot.lane.b32.xlu1 %v3481_v50, %s3093_s19 }
 0xe7d   :  { %1502 = vrot.lane.b32.xlu0 %v3481_v50, %s3087_s21 }
 0xe82   :  { %1504 = vrot.lane.b32.xlu1 %v3475_v49, %s3087_s21 }
 0xe85   :  { %1508 = vrot.lane.b32.xlu0 %v3490_v61, %s3087_s21 }
 0xe8d   :  { %1654 = vrot.lane.b32.xlu0 %v3475_v49, %s3094_s22 }
 0xe95   :  { %1675 = vrot.lane.b32.xlu0 %v3481_v50, %s3095_s23 }
 0xe9d   :  { %1652 = vrot.lane.b32.xlu0 %v3481_v50, %s3094_s22 }
 0xecc   :  { %v1395_v62 = vpop.xlane.xlu0 %1394 }
 0xecd   :  { %v1399_v63 = vmul.f32 %v1395_v62, %v3229_v40 }
 0xecf   :  { %v1401_v0 = vadd.f32 1e-12, %v1399_v63 }
 0xed1   :  { %2906 = vrsqrt.f32 %v1401_v0  ;;  %vm1409_vm8 = vweird.f32 %v1401_v0 }
 0xed4   :  { %v1398_v1 = vpop.xlane.xlu1 %1397 }
 0xed5   :  { %v1400_v2 = vmul.f32 %v1398_v1, %v3229_v40 }
 0xed7   :  { %v2907_v3 = vpop.eup %2906  ;;  %v1402_v4 = vadd.f32 1e-12, %v1400_v2 }
 0xed8   :  { %v1404_v5 = vmul.f32 %v2907_v3, %v1401_v0  ;;  %vm1410_vm7 = vweird.f32 %v2907_v3 }
 0xed9   :  { %2908 = vrsqrt.f32 %v1402_v4  ;;  %vm1411_vm9 = vmor %vm1409_vm8, %vm1410_vm7  ;;  %vm1419_vm11 = vweird.f32 %v1402_v4 }
 0xeda   :  { %v1405_v6 = vmul.f32 %v2907_v3, %v1404_v5 }
 0xedc   :  { %v1406_v7 = vmul.f32 0.5, %v1405_v6 }
 0xede   :  { %v1407_v41 = vsub.f32 1.5, %v1406_v7 }
 0xedf   :  { %v2909_v8 = vpop.eup %2908  ;;  %v1481_v9 = vpop.permute.xlu0 %1480 }
 0xee0   :  { %v1408_v10 = vmul.f32 %v2907_v3, %v1407_v41  ;;  %v1414_v37 = vmul.f32 %v2909_v8, %v1402_v4  ;;  %1494 = vmatpush.bf16.msra.mxu1 %v1481_v9  ;;  %vm1420_vm10 = vweird.f32 %v2909_v8 }
 0xee1   :  { %vm1421_vm12 = vmor %vm1419_vm11, %vm1420_vm10  ;;  %vm2601_vm10 = vcmask 254976  }
 0xee2   :  { %v1415_v11 = vmul.f32 %v2909_v8, %v1414_v37  ;;  %v1412_v12 = vsel %vm1411_vm9, %v2907_v3, %v1408_v10  ;;  %vm2599_vm9 = vcmask 1040384  }
 0xee3   :  { %v1423_v16 = vmul.f32 %v1412_v12, %v1389_v36 }
 0xee4   :  { %v1416_v13 = vmul.f32 0.5, %v1415_v11 }
 0xee5   :  { %v1426_v20 = vmul.f32 %v2851_v15, %v1423_v16 }
 0xee6   :  { %v1417_v14 = vsub.f32 1.5, %v1416_v13 }
 0xee7   :  { %v1486_v26 = vpop.permute.xlu0 %1485  ;;  %v3510_v28 = vadd.f32 %v2852_v18, %v1426_v20  ;;  %v2712_v20 = vld [vmem:[%s3723_s8 + $0x10] sm:$0xf] }
 0xee8   :  { %v1418_v17 = vmul.f32 %v2909_v8, %v1417_v14 }
 0xeea   :  { %v1422_v35 = vsel %vm1421_vm12, %v2909_v8, %v1418_v17 }
 0xeeb   :  { %v1424_v24 = vmul.f32 %v1422_v35, %v1390_v58 }
 0xeec   :  { %v1479_v25 = vpop.permute.xlu1 %1478 }
 0xeed   :  { %v1427_v27 = vmul.f32 %v2851_v15, %v1424_v24  ;;  %1495 = vmatpush.bf16.msra.mxu1 %v1479_v25  ;;  %v3568_v24 = vsel %vm622_vm13, %v2712_v20, 0 }
 0xeef   :  { %v3512_v29 = vadd.f32 %v2852_v18, %v1427_v27  ;;  %v1503_v30 = vpop.permute.xlu0 %1502 }
 0xef1   :  { %v3516_v44 = vpack.c.bf16 %v3512_v29, %v3510_v28 }
 0xef3   :  { %2721 = vmatmul.msk.bf16.vlgmr.msra.gmra.mxu0 %vm169_vm0, %v3516_v44  ;;  %2722 = vmatmul.msk.bf16.vlgmr.msra.gmra.mxu1 %vm169_vm0, %v3516_v44 }
 0xef4   :  { %v1505_v19 = vpop.permute.xlu1 %1504 }
 0xef5   :  { %1517 = vmatpush.bf16.msrb.mxu3 %v1505_v19 }
 0xef7   :  { %v1509_v39 = vpop.permute.xlu0 %1508 }
 0xef9   :  { %1518 = vmatpush.bf16.msrb.mxu3 %v1503_v30 }
 0xefc   :  { %2723 = vmatmul.msk.bf16.vlgmr.msrb.gmra.mxu3 %vm169_vm0, %v3516_v44 }
 0xeff   :  { %v1655_v58 = vpop.permute.xlu0 %1654 }
 0xf07   :  { %v1676_v0 = vpop.permute.xlu0 %1675 }
 0xf0f   :  { %v1653_v41 = vpop.permute.xlu0 %1652 }
 0xf70   :  { %v1473_v31 = vpop.f32.mrf.mxu0  ;;  %v1497_v32 = vpop.f32.mrf.mxu1 }
 0xf71   :  { %v1498_v23 = vadd.f32 %v1497_v32, %v1486_v26  ;;  %v1474_v21 = vadd.f32 %v3490_v61, %v1473_v31 }
 0xf73   :  { %2724 = vmatpush.xpose.msk.msrb.mxu0 %vm139_vm3, %v1498_v23 }
 0xf76   :  { %2725 = vmatmul.msk.f32.vlgmr.msrb.gmra.mxu0 %vm139_vm3, %v1474_v21 }
 0xf78   :  { %v1499_v33 = vpop.f32.mrf.mxu1  ;;  %v1475_v34 = vpop.f32.mrf.mxu0 }
 0xf79   :  { %v1500_v38 = vadd.f32 %v1499_v33, %v1486_v26  ;;  %v1476_v22 = vadd.f32 %v3490_v61, %v1475_v34 }
 0xf7b   :  { %2727 = vmatpush.xpose.msk.msra.mxu0 %vm139_vm3, %v1500_v38 }
 0xf7e   :  { %2728 = vmatmul.msk.f32.vlgmr.msra.gmra.mxu0 %vm139_vm3, %v1476_v22 }
 0xf7f   :  { %v1520_v42 = vpop.f32.mrf.mxu3 }
 0xf80   :  { %v1521_v43 = vadd.f32 %v1520_v42, %v1509_v39 }
 0xf82   :  { %1582 = vmatpush.msrb.mxu2 %v1521_v43 }
 0xf84   :  { %1667 = vmatpush.bf16.msra.mxu2 %v1655_v58 }
 0xf87   :  { %v1522_v45 = vpop.f32.mrf.mxu3 }
 0xf88   :  { %v1523_v47 = vadd.f32 %v1522_v45, %v1509_v39  ;;  %1668 = vmatpush.bf16.msra.mxu2 %v1653_v41 }
 0xf8a   :  { %1645 = vmatpush.msrb.mxu1 %v1523_v47 }
 0xff3   :  { %v1548_v48 = vpop.f32.mrf.mxu0 }
 0xff4   :  { %v1551_v52 = vmul.f32 0.35355338, %v1548_v48 }
 0xff6   :  { %v1552_v53 = vadd.f32 %v1551_v52, %v3296_v46 }
 0xff8   :  { %v1553_v36 = vsel %vm139_vm3, %v1552_v53, -inf }
 0xff9   :  { %1554 = vmax.xlane.f32.xlu2 %v1553_v36 }
 0xffb   :  { %v1611_v51 = vpop.f32.mrf.mxu0 }
 0xffc   :  { %v1614_v55 = vmul.f32 0.35355338, %v1611_v51 }
 0xffe   :  { %v1615_v56 = vadd.f32 %v1614_v55, %v3303_v54 }
0x1000   :  { %v1616_v57 = vsel %vm139_vm3, %v1615_v56, -inf }
0x1011   :  { %1677 = vrot.lane.b32.xlu2 %v3475_v49, %s3095_s23 }
0x103a   :  { %1617 = vmax.xlane.f32.xlu2 %v1616_v57 }
0x1052   :  { %1700 = vrot.lane.b32.xlu2 %v3475_v49, %s3096_s2 }
0x106c   :  { %v1555_v59 = vpop.xlane.xlu2 %1554 }
0x106d   :  { %v1556_v60 = vsub.f32 %v1552_v53, %v1555_v59 }
0x106f   :  { %v1557_v62 = vmul.f32 1.442695, %v1556_v60 }
0x1071   :  { %2910 = vpow2.f32 %v1557_v62 }
0x1074   :  { %v1678_v63 = vpop.permute.xlu2 %1677 }
0x1075   :  { %1690 = vmatpush.bf16.msra.mxu3 %v1678_v63 }
0x1077   :  { %v2911_v1 = vpop.eup %2910 }
0x1078   :  { %v1559_v2 = vsel %vm139_vm3, %v2911_v1, 0.0 }
0x1079   :  { %1560 = vadd.xlane.f32.xlu1 %v1559_v2  ;;  %1691 = vmatpush.bf16.msra.mxu3 %v1676_v0 }
0x107c   :  { %2732 = vmatmul.msk.bf16.vlgmr.msra.gmra.mxu3 %vm169_vm0, %v3516_v44 }
0x107d   :  { %1816 = vmatpush.bf16.msrb.mxu3 %v3568_v24 }
0x1092   :  { %1681 = vrot.lane.b32.xlu1 %v3490_v61, %s3095_s23 }
0x109a   :  { %1658 = vrot.lane.b32.xlu1 %v3490_v61, %s3094_s22 }
0x10ad   :  { %v1618_v3 = vpop.xlane.xlu2 %1617 }
0x10ae   :  { %v1619_v4 = vsub.f32 %v1615_v56, %v1618_v3 }
0x10b0   :  { %v1620_v5 = vmul.f32 1.442695, %v1619_v4 }
0x10b2   :  { %2912 = vpow2.f32 %v1620_v5 }
0x10b5   :  { %v1701_v13 = vpop.permute.xlu2 %1700 }
0x10b6   :  { %1713 = vmatpush.bf16.msrb.mxu0 %v1701_v13 }
0x10b8   :  { %v2913_v6 = vpop.eup %2912 }
0x10b9   :  { %v1622_v7 = vsel %vm139_vm3, %v2913_v6, 0.0 }
0x10ba   :  { %1623 = vadd.xlane.f32.xlu0 %v1622_v7 }
0x10ce   :  { %1698 = vrot.lane.b32.xlu0 %v3481_v50, %s3096_s2 }
0x10d6   :  { %1704 = vrot.lane.b32.xlu0 %v3490_v61, %s3096_s2 }
0x10de   :  { %1943 = vrot.lane.b32.xlu0 %v3475_v49, %s3098_s14 }
0x10e6   :  { %1920 = vrot.lane.b32.xlu0 %v3475_v49, %s3097_s13 }
0x10ec   :  { %v1561_v8 = vpop.xlane.xlu1 %1560 }
0x10ed   :  { %2914 = vrcp.f32 %v1561_v8 }
0x10ee   :  { %1918 = vrot.lane.b32.xlu0 %v3481_v50, %s3097_s13 }
0x10f3   :  { %v2915_v9 = vpop.eup %2914 }
0x10f4   :  { %v1563_v10 = vmul.f32 %v2915_v9, %v2911_v1  ;;  %v2730_v9 = vld [vmem:[%s3723_s8 + $0x14] sm:$0xf] }
0x10f6   :  { %2726 = vmatmul.msk.f32.vlgmr.msrb.gmra.mxu2 %vm139_vm3, %v1563_v10  ;;  %v1788_v10 = vsel %vm622_vm13, %v2730_v9, 0 }
0x10f7   :  { %1797 = vmatpush.bf16.msrb.mxu2 %v1788_v10 }
0x10fe   :  { %2731 = vmatmul.msk.bf16.vlgmr.msra.gmra.mxu2 %vm169_vm0, %v3516_v44 }
0x10ff   :  { %v1693_v37 = vpop.f32.mrf.mxu3 }
0x1104   :  { %v1682_v11 = vpop.permute.xlu1 %1681 }
0x1105   :  { %v1694_v12 = vadd.f32 %v1693_v37, %v1682_v11 }
0x1107   :  { %2734 = vmatpush.xpose.msk.msra.mxu1 %vm139_vm3, %v1694_v12  ;;  %v1695_v17 = vpop.f32.mrf.mxu3 }
0x1108   :  { %v1696_v35 = vadd.f32 %v1695_v17, %v1682_v11 }
0x110c   :  { %v1659_v27 = vpop.permute.xlu1 %1658 }
0x112d   :  { %v1624_v14 = vpop.xlane.xlu0 %1623 }
0x112e   :  { %2916 = vrcp.f32 %v1624_v14 }
0x1134   :  { %v2917_v15 = vpop.eup %2916 }
0x1135   :  { %v1626_v16 = vmul.f32 %v2917_v15, %v2913_v6 }
0x1137   :  { %2729 = vmatmul.msk.f32.vlgmr.msrb.gmra.mxu1 %vm139_vm3, %v1626_v16 }
0x1140   :  { %v1699_v18 = vpop.permute.xlu0 %1698 }
0x1141   :  { %1714 = vmatpush.bf16.msrb.mxu0 %v1699_v18 }
0x1144   :  { %2733 = vmatmul.msk.bf16.vlgmr.msrb.gmra.mxu0 %vm169_vm0, %v3516_v44 }
0x1145   :  { %2739 = vmatpush.xpose.msk.msra.mxu0 %vm139_vm3, %v1696_v35 }
0x1148   :  { %v1705_v23 = vpop.permute.xlu0 %1704 }
0x1149   :  { %1895 = vmatpush.bf16.msrb.mxu0 %v1788_v10 }
0x1150   :  { %v1944_v42 = vpop.permute.xlu0 %1943 }
0x1151   :  { %1956 = vmatpush.bf16.msra.mxu3 %v1944_v42 }
0x1158   :  { %v1921_v56 = vpop.permute.xlu0 %1920 }
0x1159   :  { %1933 = vmatpush.bf16.msra.mxu2 %v1921_v56 }
0x1160   :  { %v1919_v57 = vpop.permute.xlu0 %1918 }
0x1161   :  { %1934 = vmatpush.bf16.msra.mxu2 %v1919_v57 }
0x1179   :  { %v1584_v25 = vpop.f32.mrf.mxu2 }
0x117a   :  { %v1587_v26 = vpack.c.bf16 %v1584_v25, %v1584_v25 }
0x117c   :  { %2738 = vmatmul.msk.bf16.vlgmr.msrb.gmra.mxu3 %vm139_vm3, %v1587_v26 }
0x1181   :  { %v1670_v19 = vpop.f32.mrf.mxu2 }
0x1182   :  { %v1671_v30 = vadd.f32 %v1670_v19, %v1659_v27 }
0x1184   :  { %2735 = vmatmul.msk.f32.vlgmr.msra.gmra.mxu1 %vm139_vm3, %v1671_v30 }
0x1189   :  { %v1672_v31 = vpop.f32.mrf.mxu2 }
0x118a   :  { %v1673_v32 = vadd.f32 %v1672_v31, %v1659_v27 }
0x118c   :  { %2740 = vmatmul.msk.f32.vlgmr.msra.gmra.mxu0 %vm139_vm3, %v1673_v32 }
0x11b4   :  { %v1647_v22 = vpop.f32.mrf.mxu1 }
0x11b5   :  { %v1650_v12 = vpack.c.bf16 %v1647_v22, %v1647_v22 }
0x11c1   :  { %v1716_v21 = vpop.f32.mrf.mxu0 }
0x11c2   :  { %v1717_v33 = vadd.f32 %v1716_v21, %v1705_v23 }
0x11c4   :  { %1778 = vmatpush.msrb.mxu1 %v1717_v33 }
0x11c9   :  { %v1718_v34 = vpop.f32.mrf.mxu0 }
0x11ca   :  { %v1719_v38 = vadd.f32 %v1718_v34, %v1705_v23 }
0x11cc   :  { %1879 = vmatpush.msra.mxu1 %v1719_v38 }
0x11ff   :  { %v3574_v39 = vpop.f32.mrf.mxu3 }
0x1201   :  { %v1744_v43 = vpop.f32.mrf.mxu1 }
0x1202   :  { %v1747_v45 = vmul.f32 0.35355338, %v1744_v43 }
0x1204   :  { %v1748_v47 = vadd.f32 %v1747_v45, %v3296_v46 }
0x1206   :  { %v1749_v48 = vsel %vm139_vm3, %v1748_v47, -inf }
0x1207   :  { %v1820_v52 = vpop.f32.mrf.mxu3  ;;  %1750 = vmax.xlane.f32.xlu1 %v1749_v48 }
0x1209   :  { %v1845_v53 = vpop.f32.mrf.mxu0 }
0x120a   :  { %v1848_v36 = vmul.f32 0.35355338, %v1845_v53 }
0x120c   :  { %v1849_v51 = vadd.f32 %v1848_v36, %v3303_v54 }
0x120e   :  { %v1850_v55 = vsel %vm139_vm3, %v1849_v51, -inf }
0x120f   :  { %1851 = vmax.xlane.f32.xlu0 %v1850_v55 }
0x1220   :  { %1941 = vrot.lane.b32.xlu1 %v3481_v50, %s3098_s14 }
0x1228   :  { %1947 = vrot.lane.b32.xlu1 %v3490_v61, %s3098_s14 }
0x1230   :  { %1966 = vrot.lane.b32.xlu1 %v3475_v49, %s3099_s15 }
0x1238   :  { %1964 = vrot.lane.b32.xlu1 %v3481_v50, %s3099_s15 }
0x127a   :  { %v1751_v58 = vpop.xlane.xlu1 %1750 }
0x127b   :  { %v1752_v59 = vsub.f32 %v1748_v47, %v1751_v58 }
0x127d   :  { %v1753_v60 = vmul.f32 1.442695, %v1752_v59 }
0x127f   :  { %2918 = vpow2.f32 %v1753_v60 }
0x1282   :  { %v1852_v62 = vpop.xlane.xlu0 %1851 }
0x1283   :  { %v1853_v63 = vsub.f32 %v1849_v51, %v1852_v62 }
0x1285   :  { %v2919_v0 = vpop.eup %2918  ;;  %v1854_v1 = vmul.f32 1.442695, %v1853_v63 }
0x1286   :  { %v1755_v2 = vsel %vm139_vm3, %v2919_v0, 0.0 }
0x1287   :  { %2920 = vpow2.f32 %v1854_v1  ;;  %1756 = vadd.xlane.f32.xlu2 %v1755_v2 }
0x128d   :  { %v2921_v3 = vpop.eup %2920 }
0x128e   :  { %v1856_v4 = vsel %vm139_vm3, %v2921_v3, 0.0 }
0x128f   :  { %1857 = vadd.xlane.f32.xlu2 %v1856_v4 }
0x1292   :  { %v1942_v5 = vpop.permute.xlu1 %1941 }
0x1293   :  { %1957 = vmatpush.bf16.msra.mxu3 %v1942_v5 }
0x1296   :  { %2746 = vmatmul.msk.bf16.vlgmr.msra.gmra.mxu3 %vm169_vm0, %v3516_v44 }
0x129a   :  { %v1948_v13 = vpop.permute.xlu1 %1947 }
0x12a2   :  { %v1967_v35 = vpop.permute.xlu1 %1966 }
0x12a3   :  { %1979 = vmatpush.bf16.msra.mxu0 %v1967_v35 }
0x12a7   :  { %1924 = vrot.lane.b32.xlu2 %v3490_v61, %s3097_s13 }
0x12aa   :  { %v1965_v18 = vpop.permute.xlu1 %1964 }
0x12ab   :  { %1980 = vmatpush.bf16.msra.mxu0 %v1965_v18 }
0x12fa   :  { %v1757_v6 = vpop.xlane.xlu2 %1756 }
0x12fb   :  { %2922 = vrcp.f32 %v1757_v6 }
0x1301   :  { %v2923_v7 = vpop.eup %2922 }
0x1302   :  { %v1759_v41 = vmul.f32 %v2923_v7, %v2919_v0  ;;  %v1858_v8 = vpop.xlane.xlu2 %1857 }
0x1303   :  { %2924 = vrcp.f32 %v1858_v8 }
0x1304   :  { %2736 = vmatmul.msk.f32.vlgmr.msrb.gmra.mxu1 %vm139_vm3, %v1759_v41 }
0x1305   :  { %1911 = vmatpush.bf16.msrb.mxu1 %v3568_v24 }
0x1309   :  { %v2925_v37 = vpop.eup %2924 }
0x130a   :  { %v1860_v11 = vmul.f32 %v2925_v37, %v2921_v3  ;;  %v1925_v21 = vpop.permute.xlu2 %1924 }
0x130c   :  { %2741 = vmatmul.msk.f32.vlgmr.msra.gmra.mxu1 %vm139_vm3, %v1860_v11 }
0x1314   :  { %2743 = vmatmul.msk.bf16.vlgmr.msrb.gmra.mxu1 %vm139_vm3, %v1650_v12 }
0x1319   :  { %v1959_v14 = vpop.f32.mrf.mxu3 }
0x131a   :  { %v1960_v15 = vadd.f32 %v1959_v14, %v1948_v13 }
0x131c   :  { %2748 = vmatpush.xpose.msk.msra.mxu1 %vm139_vm3, %v1960_v15 }
0x1321   :  { %v1961_v16 = vpop.f32.mrf.mxu3 }
0x1322   :  { %v1962_v17 = vadd.f32 %v1961_v16, %v1948_v13 }
0x1324   :  { %2752 = vmatpush.xpose.msk.msrb.mxu1 %vm139_vm3, %v1962_v17 }
0x1381   :  { %v1780_v20 = vpop.f32.mrf.mxu1 }
0x1382   :  { %v1783_v24 = vpack.c.bf16 %v1780_v20, %v1780_v20 }
0x1384   :  { %2737 = vmatmul.msk.bf16.vlgmr.msrb.gmra.mxu2 %vm139_vm3, %v1783_v24 }
0x1389   :  { %v1881_v25 = vpop.f32.mrf.mxu1 }
0x138a   :  { %v1884_v26 = vpack.c.bf16 %v1881_v25, %v1881_v25 }
0x138c   :  { %2742 = vmatmul.msk.bf16.vlgmr.msrb.gmra.mxu0 %vm139_vm3, %v1884_v26 }
0x1391   :  { %v3606_v27 = vpop.f32.mrf.mxu1 }
0x1394   :  { %2745 = vmatmul.msk.bf16.vlgmr.msra.gmra.mxu2 %vm169_vm0, %v3516_v44 }
0x1399   :  { %v1915_v19 = vpop.f32.mrf.mxu1 }
0x139c   :  { %2747 = vmatmul.msk.bf16.vlgmr.msra.gmra.mxu0 %vm169_vm0, %v3516_v44 }
0x1407   :  { %v3612_v30 = vpop.f32.mrf.mxu2 }
0x1409   :  { %v3614_v31 = vpop.f32.mrf.mxu0 }
0x140f   :  { %v1801_v32 = vpop.f32.mrf.mxu2 }
0x1411   :  { %v1899_v23 = vpop.f32.mrf.mxu0 }
0x1417   :  { %v1936_v33 = vpop.f32.mrf.mxu2 }
0x1418   :  { %v1937_v34 = vadd.f32 %v1936_v33, %v1925_v21 }
0x1419   :  { %v1982_v4 = vpop.f32.mrf.mxu0 }
0x141a   :  { %2749 = vmatmul.msk.f32.vlgmr.msra.gmra.mxu1 %vm139_vm3, %v1937_v34  ;;  %v1819_v34 = vadd.f32 %v3574_v39, %v3612_v30 }
0x141f   :  { %v1938_v38 = vpop.f32.mrf.mxu2 }
0x1420   :  { %v1939_v22 = vadd.f32 %v1938_v38, %v1925_v21 }
0x1421   :  { %v1984_v7 = vpop.f32.mrf.mxu0 }
0x1422   :  { %2753 = vmatmul.msk.f32.vlgmr.msrb.gmra.mxu1 %vm139_vm3, %v1939_v22 }
0x1497   :  { %v2010_v42 = vpop.f32.mrf.mxu1 }
0x1498   :  { %v2013_v43 = vmul.f32 0.35355338, %v2010_v42 }
0x149a   :  { %v2014_v45 = vadd.f32 %v2013_v43, %v3296_v46  ;;  %v1914_v43 = vadd.f32 %v3606_v27, %v3614_v31 }
0x149c   :  { %v2015_v47 = vsel %vm139_vm3, %v2014_v45, -inf }
0x149d   :  { %2016 = vmax.xlane.f32.xlu1 %v2015_v47 }
0x149f   :  { %v2093_v48 = vpop.f32.mrf.mxu1 }
0x14a0   :  { %v2096_v52 = vmul.f32 0.35355338, %v2093_v48 }
0x14a2   :  { %v2097_v53 = vadd.f32 %v2096_v52, %v3303_v54 }
0x14a4   :  { %v2098_v36 = vsel %vm139_vm3, %v2097_v53, -inf }
0x14a5   :  { %2099 = vmax.xlane.f32.xlu2 %v2098_v36 }
0x14b6   :  { %2176 = vrot.lane.b32.xlu1 %v3475_v49, %s3100_s16 }
0x14bd   :  { %2174 = vrot.lane.b32.xlu2 %v3481_v50, %s3100_s16 }
0x14be   :  { %2151 = vrot.lane.b32.xlu1 %v3481_v50, %s3101_s17 }
0x14c5   :  { %2153 = vrot.lane.b32.xlu2 %v3475_v49, %s3101_s17 }
0x14c6   :  { %2180 = vrot.lane.b32.xlu1 %v3490_v61, %s3100_s16 }
0x14cd   :  { %2197 = vrot.lane.b32.xlu2 %v3481_v50, %s3102_s18 }
0x14d5   :  { %2157 = vrot.lane.b32.xlu2 %v3490_v61, %s3101_s17 }
0x1510   :  { %v2017_v51 = vpop.xlane.xlu1 %2016 }
0x1511   :  { %v2018_v55 = vsub.f32 %v2014_v45, %v2017_v51 }
0x1513   :  { %v2019_v56 = vmul.f32 1.442695, %v2018_v55 }
0x1515   :  { %2926 = vpow2.f32 %v2019_v56 }
0x1518   :  { %v2100_v57 = vpop.xlane.xlu2 %2099 }
0x1519   :  { %v2101_v50 = vsub.f32 %v2097_v53, %v2100_v57 }
0x151b   :  { %v2927_v58 = vpop.eup %2926  ;;  %v2102_v1 = vmul.f32 1.442695, %v2101_v50 }
0x151c   :  { %v2021_v59 = vsel %vm139_vm3, %v2927_v58, 0.0 }
0x151d   :  { %2022 = vadd.xlane.f32.xlu0 %v2021_v59  ;;  %2928 = vpow2.f32 %v2102_v1 }
0x1520   :  { %v2175_v60 = vpop.permute.xlu2 %2174 }
0x1523   :  { %v2929_v2 = vpop.eup %2928 }
0x1524   :  { %v2104_v3 = vsel %vm139_vm3, %v2929_v2, 0.0 }
0x1528   :  { %v2177_v62 = vpop.permute.xlu1 %2176  ;;  %v2154_v63 = vpop.permute.xlu2 %2153 }
0x1529   :  { %2166 = vmatpush.bf16.msra.mxu1 %v2154_v63 }
0x1530   :  { %v2152_v0 = vpop.permute.xlu1 %2151  ;;  %v2198_v15 = vpop.permute.xlu2 %2197 }
0x1531   :  { %1970 = vrot.lane.b32.xlu0 %v3490_v61, %s3099_s15  ;;  %2167 = vmatpush.bf16.msra.mxu1 %v2152_v0 }
0x1534   :  { %2757 = vmatmul.msk.bf16.vlgmr.msra.gmra.mxu1 %vm169_vm0, %v3516_v44 }
0x1538   :  { %v2181_v20 = vpop.permute.xlu1 %2180  ;;  %v2158_v19 = vpop.permute.xlu2 %2157 }
0x155b   :  { %2105 = vadd.xlane.f32.xlu0 %v2104_v3 }
0x156f   :  { %2199 = vrot.lane.b32.xlu0 %v3475_v49, %s3102_s18  ;;  %v2744_v49 = vld [vmem:[%s3723_s8 + $0x18] sm:$0xf] }
0x1570   :  { %v2054_v13 = vsel %vm622_vm13, %v2744_v49, 0  ;;  %v2853_v49 = vld [vmem:[#allocation8 + $0xa] ss:$0 sm:$0xff] }
0x1571   :  { %2063 = vmatpush.bf16.msrb.mxu3 %v2054_v13  ;;  %2143 = vmatpush.bf16.msrb.mxu0 %v2054_v13 }
0x1590   :  { %v2023_v5 = vpop.xlane.xlu0 %2022 }
0x1591   :  { %2930 = vrcp.f32 %v2023_v5 }
0x1597   :  { %v2931_v6 = vpop.eup %2930 }
0x1598   :  { %v2025_v10 = vmul.f32 %v2931_v6, %v2927_v58 }
0x15a3   :  { %v1971_v41 = vpop.permute.xlu0 %1970 }
0x15a4   :  { %v1983_v8 = vadd.f32 %v1982_v4, %v1971_v41  ;;  %v1985_v9 = vadd.f32 %v1984_v7, %v1971_v41 }
0x15a6   :  { %2044 = vmatpush.msrb.mxu2 %v1983_v8  ;;  %v2756_v8 = vld [vmem:[%s3723_s8 + $0x1c] sm:$0xf] }
0x15a7   :  { %2750 = vmatmul.msk.f32.vlgmr.msrb.gmra.mxu2 %vm139_vm3, %v2025_v10 }
0x15a8   :  { %2127 = vmatpush.msra.mxu2 %v1985_v9  ;;  %v2287_v9 = vsel %vm622_vm13, %v2756_v8, 0  ;;  %v2856_v8 = vld [vmem:[#allocation8 + $0x9] ss:$0 sm:$0xff] }
0x15aa   :  { %2189 = vmatpush.bf16.msrb.mxu2 %v2177_v62 }
0x15ae   :  { %2190 = vmatpush.bf16.msrb.mxu2 %v2175_v60 }
0x15b1   :  { %v2169_v24 = vpop.f32.mrf.mxu1 }
0x15b2   :  { %v2170_v23 = vadd.f32 %v2169_v24, %v2158_v19 }
0x15b9   :  { %v2171_v21 = vpop.f32.mrf.mxu1 }
0x15ce   :  { %v2106_v37 = vpop.xlane.xlu0 %2105 }
0x15cf   :  { %2932 = vrcp.f32 %v2106_v37 }
0x15d5   :  { %v2933_v11 = vpop.eup %2932 }
0x15d6   :  { %v2108_v12 = vmul.f32 %v2933_v11, %v2929_v2 }
0x15d8   :  { %2754 = vmatmul.msk.f32.vlgmr.msra.gmra.mxu2 %vm139_vm3, %v2108_v12 }
0x15d9   :  { %2296 = vmatpush.bf16.msra.mxu2 %v2287_v9 }
0x15e0   :  { %2758 = vmatmul.msk.bf16.vlgmr.msrb.gmra.mxu2 %vm169_vm0, %v3516_v44 }
0x15e1   :  { %v2200_v14 = vpop.permute.xlu0 %2199 }
0x15e2   :  { %2212 = vmatpush.bf16.msra.mxu3 %v2200_v14 }
0x15e6   :  { %2213 = vmatpush.bf16.msra.mxu3 %v2198_v15 }
0x162a   :  { %v2046_v16 = vpop.f32.mrf.mxu2 }
0x162b   :  { %v2049_v17 = vpack.c.bf16 %v2046_v16, %v2046_v16 }
0x162d   :  { %2751 = vmatmul.msk.bf16.vlgmr.msrb.gmra.mxu3 %vm139_vm3, %v2049_v17 }
0x163d   :  { %2759 = vmatmul.msk.bf16.vlgmr.msra.gmra.mxu3 %vm169_vm0, %v3516_v44  ;;  %v2172_v44 = vadd.f32 %v2171_v21, %v2158_v19 }
0x165b   :  { %v2129_v35 = vpop.f32.mrf.mxu2 }
0x165c   :  { %v2132_v18 = vpack.c.bf16 %v2129_v35, %v2129_v35 }
0x165e   :  { %2755 = vmatmul.msk.bf16.vlgmr.msrb.gmra.mxu0 %vm139_vm3, %v2132_v18 }
0x1663   :  { %v2192_v25 = vpop.f32.mrf.mxu2 }
0x1664   :  { %v2193_v26 = vadd.f32 %v2192_v25, %v2181_v20 }
0x1666   :  { %2760 = vmatpush.xpose.msk.msra.mxu0 %vm139_vm3, %v2193_v26 }
0x166b   :  { %v2194_v32 = vpop.f32.mrf.mxu2 }
0x166c   :  { %v2195_v33 = vadd.f32 %v2194_v32, %v2181_v20 }
0x166e   :  { %2761 = vmatmul.msk.f32.vlgmr.msra.gmra.mxu0 %vm139_vm3, %v2170_v23  ;;  %2764 = vmatpush.xpose.msk.msrb.mxu3 %vm139_vm3, %v2195_v33 }
0x1671   :  { %2765 = vmatmul.msk.f32.vlgmr.msrb.gmra.mxu3 %vm139_vm3, %v2172_v44 }
0x16b0   :  { %v2065_v38 = vpop.f32.mrf.mxu3 }
0x16b1   :  { %v2069_v22 = vadd.f32 %v2065_v38, %v1819_v34 }
0x16b8   :  { %v2067_v42 = vpop.f32.mrf.mxu3 }
0x16c0   :  { %v2215_v48 = vpop.f32.mrf.mxu3 }
0x16c8   :  { %v2217_v36 = vpop.f32.mrf.mxu3 }
0x16db   :  { %v2145_v45 = vpop.f32.mrf.mxu0 }
0x16dc   :  { %v2149_v47 = vadd.f32 %v2145_v45, %v1914_v43  ;;  %v2812_v43 = vld [vmem:[#allocation7 + $0x10] sm:$0xff] }
0x16e3   :  { %v2147_v52 = vpop.f32.mrf.mxu0 }
0x16eb   :  { %v2243_v53 = vpop.f32.mrf.mxu0 }
0x16ec   :  { %v2246_v51 = vmul.f32 0.35355338, %v2243_v53 }
0x16ee   :  { %v2247_v55 = vadd.f32 %v2246_v51, %v3296_v46 }
0x16f0   :  { %v2248_v56 = vsel %vm139_vm3, %v2247_v55, -inf }
0x16f1   :  { %2249 = vmax.xlane.f32.xlu1 %v2248_v56 }
0x16f4   :  { %v2326_v57 = vpop.f32.mrf.mxu3 }
0x16f5   :  { %v2329_v39 = vmul.f32 0.35355338, %v2326_v57 }
0x16f7   :  { %v2330_v30 = vadd.f32 %v2329_v39, %v3303_v54 }
0x16f9   :  { %v2331_v58 = vsel %vm139_vm3, %v2330_v30, -inf }
0x16fa   :  { %2332 = vmax.xlane.f32.xlu2 %v2331_v58 }
0x1712   :  { %2203 = vrot.lane.b32.xlu2 %v3490_v61, %s3102_s18 }
0x1764   :  { %v2250_v27 = vpop.xlane.xlu1 %2249 }
0x1765   :  { %v2251_v31 = vsub.f32 %v2247_v55, %v2250_v27 }
0x1767   :  { %v2252_v59 = vmul.f32 1.442695, %v2251_v31 }
0x1769   :  { %2934 = vpow2.f32 %v2252_v59 }
0x176d   :  { %v2333_v60 = vpop.xlane.xlu2 %2332 }
0x176e   :  { %v2334_v62 = vsub.f32 %v2330_v30, %v2333_v60 }
0x176f   :  { %v2935_v46 = vpop.eup %2934 }
0x1770   :  { %v2335_v63 = vmul.f32 1.442695, %v2334_v62  ;;  %v2254_v0 = vsel %vm139_vm3, %v2935_v46, 0.0  ;;  %v2854_v62 = vld [vmem:[#allocation8 + $0xb] ss:$0 sm:$0xff] }
0x1771   :  { %2255 = vadd.xlane.f32.xlu0 %v2254_v0 }
0x1772   :  { %2936 = vpow2.f32 %v2335_v63 }
0x1775   :  { %v2204_v50 = vpop.permute.xlu2 %2203 }
0x1776   :  { %v2216_v54 = vadd.f32 %v2215_v48, %v2204_v50  ;;  %v2218_v1 = vadd.f32 %v2217_v36, %v2204_v50 }
0x1778   :  { %v2937_v2 = vpop.eup %2936  ;;  %2277 = vmatpush.msrb.mxu1 %v2216_v54  ;;  %2360 = vmatpush.msrb.mxu0 %v2218_v1  ;;  %v2855_v54 = vld [vmem:[#allocation8 + $0xc] ss:$0 sm:$0xff] }
0x1779   :  { %v2337_v61 = vsel %vm139_vm3, %v2937_v2, 0.0 }
0x177a   :  { %2338 = vadd.xlane.f32.xlu1 %v2337_v61  ;;  %2376 = vmatpush.bf16.msra.mxu1 %v2287_v9 }
0x17e4   :  { %v2256_v3 = vpop.xlane.xlu0 %2255 }
0x17e5   :  { %2938 = vrcp.f32 %v2256_v3 }
0x17eb   :  { %v2939_v4 = vpop.eup %2938 }
0x17ec   :  { %v2258_v5 = vmul.f32 %v2939_v4, %v2935_v46 }
0x17ed   :  { %v2339_v6 = vpop.xlane.xlu1 %2338 }
0x17ee   :  { %2940 = vrcp.f32 %v2339_v6  ;;  %2762 = vmatmul.msk.f32.vlgmr.msrb.gmra.mxu1 %vm139_vm3, %v2258_v5  ;;  %v2817_v6 = vld [vmem:[%s3725_s10 + $0x38] sm:$0xff] }
0x17ef   :  { %2534 = vmatpush.bf16.msrb.mxu2 %v2817_v6 }
0x17f4   :  { %v2941_v7 = vpop.eup %2940 }
0x17f5   :  { %v2341_v41 = vmul.f32 %v2941_v7, %v2937_v2  ;;  %v2816_v7 = vld [vmem:[%s3725_s10 + $0x30] sm:$0xff] }
0x17f6   :  { %2535 = vmatpush.bf16.msrb.mxu2 %v2816_v7 }
0x17f7   :  { %2766 = vmatmul.msk.f32.vlgmr.msrb.gmra.mxu0 %vm139_vm3, %v2341_v41  ;;  %v2815_v41 = vld [vmem:[%s3725_s10 + $0x28] sm:$0xff] }
0x17fa   :  { %2536 = vmatpush.bf16.msrb.mxu2 %v2815_v41 }
0x186b   :  { %v2279_v10 = vpop.f32.mrf.mxu1 }
0x186c   :  { %v2282_v37 = vpack.c.bf16 %v2279_v10, %v2279_v10  ;;  %v2814_v10 = vld [vmem:[%s3725_s10 + $0x20] sm:$0xff]  ;;  %s3103_s10 = smov [#allocation10]  }
0x186d   :  { %2537 = vmatpush.bf16.msrb.mxu2 %v2814_v10  ;;  %s2608_s4 = sshll.u32 %s3103_s10, 4  ;;  %s2609_s4 = int_to_ptr.vmem [resolvable:$true] %s2608_s4 }
0x186e   :  { %2763 = vmatmul.msk.bf16.vlgmr.msra.gmra.mxu2 %vm139_vm3, %v2282_v37 }
0x1874   :  { %v2362_v11 = vpop.f32.mrf.mxu0 }
0x1875   :  { %v2365_v12 = vpack.c.bf16 %v2362_v11, %v2362_v11 }
0x1877   :  { %2767 = vmatmul.msk.bf16.vlgmr.msra.gmra.mxu1 %vm139_vm3, %v2365_v12 }
0x18f1   :  { %v2298_v13 = vpop.f32.mrf.mxu2 }
0x18f2   :  { %v2302_v14 = vadd.f32 %v2298_v13, %v2069_v22 }
0x18f4   :  { %v2384_v15 = vadd.f32 %v2853_v49, %v2302_v14  ;;  %v2378_v16 = vpop.f32.mrf.mxu1 }
0x18f5   :  { %v2382_v17 = vadd.f32 %v2378_v16, %v2149_v47 }
0x18f6   :  { %v2386_v35 = vadd.f32 %v2384_v15, %v3510_v28 }
0x18f7   :  { %v2385_v18 = vadd.f32 %v2853_v49, %v2382_v17 }
0x18f8   :  { %v2388_v20 = vsel %vm169_vm0, %v2386_v35, 0.0 }
0x18f9   :  { %2389 = vadd.xlane.f32.xlu1 %v2388_v20  ;;  %v2300_v24 = vpop.f32.mrf.mxu2  ;;  %v2387_v25 = vadd.f32 %v2385_v18, %v3512_v29  ;;  %v2813_v29 = vld [vmem:[#allocation7 + $0x18] sm:$0xff] }
0x18fa   :  { %2466 = vmatpush.bf16.msra.mxu3 %v2813_v29 }
0x18fb   :  { %v2391_v26 = vsel %vm169_vm0, %v2387_v25, 0.0 }
0x18fc   :  { %2392 = vadd.xlane.f32.xlu0 %v2391_v26  ;;  %v2380_v19 = vpop.f32.mrf.mxu1 }
0x18fe   :  { %2467 = vmatpush.bf16.msra.mxu3 %v2812_v43 }
0x196c   :  { %v2390_v32 = vpop.xlane.xlu1 %2389 }
0x196d   :  { %v2394_v23 = vmul.f32 %v2390_v32, %v3229_v40 }
0x196f   :  { %v2396_v21 = vsub.f32 %v2386_v35, %v2394_v23  ;;  %v2393_v33 = vpop.xlane.xlu0 %2392 }
0x1970   :  { %v2395_v44 = vmul.f32 %v2393_v33, %v3229_v40 }
0x1971   :  { %v2398_v34 = vmul.f32 %v2396_v21, %v2396_v21 }
0x1972   :  { %v2397_v28 = vsub.f32 %v2387_v25, %v2395_v44 }
0x1973   :  { %v2400_v38 = vsel %vm169_vm0, %v2398_v34, 0.0 }
0x1974   :  { %2401 = vadd.xlane.f32.xlu1 %v2400_v38  ;;  %v2399_v22 = vmul.f32 %v2397_v28, %v2397_v28 }
0x1976   :  { %v2403_v42 = vsel %vm169_vm0, %v2399_v22, 0.0 }
0x1977   :  { %2404 = vadd.xlane.f32.xlu0 %v2403_v42 }
0x19e7   :  { %v2402_v45 = vpop.xlane.xlu1 %2401 }
0x19e8   :  { %v2406_v47 = vmul.f32 %v2402_v45, %v3229_v40 }
0x19ea   :  { %v2408_v48 = vadd.f32 1e-12, %v2406_v47  ;;  %v2405_v52 = vpop.xlane.xlu0 %2404 }
0x19eb   :  { %v2407_v53 = vmul.f32 %v2405_v52, %v3229_v40 }
0x19ec   :  { %2942 = vrsqrt.f32 %v2408_v48  ;;  %vm2416_vm13 = vweird.f32 %v2408_v48 }
0x19ed   :  { %v2409_v36 = vadd.f32 1e-12, %v2407_v53 }
0x19ef   :  { %2944 = vrsqrt.f32 %v2409_v36  ;;  %vm2426_vm1 = vweird.f32 %v2409_v36 }
0x19f2   :  { %v2943_v51 = vpop.eup %2942 }
0x19f3   :  { %v2411_v55 = vmul.f32 %v2943_v51, %v2408_v48  ;;  %vm2417_vm3 = vweird.f32 %v2943_v51 }
0x19f4   :  { %vm2418_vm14 = vmor %vm2416_vm13, %vm2417_vm3 }
0x19f5   :  { %v2945_v56 = vpop.eup %2944  ;;  %v2412_v57 = vmul.f32 %v2943_v51, %v2411_v55 }
0x19f6   :  { %v2421_v39 = vmul.f32 %v2945_v56, %v2409_v36  ;;  %vm2427_vm15 = vweird.f32 %v2945_v56 }
0x19f7   :  { %v2413_v30 = vmul.f32 0.5, %v2412_v57  ;;  %vm2428_vm2 = vmor %vm2426_vm1, %vm2427_vm15 }
0x19f8   :  { %v2422_v58 = vmul.f32 %v2945_v56, %v2421_v39 }
0x19f9   :  { %v2414_v27 = vsub.f32 1.5, %v2413_v30 }
0x19fa   :  { %v2423_v31 = vmul.f32 0.5, %v2422_v58 }
0x19fb   :  { %v2415_v59 = vmul.f32 %v2943_v51, %v2414_v27 }
0x19fc   :  { %v2424_v60 = vsub.f32 1.5, %v2423_v31 }
0x19fd   :  { %v2419_v46 = vsel %vm2418_vm14, %v2943_v51, %v2415_v59 }
0x19fe   :  { %v2430_v63 = vmul.f32 %v2419_v46, %v2396_v21  ;;  %v2425_v0 = vmul.f32 %v2945_v56, %v2424_v60 }
0x1a00   :  { %v2429_v50 = vsel %vm2428_vm2, %v2945_v56, %v2425_v0  ;;  %v2433_v1 = vmul.f32 %v2854_v62, %v2430_v63 }
0x1a01   :  { %v2431_v2 = vmul.f32 %v2429_v50, %v2397_v28  ;;  %v2857_v28 = vld [vmem:[#allocation8 + $0xd] ss:$0 sm:$0xff] }
0x1a02   :  { %v2436_v3 = vadd.f32 %v2855_v54, %v2433_v1 }
0x1a03   :  { %v2434_v61 = vmul.f32 %v2854_v62, %v2431_v2 }
0x1a05   :  { %v2437_v4 = vadd.f32 %v2855_v54, %v2434_v61 }
0x1a07   :  { %v2438_v5 = vpack.c.bf16 %v2437_v4, %v2436_v3 }
0x1a09   :  { %2776 = vmatmul.msk.bf16.vlgmr.msra.gmra.mxu3 %vm169_vm0, %v2438_v5 }
0x1a8c   :  { %v2469_v9 = vpop.f32.mrf.mxu3 }
0x1a8d   :  { %v2470_v37 = vadd.f32 %v2856_v8, %v2469_v9 }
0x1a8f   :  { %v2474_v11 = vmul.f32 %v2470_v37, %v2470_v37 }
0x1a91   :  { %v2476_v12 = vmul.f32 %v2474_v11, %v2470_v37 }
0x1a93   :  { %v2478_v49 = vmul.f32 0.044715, %v2476_v12  ;;  %v2859_v12 = vld [vmem:[#allocation8 + $0xf] ss:$0 sm:$0xff] }
0x1a94   :  { %v2471_v13 = vpop.f32.mrf.mxu3 }
0x1a95   :  { %v2480_v14 = vadd.f32 %v2478_v49, %v2470_v37  ;;  %v2472_v15 = vadd.f32 %v2856_v8, %v2471_v13 }
0x1a97   :  { %v2482_v16 = vmul.f32 0.7978846, %v2480_v14  ;;  %v2475_v17 = vmul.f32 %v2472_v15, %v2472_v15 }
0x1a99   :  { %v2477_v35 = vmul.f32 %v2475_v17, %v2472_v15  ;;  %2946 = vtanh.f32 %v2482_v16 }
0x1a9b   :  { %v2479_v18 = vmul.f32 0.044715, %v2477_v35 }
0x1a9d   :  { %v2481_v20 = vadd.f32 %v2479_v18, %v2472_v15 }
0x1a9f   :  { %v2483_v24 = vmul.f32 0.7978846, %v2481_v20  ;;  %v2947_v25 = vpop.eup %2946 }
0x1aa0   :  { %v2486_v26 = vadd.f32 1.0, %v2947_v25 }
0x1aa1   :  { %2948 = vtanh.f32 %v2483_v24 }
0x1aa2   :  { %v2488_v32 = vmul.f32 0.5, %v2486_v26 }
0x1aa4   :  { %v2490_v33 = vmul.f32 %v2488_v32, %v2470_v37 }
0x1aa7   :  { %v2949_v19 = vpop.eup %2948 }
0x1aa8   :  { %v2487_v23 = vadd.f32 1.0, %v2949_v19 }
0x1aaa   :  { %v2489_v21 = vmul.f32 0.5, %v2487_v23 }
0x1aac   :  { %v2491_v44 = vmul.f32 %v2489_v21, %v2472_v15 }
0x1aae   :  { %v2492_v34 = vpack.c.bf16 %v2491_v44, %v2490_v33 }
0x1ab0   :  { %2801 = vmatmul.msk.bf16.vlgmr.msrb.gmra.mxu2 %vm1361_vm6, %v2492_v34 }
0x1b33   :  { %v2539_v38 = vpop.f32.mrf.mxu2 }
0x1b34   :  { %v2540_v22 = vadd.f32 %v2857_v28, %v2539_v38 }
0x1b36   :  { %v2544_v42 = vadd.f32 %v2540_v22, %v2436_v3 }
0x1b38   :  { %v2546_v29 = vsel %vm169_vm0, %v2544_v42, 0.0 }
0x1b39   :  { %2547 = vadd.xlane.f32.xlu0 %v2546_v29 }
0x1b3b   :  { %v2541_v43 = vpop.f32.mrf.mxu2 }
0x1b3c   :  { %v2542_v45 = vadd.f32 %v2857_v28, %v2541_v43 }
0x1b3e   :  { %v2545_v47 = vadd.f32 %v2542_v45, %v2437_v4 }
0x1b40   :  { %v2549_v48 = vsel %vm169_vm0, %v2545_v47, 0.0 }
0x1b41   :  { %2550 = vadd.xlane.f32.xlu1 %v2549_v48 }
0x1bac   :  { %v2548_v52 = vpop.xlane.xlu0 %2547 }
0x1bad   :  { %v2552_v53 = vmul.f32 %v2548_v52, %v3229_v40 }
0x1baf   :  { %v2554_v36 = vsub.f32 %v2544_v42, %v2552_v53 }
0x1bb1   :  { %v2556_v51 = vmul.f32 %v2554_v36, %v2554_v36 }
0x1bb3   :  { %v2558_v55 = vsel %vm169_vm0, %v2556_v51, 0.0 }
0x1bb4   :  { %v2551_v56 = vpop.xlane.xlu1 %2550  ;;  %2559 = vadd.xlane.f32.xlu1 %v2558_v55 }
0x1bb5   :  { %v2553_v57 = vmul.f32 %v2551_v56, %v3229_v40 }
0x1bb7   :  { %v2555_v39 = vsub.f32 %v2545_v47, %v2553_v57 }
0x1bb9   :  { %v2557_v30 = vmul.f32 %v2555_v39, %v2555_v39 }
0x1bbb   :  { %v2561_v58 = vsel %vm169_vm0, %v2557_v30, 0.0 }
0x1bbc   :  { %2562 = vadd.xlane.f32.xlu2 %v2561_v58 }
0x1c27   :  { %v2560_v27 = vpop.xlane.xlu1 %2559 }
0x1c28   :  { %v2564_v31 = vmul.f32 %v2560_v27, %v3229_v40 }
0x1c2a   :  { %v2566_v59 = vadd.f32 1e-12, %v2564_v31 }
0x1c2c   :  { %2950 = vrsqrt.f32 %v2566_v59  ;;  %vm2574_vm4 = vweird.f32 %v2566_v59 }
0x1c2f   :  { %v2563_v60 = vpop.xlane.xlu2 %2562 }
0x1c30   :  { %v2565_v62 = vmul.f32 %v2563_v60, %v3229_v40  ;;  %v2858_v40 = vld [vmem:[#allocation8 + $0xe] ss:$0 sm:$0xff] }
0x1c32   :  { %v2951_v46 = vpop.eup %2950  ;;  %v2567_v63 = vadd.f32 1e-12, %v2565_v62 }
0x1c33   :  { %v2569_v0 = vmul.f32 %v2951_v46, %v2566_v59  ;;  %vm2575_vm0 = vweird.f32 %v2951_v46 }
0x1c34   :  { %2952 = vrsqrt.f32 %v2567_v63  ;;  %vm2576_vm5 = vmor %vm2574_vm4, %vm2575_vm0  ;;  %vm2584_vm7 = vweird.f32 %v2567_v63 }
0x1c35   :  { %v2570_v50 = vmul.f32 %v2951_v46, %v2569_v0 }
0x1c37   :  { %v2571_v54 = vmul.f32 0.5, %v2570_v50 }
0x1c39   :  { %v2572_v1 = vsub.f32 1.5, %v2571_v54 }
0x1c3a   :  { %v2953_v2 = vpop.eup %2952 }
0x1c3b   :  { %v2579_v61 = vmul.f32 %v2953_v2, %v2567_v63  ;;  %v2573_v3 = vmul.f32 %v2951_v46, %v2572_v1  ;;  %vm2585_vm6 = vweird.f32 %v2953_v2 }
0x1c3c   :  { %vm2586_vm8 = vmor %vm2584_vm7, %vm2585_vm6 }
0x1c3d   :  { %v2580_v4 = vmul.f32 %v2953_v2, %v2579_v61  ;;  %v2577_v6 = vsel %vm2576_vm5, %v2951_v46, %v2573_v3 }
0x1c3e   :  { %v2588_v8 = vmul.f32 %v2577_v6, %v2554_v36 }
0x1c3f   :  { %v2581_v5 = vmul.f32 0.5, %v2580_v4 }
0x1c40   :  { %v2591_v37 = vmul.f32 %v2858_v40, %v2588_v8 }
0x1c41   :  { %v2582_v7 = vsub.f32 1.5, %v2581_v5 }
0x1c42   :  { %v2594_v13 = vadd.f32 %v2859_v12, %v2591_v37 }
0x1c43   :  { %v2583_v41 = vmul.f32 %v2953_v2, %v2582_v7 }
0x1c45   :  { %v2587_v9 = vsel %vm2586_vm8, %v2953_v2, %v2583_v41 }
0x1c46   :  { %v2589_v10 = vmul.f32 %v2587_v9, %v2555_v39 }
0x1c48   :  { %v2592_v11 = vmul.f32 %v2858_v40, %v2589_v10 }
0x1c4a   :  { %v2595_v49 = vadd.f32 %v2859_v12, %v2592_v11 }
0x1c4c   :  { %v2597_v14 = vrot.slane %v2595_v49, 7 }
0x1c4e   :  { %v2600_v15 = vsel %vm2599_vm9, %v2594_v13, %v2597_v14 }
0x1c4f   :  { %2602 = vst.msk [vmem:[#allocation10] sm:$0x3] %vm2601_vm10, %v2600_v15 }
0x1c50   :  { %2613 = dma.vmem_to_hbm [thread:$0]  %s2609_s4, 32, %s2611_s11, [#allocation4]  }
0x1c51   :  { %3080 = dma.done.wait [#allocation4], 32  }
0x1c52   :  { %3081 = vsyncadd [#allocation4], 4294967264 }
0x1c53   :  { %2618 = vsyncpa [#allocation3], 1 }
0x1c54   :  { %2619 = vsyncpa [#allocation6], 1 }
0x1c55   :  { %2620 = vsyncpa [#allocation9], 1 }
0x1c56   :  { %2621 = vsyncpa [#allocation4], 1 }

</bundles_post_ra>
